<compile_context>
chip_gen: v6e
topology: v6e:2x2x1
jax: 0.10.0
libtpu: 0.0.40
codegen_flags: <defaults>
</compile_context>

<pallas_src>
import functools

import jax
import jax.numpy as jnp
from jax.experimental import pallas as pl
from jax.experimental.pallas import tpu as pltpu

LANE = 128                                 # feature dims padded to multiples of this
_VMEM_LIMIT = 32 * 1024 * 1024             # scoped VMEM limit; safe on v5e/v6e/v7x
_FUSED_VMEM_BUDGET = 20 * 1024 * 1024      # gate for the resident-A fused kernel


def _round_up(v, m):
    return ((v + m - 1) // m) * m


def _pick_tiles(n_pad):
    """Decoupled row (T_I) / reduction (T_K) tiles: multiples of 128 dividing
    n_pad.  T_K gets the largest divisor (DMA granularity + MXU K-fill); T_I is
    kept small enough that the 'parallel' row axis has >= 2 blocks when
    possible (megacore sharding on v7x)."""
    divisors = [d for d in (512, 384, 256, 128) if n_pad % d == 0]
    t_k = divisors[0]
    t_i = next((d for d in divisors if n_pad // d >= 2), n_pad)
    return t_i, t_k


def _masked_log_softmax(logits, nclass):
    """log_softmax over the lane axis, masking padded class lanes."""
    col = jax.lax.broadcasted_iota(jnp.int32, logits.shape, 1)
    logits = jnp.where(col < nclass, logits, -1e30)
    m = jnp.max(logits, axis=-1, keepdims=True)
    s = logits - m
    lse = jnp.log(jnp.sum(jnp.exp(s), axis=-1, keepdims=True))
    return s - lse


# --------------------- fused resident-A kernel (moderate N) ------------------

def _fused_kernel(x_ref, a_ref, w1_ref, b1_ref, w2_ref, b2_ref, w3_ref, b3_ref,
                  out_ref, *, nclass, inv_temp):
    """Whole forward pass with A resident in VMEM (read from HBM exactly once)."""
    a = a_ref[...].astype(jnp.bfloat16)                    # cast f32->bf16 once
    ones = jnp.ones((a.shape[0], 1), dtype=jnp.bfloat16)
    # column degrees via the MXU (contract A's axis 0 -> result already (n,1))
    deg = jax.lax.dot_general(
        a, ones, dimension_numbers=(((0,), (0,)), ((), ())),
        preferred_element_type=jnp.float32) + 1.0          # "+ I" self-loops
    dinv = jax.lax.rsqrt(jnp.maximum(deg, 1e-12))          # (n, 1)

    z1 = jnp.dot(dinv * x_ref[...], w1_ref[...],
                 preferred_element_type=jnp.float32)
    agg1 = jax.lax.dot_general(
        a, z1.astype(jnp.bfloat16),
        dimension_numbers=(((0,), (0,)), ((), ())),
        preferred_element_type=jnp.float32)
    h1 = jnp.maximum(dinv * (agg1 + z1) + b1_ref[...], 0.0)

    z2 = jnp.dot(dinv * h1, w2_ref[...], preferred_element_type=jnp.float32)
    agg2 = jax.lax.dot_general(
        a, z2.astype(jnp.bfloat16),
        dimension_numbers=(((0,), (0,)), ((), ())),
        preferred_element_type=jnp.float32)
    h2 = dinv * (agg2 + z2) + b2_ref[...]

    logits = (jnp.dot(h2, w3_ref[...], preferred_element_type=jnp.float32)
              + b3_ref[...]) * inv_temp
    out_ref[...] = _masked_log_softmax(logits, nclass).astype(out_ref.dtype)


# ------------------------- tiled 3-pass kernels (large N) --------------------

def _deg_xw1_kernel(a_ref, x_ref, w1_ref, dinv_ref, z1_ref, deg_acc):
    """dinv = rsqrt(colsum(A) + 1)   and   Z1 = (dinv ⊙ X) @ W1  (bf16 output).

    grid = (i: target-node row tiles [parallel], k: source tiles [reduction, last]).
    a_ref : (t_k, t_i) bf16 tile of A; rows = source k, cols = target i.
    """
    k = pl.program_id(1)

    @pl.when(k == 0)
    def _():
        deg_acc[...] = jnp.ones_like(deg_acc)              # "+ I" self-loops

    ones = jnp.ones((a_ref.shape[0], 1), dtype=a_ref.dtype)
    deg_acc[...] += jax.lax.dot_general(
        a_ref[...], ones,
        dimension_numbers=(((0,), (0,)), ((), ())),
        preferred_element_type=jnp.float32)

    @pl.when(k == pl.num_programs(1) - 1)
    def _():
        dinv = jax.lax.rsqrt(jnp.maximum(deg_acc[...], 1e-12))     # (t_i, 1)
        dinv_ref[...] = dinv
        z1_ref[...] = jnp.dot(dinv * x_ref[...], w1_ref[...],
                              preferred_element_type=jnp.float32
                              ).astype(z1_ref.dtype)


def _agg1_xw2_kernel(a_ref, zk_ref, zi_ref, di_ref, w2_ref, b1_ref,
                     z2_ref, acc_ref):
    """H1 = relu(dinv ⊙ (A^Tc @ Z1 + Z1) + b1);  Z2 = (dinv ⊙ H1) @ W2 (bf16)."""
    k = pl.program_id(1)

    @pl.when(k == 0)
    def _():
        acc_ref[...] = jnp.zeros_like(acc_ref)

    # bf16 x bf16 MXU aggregation with f32 accumulation; Z1 is stored bf16 in
    # HBM so no per-step cast is needed.
    acc_ref[...] += jax.lax.dot_general(
        a_ref[...], zk_ref[...],
        dimension_numbers=(((0,), (0,)), ((), ())),
        preferred_element_type=jnp.float32)

    @pl.when(k == pl.num_programs(1) - 1)
    def _():
        di = di_ref[...]                                   # (t_i, 1)
        h1 = jnp.maximum(
            di * (acc_ref[...] + zi_ref[...].astype(jnp.float32)) + b1_ref[...],
            0.0)
        z2_ref[...] = jnp.dot(di * h1, w2_ref[...],
                              preferred_element_type=jnp.float32
                              ).astype(z2_ref.dtype)


def _agg2_head_kernel(a_ref, zk_ref, zi_ref, di_ref, b2_ref, w3_ref, b3_ref,
                      out_ref, acc_ref, *, nclass, inv_temp):
    """H2 = dinv ⊙ (A^Tc @ Z2 + Z2) + b2;  out = log_softmax((H2 W3 + b3)/T)."""
    k = pl.program_id(1)

    @pl.when(k == 0)
    def _():
        acc_ref[...] = jnp.zeros_like(acc_ref)

    acc_ref[...] += jax.lax.dot_general(
        a_ref[...], zk_ref[...],
        dimension_numbers=(((0,), (0,)), ((), ())),
        preferred_element_type=jnp.float32)

    @pl.when(k == pl.num_programs(1) - 1)
    def _():
        di = di_ref[...]
        h2 = di * (acc_ref[...] + zi_ref[...].astype(jnp.float32)) + b2_ref[...]
        logits = (jnp.dot(h2, w3_ref[...], preferred_element_type=jnp.float32)
                  + b3_ref[...]) * inv_temp
        out_ref[...] = _masked_log_softmax(logits, nclass).astype(out_ref.dtype)


# ------------------------------ JAX wrappers ---------------------------------

def _pad_weights(params, hpad, cpad, nhid, nclass):
    w1_p = jnp.pad(params["w1"], ((0, 0), (0, hpad - nhid)))
    b1_p = jnp.pad(params["b1"], (0, hpad - nhid)).reshape(1, hpad)
    w2_p = jnp.pad(params["w2"], ((0, hpad - nhid), (0, hpad - nhid)))
    b2_p = jnp.pad(params["b2"], (0, hpad - nhid)).reshape(1, hpad)
    w3_p = jnp.pad(params["w3"], ((0, hpad - nhid), (0, cpad - nclass)))
    b3_p = jnp.pad(params["b3"], (0, cpad - nclass)).reshape(1, cpad)
    return w1_p, b1_p, w2_p, b2_p, w3_p, b3_p


def _fused_fits(n, f, nhid, nclass):
    """Conservative VMEM estimate for the resident-A fused kernel."""
    hpad = _round_up(nhid, LANE)
    cpad = _round_up(nclass, LANE)
    a_bytes = n * n * (4 + 2)                              # f32 A input + bf16 copy
    feat_bytes = n * hpad * 4 * 6 + n * cpad * 4 * 2       # z/agg/h temporaries + out
    x_bytes = n * f * 4
    w_bytes = 4 * (f * hpad + hpad * hpad + hpad * cpad + 3 * hpad + cpad)
    return a_bytes + feat_bytes + x_bytes + w_bytes <= _FUSED_VMEM_BUDGET


def _forward_fused(params, x, adj, temperature):
    n, f = x.shape
    nhid = params["w1"].shape[1]
    nclass = params["w3"].shape[1]
    hpad = _round_up(nhid, LANE)
    cpad = _round_up(nclass, LANE)
    w1_p, b1_p, w2_p, b2_p, w3_p, b3_p = _pad_weights(params, hpad, cpad, nhid, nclass)

    vmem = pl.BlockSpec(memory_space=pltpu.MemorySpace.VMEM)
    out = pl.pallas_call(
        functools.partial(_fused_kernel, nclass=nclass,
                          inv_temp=float(1.0 / temperature)),
        out_shape=jax.ShapeDtypeStruct((n, cpad), jnp.float32),
        in_specs=[vmem] * 8,
        out_specs=vmem,
        compiler_params=pltpu.CompilerParams(vmem_limit_bytes=_VMEM_LIMIT),
    )(x.astype(jnp.float32), adj.astype(jnp.float32),
      w1_p, b1_p, w2_p, b2_p, w3_p, b3_p)
    return out[:, :nclass]


def _forward_tiled(params, x, adj, temperature):
    n, f = x.shape
    nhid = params["w1"].shape[1]
    nclass = params["w3"].shape[1]

    n_pad = _round_up(n, LANE)
    hpad = _round_up(nhid, LANE)
    cpad = _round_up(nclass, LANE)
    t_i, t_k = _pick_tiles(n_pad)
    grid = (n_pad // t_i, n_pad // t_k)

    # Zero padding is exact: padded rows/cols of A are zero, so padded nodes
    # never contribute to real rows even though their H1/Z2 values are nonzero.
    # A is padded + cast to bf16 in ONE fused XLA op, then streamed bf16.
    adj_p = jnp.pad(adj, ((0, n_pad - n), (0, n_pad - n))).astype(jnp.bfloat16)
    x_p = jnp.pad(x.astype(jnp.float32), ((0, n_pad - n), (0, 0)))
    w1_p, b1_p, w2_p, b2_p, w3_p, b3_p = _pad_weights(params, hpad, cpad, nhid, nclass)

    a_spec = pl.BlockSpec((t_k, t_i), lambda i, k: (k, i))   # A[source k, target i]
    row_i = lambda i, k: (i, 0)
    row_k = lambda i, k: (k, 0)
    const = lambda i, k: (0, 0)
    cparams = pltpu.CompilerParams(
        dimension_semantics=("parallel", "arbitrary"),
        vmem_limit_bytes=_VMEM_LIMIT)

    # ---- pass 1: degrees -> dinv, fused with first feature transform ----
    dinv, z1 = pl.pallas_call(
        _deg_xw1_kernel,
        out_shape=(jax.ShapeDtypeStruct((n_pad, 1), jnp.float32),
                   jax.ShapeDtypeStruct((n_pad, hpad), jnp.bfloat16)),
        grid_spec=pltpu.PrefetchScalarGridSpec(
            num_scalar_prefetch=0, grid=grid,
            in_specs=[a_spec,
                      pl.BlockSpec((t_i, f), row_i),
                      pl.BlockSpec((f, hpad), const)],
            out_specs=[pl.BlockSpec((t_i, 1), row_i),
                       pl.BlockSpec((t_i, hpad), row_i)],
            scratch_shapes=[pltpu.VMEM((t_i, 1), jnp.float32)]),
        compiler_params=cparams,
    )(adj_p, x_p, w1_p)

    # ---- pass 2: aggregation 1 + ReLU, fused with second feature transform ----
    z2 = pl.pallas_call(
        _agg1_xw2_kernel,
        out_shape=jax.ShapeDtypeStruct((n_pad, hpad), jnp.bfloat16),
        grid_spec=pltpu.PrefetchScalarGridSpec(
            num_scalar_prefetch=0, grid=grid,
            in_specs=[a_spec,
                      pl.BlockSpec((t_k, hpad), row_k),   # Z1[k]  (reduction stream)
                      pl.BlockSpec((t_i, hpad), row_i),   # Z1[i]  (self-loop)
                      pl.BlockSpec((t_i, 1), row_i),      # dinv[i]
                      pl.BlockSpec((hpad, hpad), const),
                      pl.BlockSpec((1, hpad), const)],
            out_specs=pl.BlockSpec((t_i, hpad), row_i),
            scratch_shapes=[pltpu.VMEM((t_i, hpad), jnp.float32)]),
        compiler_params=cparams,
    )(adj_p, z1, z1, dinv, w2_p, b1_p)

    # ---- pass 3: aggregation 2 + classifier head + masked log_softmax ----
    out = pl.pallas_call(
        functools.partial(_agg2_head_kernel, nclass=nclass,
                          inv_temp=float(1.0 / temperature)),
        out_shape=jax.ShapeDtypeStruct((n_pad, cpad), jnp.float32),
        grid_spec=pltpu.PrefetchScalarGridSpec(
            num_scalar_prefetch=0, grid=grid,
            in_specs=[a_spec,
                      pl.BlockSpec((t_k, hpad), row_k),   # Z2[k]
                      pl.BlockSpec((t_i, hpad), row_i),   # Z2[i]
                      pl.BlockSpec((t_i, 1), row_i),      # dinv[i]
                      pl.BlockSpec((1, hpad), const),     # b2
                      pl.BlockSpec((hpad, cpad), const),
                      pl.BlockSpec((1, cpad), const)],
            out_specs=pl.BlockSpec((t_i, cpad), row_i),
            scratch_shapes=[pltpu.VMEM((t_i, hpad), jnp.float32)]),
        compiler_params=cparams,
    )(adj_p, z2, z2, dinv, b2_p, w3_p, b3_p)

    return out[:n, :nclass]


@functools.partial(jax.jit, static_argnames=("force_tiled",))
def cog_forward(params, x, adj, force_tiled=False):
    """CoG.forward(x, adj) -> log-softmax predictions, shape (N, nclass)."""
    temperature = 0.2
    n, f = x.shape
    nhid = params["w1"].shape[1]
    nclass = params["w3"].shape[1]
    if (not force_tiled) and _fused_fits(n, f, nhid, nclass):
        return _forward_fused(params, x, adj, temperature)
    return _forward_tiled(params, x, adj, temperature)


def init_cog_params(key, nfeat, nhid, nclass):
    """Deterministic synthetic parameters matching the module shapes
    (weights stored already transposed to [in, out])."""
    k1, k2, k3, k4, k5, k6 = jax.random.split(key, 6)
    return {
        "w1": jax.random.normal(k1, (nfeat, nhid), jnp.float32) / jnp.sqrt(nfeat),
        "b1": 0.01 * jax.random.normal(k2, (nhid,), jnp.float32),
        "w2": jax.random.normal(k3, (nhid, nhid), jnp.float32) / jnp.sqrt(nhid),
        "b2": 0.01 * jax.random.normal(k4, (nhid,), jnp.float32),
        "w3": jax.random.normal(k5, (nhid, nclass), jnp.float32) / jnp.sqrt(nhid),
        "b3": 0.01 * jax.random.normal(k6, (nclass,), jnp.float32),
    }


def reference_forward(params, x, adj, temperature=0.2):
    """Pure-JAX f32 reference with the same gcn_norm semantics."""
    n = x.shape[0]
    a = adj + jnp.eye(n, dtype=adj.dtype)
    dinv = jax.lax.rsqrt(jnp.sum(a, axis=0))
    ahat = dinv[:, None] * a.T * dinv[None, :]
    h1 = jax.nn.relu(ahat @ (x @ params["w1"]) + params["b1"])
    h2 = ahat @ (h1 @ params["w2"]) + params["b2"]
    logits = (h2 @ params["w3"] + params["b3"]) / temperature
    return jax.nn.log_softmax(logits, axis=-1)


# ---------------------------------- main ------------------------------------

if __name__ == "__main__":
    key = jax.random.PRNGKey(0)
    # N=300 exercises padding; the tiled path (forced below) runs a 3x1 grid.
    N, NFEAT, NHID, NCLASS = 300, 32, 16, 4

    kx, ka, kp = jax.random.split(key, 3)
    x = jax.random.normal(kx, (N, NFEAT), jnp.float32)

    # Random sparse symmetric 0/1 adjacency with empty diagonal.
    a_rand = jax.random.uniform(ka, (N, N))
    adj = (a_rand < 0.10).astype(jnp.float32)
    adj = jnp.maximum(adj, adj.T)
    adj = adj * (1.0 - jnp.eye(N, dtype=jnp.float32))

    params = init_cog_params(kp, NFEAT, NHID, NCLASS)
    ref = reference_forward(params, x, adj)

    # Fused resident-A path (default for moderate graphs).
    out_fused = cog_forward(params, x, adj)
    jax.block_until_ready(out_fused)
    assert out_fused.shape == (N, NCLASS)
    assert jnp.allclose(jnp.sum(jnp.exp(out_fused), axis=1), 1.0, atol=1e-3)
    err_fused = float(jnp.max(jnp.abs(out_fused - ref)))
    assert err_fused < 0.1, f"fused max abs error vs reference: {err_fused}"

    # Streamed/tiled path (large-graph path), forced so it is also exercised.
    out_tiled = cog_forward(params, x, adj, force_tiled=True)
    jax.block_until_ready(out_tiled)
    assert out_tiled.shape == (N, NCLASS)
    assert jnp.allclose(jnp.sum(jnp.exp(out_tiled), axis=1), 1.0, atol=1e-3)
    err_tiled = float(jnp.max(jnp.abs(out_tiled - ref)))
    assert err_tiled < 0.1, f"tiled max abs error vs reference: {err_tiled}"

    print("KERNEL_OK")
</pallas_src>

<mosaic_0001>
module attributes {stable_mosaic.version = 11 : i64} {
  func.func @_fused_kernel(%arg0: memref<300x32xf32, #tpu.memory_space<vmem>>, %arg1: memref<300x300xf32, #tpu.memory_space<vmem>>, %arg2: memref<32x128xf32, #tpu.memory_space<vmem>>, %arg3: memref<1x128xf32, #tpu.memory_space<vmem>>, %arg4: memref<128x128xf32, #tpu.memory_space<vmem>>, %arg5: memref<1x128xf32, #tpu.memory_space<vmem>>, %arg6: memref<128x128xf32, #tpu.memory_space<vmem>>, %arg7: memref<1x128xf32, #tpu.memory_space<vmem>>, %arg8: memref<300x128xf32, #tpu.memory_space<vmem>>) attributes {dimension_semantics = [], scalar_prefetch = 0 : i64, scratch_operands = 0 : i64, tpu.core_type = #tpu.core_type<tc>} {
    %c0 = arith.constant 0 : index
    %c0_0 = arith.constant 0 : index
    %0 = vector.load %arg1[%c0, %c0_0] : memref<300x300xf32, #tpu.memory_space<vmem>>, vector<300x300xf32>
    %1 = arith.truncf %0 : vector<300x300xf32> to vector<300x300xbf16>
    %cst = arith.constant 1.000000e+00 : bf16
    %2 = vector.broadcast %cst : bf16 to vector<300x1xbf16>
    %cst_1 = arith.constant dense<0.000000e+00> : vector<300x1xf32>
    %3 = tpu.matmul %1, %2, %cst_1 {dimension_numbers = #tpu.dot_dimension_numbers<[0], [0], [1], [1], [0, 1, 1, 1], [], []>} : vector<300x300xbf16>, vector<300x1xbf16>, vector<300x1xf32> -> vector<300x1xf32>
    %cst_2 = arith.constant 1.000000e+00 : f32
    %4 = vector.broadcast %cst_2 : f32 to vector<300x1xf32>
    %5 = arith.addf %3, %4 : vector<300x1xf32>
    %cst_3 = arith.constant 9.99999996E-13 : f32
    %6 = vector.broadcast %cst_3 : f32 to vector<300x1xf32>
    %7 = arith.maximumf %5, %6 : vector<300x1xf32>
    %8 = math.rsqrt %7 : vector<300x1xf32>
    %c0_4 = arith.constant 0 : index
    %c0_5 = arith.constant 0 : index
    %9 = vector.load %arg0[%c0_4, %c0_5] : memref<300x32xf32, #tpu.memory_space<vmem>>, vector<300x32xf32>
    %10 = vector.broadcast %8 : vector<300x1xf32> to vector<300x32xf32>
    %11 = arith.mulf %10, %9 : vector<300x32xf32>
    %c0_6 = arith.constant 0 : index
    %c0_7 = arith.constant 0 : index
    %12 = vector.load %arg2[%c0_6, %c0_7] : memref<32x128xf32, #tpu.memory_space<vmem>>, vector<32x128xf32>
    %cst_8 = arith.constant dense<0.000000e+00> : vector<300x128xf32>
    %13 = tpu.matmul %11, %12, %cst_8 {dimension_numbers = #tpu.dot_dimension_numbers<[1], [0], [0], [1], [0, 0, 1, 1], [], []>} : vector<300x32xf32>, vector<32x128xf32>, vector<300x128xf32> -> vector<300x128xf32>
    %14 = arith.truncf %13 : vector<300x128xf32> to vector<300x128xbf16>
    %cst_9 = arith.constant dense<0.000000e+00> : vector<300x128xf32>
    %15 = tpu.matmul %1, %14, %cst_9 {dimension_numbers = #tpu.dot_dimension_numbers<[0], [0], [1], [1], [0, 1, 1, 1], [], []>} : vector<300x300xbf16>, vector<300x128xbf16>, vector<300x128xf32> -> vector<300x128xf32>
    %16 = arith.addf %15, %13 : vector<300x128xf32>
    %17 = vector.broadcast %8 : vector<300x1xf32> to vector<300x128xf32>
    %18 = arith.mulf %17, %16 : vector<300x128xf32>
    %c0_10 = arith.constant 0 : index
    %c0_11 = arith.constant 0 : index
    %19 = vector.load %arg3[%c0_10, %c0_11] : memref<1x128xf32, #tpu.memory_space<vmem>>, vector<1x128xf32>
    %20 = vector.broadcast %19 : vector<1x128xf32> to vector<300x128xf32>
    %21 = arith.addf %18, %20 : vector<300x128xf32>
    %cst_12 = arith.constant 0.000000e+00 : f32
    %22 = vector.broadcast %cst_12 : f32 to vector<300x128xf32>
    %23 = arith.maximumf %21, %22 : vector<300x128xf32>
    %24 = vector.broadcast %8 : vector<300x1xf32> to vector<300x128xf32>
    %25 = arith.mulf %24, %23 : vector<300x128xf32>
    %c0_13 = arith.constant 0 : index
    %c0_14 = arith.constant 0 : index
    %26 = vector.load %arg4[%c0_13, %c0_14] : memref<128x128xf32, #tpu.memory_space<vmem>>, vector<128x128xf32>
    %cst_15 = arith.constant dense<0.000000e+00> : vector<300x128xf32>
    %27 = tpu.matmul %25, %26, %cst_15 {dimension_numbers = #tpu.dot_dimension_numbers<[1], [0], [0], [1], [0, 0, 1, 1], [], []>} : vector<300x128xf32>, vector<128x128xf32>, vector<300x128xf32> -> vector<300x128xf32>
    %28 = arith.truncf %27 : vector<300x128xf32> to vector<300x128xbf16>
    %cst_16 = arith.constant dense<0.000000e+00> : vector<300x128xf32>
    %29 = tpu.matmul %1, %28, %cst_16 {dimension_numbers = #tpu.dot_dimension_numbers<[0], [0], [1], [1], [0, 1, 1, 1], [], []>} : vector<300x300xbf16>, vector<300x128xbf16>, vector<300x128xf32> -> vector<300x128xf32>
    %30 = arith.addf %29, %27 : vector<300x128xf32>
    %31 = vector.broadcast %8 : vector<300x1xf32> to vector<300x128xf32>
    %32 = arith.mulf %31, %30 : vector<300x128xf32>
    %c0_17 = arith.constant 0 : index
    %c0_18 = arith.constant 0 : index
    %33 = vector.load %arg5[%c0_17, %c0_18] : memref<1x128xf32, #tpu.memory_space<vmem>>, vector<1x128xf32>
    %34 = vector.broadcast %33 : vector<1x128xf32> to vector<300x128xf32>
    %35 = arith.addf %32, %34 : vector<300x128xf32>
    %c0_19 = arith.constant 0 : index
    %c0_20 = arith.constant 0 : index
    %36 = vector.load %arg6[%c0_19, %c0_20] : memref<128x128xf32, #tpu.memory_space<vmem>>, vector<128x128xf32>
    %cst_21 = arith.constant dense<0.000000e+00> : vector<300x128xf32>
    %37 = tpu.matmul %35, %36, %cst_21 {dimension_numbers = #tpu.dot_dimension_numbers<[1], [0], [0], [1], [0, 0, 1, 1], [], []>} : vector<300x128xf32>, vector<128x128xf32>, vector<300x128xf32> -> vector<300x128xf32>
    %c0_22 = arith.constant 0 : index
    %c0_23 = arith.constant 0 : index
    %38 = vector.load %arg7[%c0_22, %c0_23] : memref<1x128xf32, #tpu.memory_space<vmem>>, vector<1x128xf32>
    %39 = vector.broadcast %38 : vector<1x128xf32> to vector<300x128xf32>
    %40 = arith.addf %37, %39 : vector<300x128xf32>
    %cst_24 = arith.constant 5.000000e+00 : f32
    %41 = vector.broadcast %cst_24 : f32 to vector<300x128xf32>
    %42 = arith.mulf %40, %41 : vector<300x128xf32>
    %43 = tpu.iota {dimensions = array<i32: 1>} : vector<300x128xi32>
    %c4_i32 = arith.constant 4 : i32
    %44 = vector.broadcast %c4_i32 : i32 to vector<300x128xi32>
    %45 = arith.cmpi slt, %43, %44 : vector<300x128xi32>
    %cst_25 = arith.constant -1.000000e+30 : f32
    %46 = vector.broadcast %cst_25 : f32 to vector<300x128xf32>
    %47 = arith.select %45, %42, %46 : vector<300x128xi1>, vector<300x128xf32>
    %cst_26 = arith.constant dense<0xFF800000> : vector<300xf32>
    %48 = vector.multi_reduction <maximumf>, %47, %cst_26 [1] : vector<300x128xf32> to vector<300xf32>
    %49 = vector.shape_cast %48 : vector<300xf32> to vector<300x1xf32>
    %50 = vector.broadcast %49 : vector<300x1xf32> to vector<300x128xf32>
    %51 = arith.subf %47, %50 : vector<300x128xf32>
    %52 = math.exp %51 : vector<300x128xf32>
    %cst_27 = arith.constant dense<0.000000e+00> : vector<300xf32>
    %53 = vector.multi_reduction <add>, %52, %cst_27 [1] : vector<300x128xf32> to vector<300xf32>
    %54 = vector.shape_cast %53 : vector<300xf32> to vector<300x1xf32>
    %55 = math.log %54 : vector<300x1xf32>
    %56 = vector.broadcast %55 : vector<300x1xf32> to vector<300x128xf32>
    %57 = arith.subf %51, %56 : vector<300x128xf32>
    %c0_28 = arith.constant 0 : index
    %c0_29 = arith.constant 0 : index
    %58 = vector.load %arg8[%c0_28, %c0_29] : memref<300x128xf32, #tpu.memory_space<vmem>>, vector<300x128xf32>
    tpu.vector_store %arg8[%c0_28, %c0_29], %57 {strides = array<i32>} : memref<300x128xf32, #tpu.memory_space<vmem>>, vector<300x128xf32>,
    return
  }
}

</mosaic_0001>

<bundles_post_ra>
// kernel: cog_forward.1
= control target key start
LH: loop header
LB: loop body
LE: loop exit
PB: predicated region body
PF: predicated region fallthrough
CT: control target
= control target key end

     0   :  { %13 = vsyncpa [#allocation3], 0  ;;  %s4682_s27 = smov [#allocation2]   ;;  %s6790_s0 = inlined_call_operand.vmem [shape: f32[300,32], index: 0, kind: input, shape index: {}]   ;;  %s6791_s1 = inlined_call_operand.hbm [shape: f32[300,300], index: 1, kind: input, shape index: {}]   ;;  %s6792_s2 = inlined_call_operand.vmem [shape: f32[32,128], index: 2, kind: input, shape index: {}]   ;;  %s6793_s3 = inlined_call_operand.vmem [shape: f32[1,128], index: 3, kind: input, shape index: {}]   ;;  %s6794_s4 = inlined_call_operand.vmem [shape: f32[128,128], index: 4, kind: input, shape index: {}]   ;;  %s6795_s5 = inlined_call_operand.vmem [shape: f32[1,128], index: 5, kind: input, shape index: {}]   ;;  %s6796_s6 = inlined_call_operand.vmem [shape: f32[128,128], index: 6, kind: input, shape index: {}]   ;;  %s6797_s7 = inlined_call_operand.vmem [shape: f32[1,128], index: 7, kind: input, shape index: {}]   ;;  %s6798_s8 = inlined_call_operand.vmem [shape: f32[300,128], index: 8, kind: output, shape index: {}]  }
   0x1   :  { %s21_s28 = sshll.u32 %s4682_s27, 4  ;;  %s22_s28 = int_to_ptr.vmem [resolvable:$true] %s21_s28 }
   0x2   :  { %s4668_s29 = scalar_lea.vmem %s22_s28, 14592  ;;  %p4673_p1 = scmp.lt.s32.totalorder %s22_s28, %s22_s28 }
   0x3   :  { %p4669_p0 = scmp.ne.s32.totalorder %s22_s28, %s4668_s29  ;;  %p4674_p2 = scmp.lt.s32.totalorder %s4668_s29, %s4668_s29 }
   0x5   :  { %p4675_p3 = por %p4674_p2, %p4673_p1 }
   0x7   :  { %p4676_p4 = pnand %p4675_p3, %p4669_p0 }
   0x9   :  { %4679 = shalt.err (!%p4676_p4)
}
   0xa   :  { %s4683_s30 = smov 384   ;;  %s4684_s9 = smov 24  }
   0xb   :  { %27 = dma.hbm_to_vmem [thread:$0]  %s6791_s1, 14592, %s22_s28, [#allocation3], %s4683_s30, %s4683_s30, %s4684_s9  }
   0xc   :  { %4680 = dma.done.wait [#allocation3], 14592  }
   0xd   :  { %4681 = vsyncadd [#allocation3], 4294952704  ;;  %v6799_v0 = vmov 0   ;;  %v6814_v1 = vmov 0.0   ;;  %vm418_vm0 = vcmask 1045504   ;;  %v93_v4 = vld [vmem:[#allocation2 + $0x180] sm:$0xff] }
   0xe   :  { %422 = vmatprep.subr.bf16.mxu0 %v6799_v0  ;;  %3902 = vmatprep.subr.bf16.mxu1 %v6814_v1  ;;  %v4687_v2 = vmov 1065369472   ;;  %v420_v3 = vsel %vm418_vm0, 1065369472, %v6799_v0  ;;  %v96_v5 = vld [vmem:[#allocation2 + $0x198] sm:$0xff]  ;;  %v45_v6 = vld [vmem:[#allocation2] sm:$0xff] }
   0xf   :  { %423 = vmatpush1.bf16.msra.mxu0 %v4687_v2  ;;  %3903 = vmatpush3.bf16.msra.mxu1 %v420_v3  ;;  %v183_v7 = vpack.c.bf16 %v96_v5, %v93_v4  ;;  %v48_v8 = vld [vmem:[#allocation2 + $0x18] sm:$0xff]  ;;  %v99_v9 = vld [vmem:[#allocation2 + $0x1b0] sm:$0xff]  ;;  %v102_v10 = vld [vmem:[#allocation2 + $0x1c8] sm:$0xff]  ;;  %vm4688_vm1 = vmmov 0   ;;  %vm360_vm2 = vcmask 359424   ;;  %vm1138_vm3 = vcmask 261120  }
  0x10   :  { %424 = vmatprep.subr.bf16.mxu0 %v6799_v0  ;;  %3904 = vmatprep.subr.bf16.mxu1 %v6814_v1  ;;  %v159_v11 = vpack.c.bf16 %v48_v8, %v45_v6  ;;  %v51_v12 = vld [vmem:[#allocation2 + $0x30] sm:$0xff]  ;;  %v54_v13 = vld [vmem:[#allocation2 + $0x48] sm:$0xff]  ;;  %v186_v14 = vpack.c.bf16 %v102_v10, %v99_v9  ;;  %v105_v16 = vld [vmem:[#allocation2 + $0x1e0] sm:$0xff]  ;;  %vm3236_vm5 = vcmask 1043456  }
  0x11   :  { %3908 = vmatprep.mubr.msk.bf16.mxu1 %vm4688_vm1, %v6814_v1  ;;  %264 = vxpose.xlu0.c.b16.start [1/8] %v183_v7, 128  ;;  %v162_v15 = vpack.c.bf16 %v54_v13, %v51_v12  ;;  %v108_v17 = vld [vmem:[#allocation2 + $0x1f8] sm:$0xff]  ;;  %v57_v18 = vld [vmem:[#allocation2 + $0x60] sm:$0xff]  ;;  %v111_v22 = vld [vmem:[#allocation2 + $0x210] sm:$0xff] }
  0x12   :  { %216 = vxpose.xlu1.c.b16.start [1/8] %v159_v11, 128  ;;  %v60_v19 = vld [vmem:[#allocation2 + $0x78] sm:$0xff]  ;;  %v189_v20 = vpack.c.bf16 %v108_v17, %v105_v16  ;;  %v114_v23 = vld [vmem:[#allocation2 + $0x228] sm:$0xff]  ;;  %v63_v24 = vld [vmem:[#allocation2 + $0x90] sm:$0xff] }
  0x13   :  { %425 = vmatpush1.bf16.msra.mxu0 %v4687_v2  ;;  %3905 = vmatpush3.bf16.msra.mxu1 %v4687_v2  ;;  %v165_v21 = vpack.c.bf16 %v60_v19, %v57_v18  ;;  %v66_v25 = vld [vmem:[#allocation2 + $0xa8] sm:$0xff]  ;;  %v192_v26 = vpack.c.bf16 %v114_v23, %v111_v22  ;;  %v117_v28 = vld [vmem:[#allocation2 + $0x240] sm:$0xff]  ;;  %v120_v29 = vld [vmem:[#allocation2 + $0x258] sm:$0xff] }
  0x14   :  { %426 = vmatprep.subr.bf16.mxu0 %v6799_v0  ;;  %3906 = vmatprep.subr.bf16.mxu1 %v6814_v1  ;;  %v168_v27 = vpack.c.bf16 %v66_v25, %v63_v24  ;;  %v69_v30 = vld [vmem:[#allocation2 + $0xc0] sm:$0xff]  ;;  %v72_v31 = vld [vmem:[#allocation2 + $0xd8] sm:$0xff]  ;;  %v195_v32 = vpack.c.bf16 %v120_v29, %v117_v28  ;;  %v123_v34 = vld [vmem:[#allocation2 + $0x270] sm:$0xff] }
  0x15   :  { %265 = vxpose.xlu0.c.b16.cont [2/8] %v186_v14, 128  ;;  %v171_v33 = vpack.c.bf16 %v72_v31, %v69_v30  ;;  %v126_v35 = vld [vmem:[#allocation2 + $0x288] sm:$0xff]  ;;  %v75_v36 = vld [vmem:[#allocation2 + $0xf0] sm:$0xff]  ;;  %v129_v40 = vld [vmem:[#allocation2 + $0x2a0] sm:$0xff] }
  0x16   :  { %217 = vxpose.xlu1.c.b16.cont [2/8] %v162_v15, 128  ;;  %v78_v37 = vld [vmem:[#allocation2 + $0x108] sm:$0xff]  ;;  %v198_v38 = vpack.c.bf16 %v126_v35, %v123_v34  ;;  %v132_v41 = vld [vmem:[#allocation2 + $0x2b8] sm:$0xff]  ;;  %v81_v42 = vld [vmem:[#allocation2 + $0x120] sm:$0xff] }
  0x17   :  { %427 = vmatpush1.bf16.msra.mxu0 %v4687_v2  ;;  %3907 = vmatpush3.bf16.msra.mxu1 %v4687_v2  ;;  %v174_v39 = vpack.c.bf16 %v78_v37, %v75_v36  ;;  %v84_v43 = vld [vmem:[#allocation2 + $0x138] sm:$0xff]  ;;  %v201_v44 = vpack.c.bf16 %v132_v41, %v129_v40  ;;  %v135_v46 = vld [vmem:[#allocation2 + $0x2d0] sm:$0xff]  ;;  %v138_v47 = vld [vmem:[#allocation2 + $0x2e8] sm:$0xff] }
  0x18   :  { %428 = vmatprep.subr.bf16.mxu0 %v6799_v0  ;;  %v177_v45 = vpack.c.bf16 %v84_v43, %v81_v42  ;;  %v87_v48 = vld [vmem:[#allocation2 + $0x150] sm:$0xff]  ;;  %v90_v49 = vld [vmem:[#allocation2 + $0x168] sm:$0xff]  ;;  %v204_v50 = vpack.c.bf16 %v138_v47, %v135_v46  ;;  %v141_v52 = vld [vmem:[#allocation2 + $0x300] sm:$0xff] }
  0x19   :  { %266 = vxpose.xlu0.c.b16.cont [3/8] %v189_v20, 128  ;;  %v180_v51 = vpack.c.bf16 %v90_v49, %v87_v48  ;;  %v144_v53 = vld [vmem:[#allocation2 + $0x318] sm:$0xff]  ;;  %v94_v54 = vld [vmem:[#allocation2 + $0x188] sm:$0xff]  ;;  %v97_v55 = vld [vmem:[#allocation2 + $0x1a0] sm:$0xff] }
  0x1a   :  { %218 = vxpose.xlu1.c.b16.cont [3/8] %v165_v21, 128  ;;  %v207_v56 = vpack.c.bf16 %v144_v53, %v141_v52  ;;  %v147_v57 = vld [vmem:[#allocation2 + $0x330] sm:$0xff]  ;;  %v150_v58 = vld [vmem:[#allocation2 + $0x348] sm:$0xff]  ;;  %v184_v59 = vpack.c.bf16 %v97_v55, %v94_v54  ;;  %v100_v60 = vld [vmem:[#allocation2 + $0x1b8] sm:$0xff] }
  0x1b   :  { %429 = vmatpush1.bf16.msra.mxu0 %v4687_v2  ;;  %v103_v61 = vld [vmem:[#allocation2 + $0x1d0] sm:$0xff]  ;;  %v210_v62 = vpack.c.bf16 %v150_v58, %v147_v57  ;;  %v153_v63 = vld [vmem:[#allocation2 + $0x360] sm:$0xff]  ;;  %v156_v3 = vld [vmem:[#allocation2 + $0x378] sm:$0xf] }
  0x1c   :  { %430 = vmatprep.subr.bf16.mxu0 %v6799_v0  ;;  %v187_v4 = vpack.c.bf16 %v103_v61, %v100_v60  ;;  %v106_v5 = vld [vmem:[#allocation2 + $0x1e8] sm:$0xff]  ;;  %v109_v6 = vld [vmem:[#allocation2 + $0x200] sm:$0xff]  ;;  %v213_v7 = vpack.c.bf16 %v156_v3, %v153_v63  ;;  %v112_v9 = vld [vmem:[#allocation2 + $0x218] sm:$0xff] }
  0x1d   :  { %267 = vxpose.xlu0.c.b16.cont [4/8] %v192_v26, 128  ;;  %v190_v8 = vpack.c.bf16 %v109_v6, %v106_v5  ;;  %v115_v10 = vld [vmem:[#allocation2 + $0x230] sm:$0xff]  ;;  %v118_v12 = vld [vmem:[#allocation2 + $0x248] sm:$0xff]  ;;  %v121_v13 = vld [vmem:[#allocation2 + $0x260] sm:$0xff] }
  0x1e   :  { %219 = vxpose.xlu1.c.b16.cont [4/8] %v168_v27, 128  ;;  %v193_v11 = vpack.c.bf16 %v115_v10, %v112_v9  ;;  %v196_v14 = vpack.c.bf16 %v121_v13, %v118_v12  ;;  %v124_v15 = vld [vmem:[#allocation2 + $0x278] sm:$0xff]  ;;  %v127_v16 = vld [vmem:[#allocation2 + $0x290] sm:$0xff]  ;;  %v130_v18 = vld [vmem:[#allocation2 + $0x2a8] sm:$0xff] }
  0x1f   :  { %431 = vmatpush1.bf16.msra.mxu0 %v4687_v2  ;;  %v199_v17 = vpack.c.bf16 %v127_v16, %v124_v15  ;;  %v133_v19 = vld [vmem:[#allocation2 + $0x2c0] sm:$0xff]  ;;  %v46_v20 = vld [vmem:[#allocation2 + $0x8] sm:$0xff]  ;;  %v136_v23 = vld [vmem:[#allocation2 + $0x2d8] sm:$0xff] }
  0x20   :  { %432 = vmatprep.subr.bf16.mxu0 %v6799_v0  ;;  %v202_v21 = vpack.c.bf16 %v133_v19, %v130_v18  ;;  %v49_v22 = vld [vmem:[#allocation2 + $0x20] sm:$0xff]  ;;  %v139_v24 = vld [vmem:[#allocation2 + $0x2f0] sm:$0xff]  ;;  %v52_v26 = vld [vmem:[#allocation2 + $0x38] sm:$0xff] }
  0x21   :  { %268 = vxpose.xlu0.c.b16.cont [5/8] %v195_v32, 128  ;;  %v160_v25 = vpack.c.bf16 %v49_v22, %v46_v20  ;;  %v205_v27 = vpack.c.bf16 %v139_v24, %v136_v23  ;;  %v55_v28 = vld [vmem:[#allocation2 + $0x50] sm:$0xff]  ;;  %v142_v29 = vld [vmem:[#allocation2 + $0x308] sm:$0xff]  ;;  %v145_v30 = vld [vmem:[#allocation2 + $0x320] sm:$0xff] }
  0x22   :  { %220 = vxpose.xlu1.c.b16.cont [5/8] %v171_v33, 128  ;;  %v163_v31 = vpack.c.bf16 %v55_v28, %v52_v26  ;;  %v58_v32 = vld [vmem:[#allocation2 + $0x68] sm:$0xff]  ;;  %v61_v33 = vld [vmem:[#allocation2 + $0x80] sm:$0xff]  ;;  %v148_v34 = vld [vmem:[#allocation2 + $0x338] sm:$0xff] }
  0x23   :  { %433 = vmatpush1.bf16.msra.mxu0 %v4687_v2  ;;  %v151_v35 = vld [vmem:[#allocation2 + $0x350] sm:$0xff]  ;;  %v166_v36 = vpack.c.bf16 %v61_v33, %v58_v32  ;;  %v64_v37 = vld [vmem:[#allocation2 + $0x98] sm:$0xff]  ;;  %v154_v40 = vld [vmem:[#allocation2 + $0x368] sm:$0xff] }
  0x24   :  { %434 = vmatprep.subr.bf16.mxu0 %v6799_v0  ;;  %v157_v41 = vld [vmem:[#allocation2 + $0x380] sm:$0xf]  ;;  %v76_v47 = vld [vmem:[#allocation2 + $0xf8] sm:$0xff]  ;;  %v79_v48 = vld [vmem:[#allocation2 + $0x110] sm:$0xff] }
  0x25   :  { %269 = vxpose.xlu0.c.b16.cont [6/8] %v198_v38, 128  ;;  %v211_v38 = vpack.c.bf16 %v151_v35, %v148_v34  ;;  %v214_v43 = vpack.c.bf16 %v157_v41, %v154_v40  ;;  %v175_v49 = vpack.c.bf16 %v79_v48, %v76_v47  ;;  %v88_v53 = vld [vmem:[#allocation2 + $0x158] sm:$0xff]  ;;  %v91_v54 = vld [vmem:[#allocation2 + $0x170] sm:$0xff]  ;;  %v50_v57 = vld [vmem:[#allocation2 + $0x28] sm:$0xff] }
  0x26   :  { %221 = vxpose.xlu1.c.b16.cont [6/8] %v174_v39, 128  ;;  %v67_v39 = vld [vmem:[#allocation2 + $0xb0] sm:$0xff]  ;;  %v181_v55 = vpack.c.bf16 %v91_v54, %v88_v53  ;;  %v56_v63 = vld [vmem:[#allocation2 + $0x58] sm:$0xff]  ;;  %v101_v3 = vld [vmem:[#allocation2 + $0x1c0] sm:$0xff] }
  0x27   :  { %435 = vmatpush1.bf16.msra.mxu0 %v4687_v2  ;;  %v169_v42 = vpack.c.bf16 %v67_v39, %v64_v37  ;;  %v95_v58 = vld [vmem:[#allocation2 + $0x190] sm:$0xff]  ;;  %v110_v10 = vld [vmem:[#allocation2 + $0x208] sm:$0xff]  ;;  %v68_v15 = vld [vmem:[#allocation2 + $0xb8] sm:$0xff] }
  0x28   :  { %436 = vmatprep.subr.bf16.mxu0 %v6799_v0  ;;  %v107_v9 = vld [vmem:[#allocation2 + $0x1f0] sm:$0xff]  ;;  %v116_v18 = vld [vmem:[#allocation2 + $0x238] sm:$0xff]  ;;  %v74_v23 = vld [vmem:[#allocation2 + $0xe8] sm:$0xff] }
  0x29   :  { %270 = vxpose.xlu0.c.b16.cont [7/8] %v201_v44, 128  ;;  %v70_v44 = vld [vmem:[#allocation2 + $0xc8] sm:$0xff]  ;;  %v191_v13 = vpack.c.bf16 %v110_v10, %v107_v9  ;;  %v71_v22 = vld [vmem:[#allocation2 + $0xd0] sm:$0xff]  ;;  %v128_v33 = vld [vmem:[#allocation2 + $0x298] sm:$0xff] }
  0x2a   :  { %222 = vxpose.xlu1.c.b16.cont [7/8] %v177_v45, 128  ;;  %v73_v45 = vld [vmem:[#allocation2 + $0xe0] sm:$0xff]  ;;  %v122_v26 = vld [vmem:[#allocation2 + $0x268] sm:$0xff]  ;;  %v83_v37 = vld [vmem:[#allocation2 + $0x130] sm:$0xff] }
  0x2b   :  { %437 = vmatpush1.bf16.msra.mxu0 %v4687_v2  ;;  %v172_v46 = vpack.c.bf16 %v73_v45, %v70_v44  ;;  %v131_v40 = vld [vmem:[#allocation2 + $0x2b0] sm:$0xff]  ;;  %v134_v41 = vld [vmem:[#allocation2 + $0x2c8] sm:$0xff]  ;;  %v89_v45 = vld [vmem:[#allocation2 + $0x160] sm:$0xff] }
  0x2c   :  { %438 = vmatprep.subr.bf16.mxu0 %v6799_v0  ;;  %v203_v44 = vpack.c.bf16 %v134_v41, %v131_v40  ;;  %v137_v48 = vld [vmem:[#allocation2 + $0x2e0] sm:$0xff]  ;;  %v143_v53 = vld [vmem:[#allocation2 + $0x310] sm:$0xff]  ;;  %v146_v54 = vld [vmem:[#allocation2 + $0x328] sm:$0xff] }
  0x2d   :  { %271 = vxpose.xlu0.c.b16.end [8/8] %v204_v50, 128  ;;  %v82_v50 = vld [vmem:[#allocation2 + $0x128] sm:$0xff] }
  0x2e   :  { %223 = vxpose.xlu1.c.b16.end [8/8] %v180_v51, 128  ;;  %v85_v51 = vld [vmem:[#allocation2 + $0x140] sm:$0xff] }
  0x2f   :  { %439 = vmatpush2.bf16.msra.mxu0 %v4687_v2  ;;  %v178_v52 = vpack.c.bf16 %v85_v51, %v82_v50 }
  0x30   :  { %440 = vmatprep.subr.bf16.mxu0 %v6799_v0 }
  0x31   :  { %312 = vxpose.xlu0.c.b16.start [1/3] (short) %v207_v56, 128  ;;  %v47_v56 = vld [vmem:[#allocation2 + $0x10] sm:$0xff] }
  0x32   :  { %280 = vxpose.xlu1.c.b16.start [1/8] %v184_v59, 128  ;;  %v98_v59 = vld [vmem:[#allocation2 + $0x1a8] sm:$0xff]  ;;  %v161_v60 = vpack.c.bf16 %v50_v57, %v47_v56  ;;  %v209_v56 = vpack.c.bf16 %v146_v54, %v143_v53 }
  0x33   :  { %441 = vmatpush2.bf16.msra.mxu0 %v4687_v2  ;;  %v185_v61 = vpack.c.bf16 %v98_v59, %v95_v58  ;;  %v149_v58 = vld [vmem:[#allocation2 + $0x340] sm:$0xff]  ;;  %v152_v59 = vld [vmem:[#allocation2 + $0x358] sm:$0xff] }
  0x34   :  { %442 = vmatprep.subr.bf16.mxu0 %v6799_v0 }
  0x35   :  { %313 = vxpose.xlu0.c.b16.cont [2/3] (short) %v210_v62, 128  ;;  %v53_v62 = vld [vmem:[#allocation2 + $0x40] sm:$0xff] }
  0x36   :  { %281 = vxpose.xlu1.c.b16.cont [2/8] %v187_v4, 128  ;;  %v104_v4 = vld [vmem:[#allocation2 + $0x1d8] sm:$0xff]  ;;  %v164_v5 = vpack.c.bf16 %v56_v63, %v53_v62  ;;  %v155_v63 = vld [vmem:[#allocation2 + $0x370] sm:$0xff] }
  0x37   :  { %443 = vmatpush2.bf16.msra.mxu0 %v4687_v2  ;;  %v188_v6 = vpack.c.bf16 %v104_v4, %v101_v3  ;;  %v158_v3 = vld [vmem:[#allocation2 + $0x388] sm:$0xf] }
  0x38   :  { %444 = vmatprep.subr.bf16.mxu0 %v6799_v0 }
  0x39   :  { %314 = vxpose.xlu0.c.b16.end [3/3] (short) %v213_v7, 128  ;;  %v59_v7 = vld [vmem:[#allocation2 + $0x70] sm:$0xff] }
  0x3a   :  { %282 = vxpose.xlu1.c.b16.cont [3/8] %v190_v8, 128  ;;  %v62_v8 = vld [vmem:[#allocation2 + $0x88] sm:$0xff] }
  0x3b   :  { %445 = vmatpush2.bf16.msra.mxu0 %v4687_v2 }
  0x3c   :  { %446 = vmatprep.subr.bf16.mxu0 %v6799_v0 }
  0x3e   :  { %283 = vxpose.xlu1.c.b16.cont [4/8] %v193_v11, 128  ;;  %v167_v11 = vpack.c.bf16 %v62_v8, %v59_v7 }
  0x3f   :  { %447 = vmatpush2.bf16.msra.mxu0 %v4687_v2 }
  0x40   :  { %448 = vmatprep.subr.bf16.mxu0 %v6799_v0 }
  0x42   :  { %284 = vxpose.xlu1.c.b16.cont [5/8] %v196_v14, 128  ;;  %v65_v14 = vld [vmem:[#allocation2 + $0xa0] sm:$0xff] }
  0x43   :  { %449 = vmatpush2.bf16.msra.mxu0 %v4687_v2  ;;  %v170_v19 = vpack.c.bf16 %v68_v15, %v65_v14 }
  0x44   :  { %450 = vmatprep.subr.bf16.mxu0 %v6799_v0 }
  0x46   :  { %285 = vxpose.xlu1.c.b16.cont [6/8] %v199_v17, 128  ;;  %v113_v17 = vld [vmem:[#allocation2 + $0x220] sm:$0xff] }
  0x47   :  { %451 = vmatpush2.bf16.msra.mxu0 %v4687_v2 }
  0x48   :  { %452 = vmatprep.subr.bf16.mxu0 %v6799_v0 }
  0x4a   :  { %286 = vxpose.xlu1.c.b16.cont [7/8] %v202_v21, 128  ;;  %v194_v21 = vpack.c.bf16 %v116_v18, %v113_v17 }
  0x4b   :  { %453 = vmatpush2.bf16.msra.mxu0 %v4687_v2  ;;  %v208_v2 = vpack.c.bf16 %v145_v30, %v142_v29  ;;  %v77_v30 = vld [vmem:[#allocation2 + $0x100] sm:$0xff] }
  0x4c   :  { %1530 = vmatprep.subr.bf16.mxu0 %v6799_v0 }
  0x4e   :  { %232 = vxpose.xlu0.c.b16.start [1/8] %v160_v25, 128  ;;  %287 = vxpose.xlu1.c.b16.end [8/8] %v205_v27, 128  ;;  %v119_v25 = vld [vmem:[#allocation2 + $0x250] sm:$0xff]  ;;  %v173_v27 = vpack.c.bf16 %v74_v23, %v71_v22 }
  0x4f   :  { %v197_v29 = vpack.c.bf16 %v122_v26, %v119_v25 }
  0x52   :  { %233 = vxpose.xlu0.c.b16.cont [2/8] %v163_v31, 128  ;;  %328 = vxpose.xlu1.c.b16.start [1/3] (short) %v208_v2, 128  ;;  %v80_v31 = vld [vmem:[#allocation2 + $0x118] sm:$0xff]  ;;  %v125_v2 = vld [vmem:[#allocation2 + $0x280] sm:$0xff] }
  0x53   :  { %v176_v34 = vpack.c.bf16 %v80_v31, %v77_v30 }
  0x56   :  { %234 = vxpose.xlu0.c.b16.cont [3/8] %v166_v36, 128  ;;  %329 = vxpose.xlu1.c.b16.cont [2/3] (short) %v211_v38, 128  ;;  %v200_v36 = vpack.c.bf16 %v128_v33, %v125_v2  ;;  %v86_v38 = vld [vmem:[#allocation2 + $0x148] sm:$0xff] }
  0x5a   :  { %235 = vxpose.xlu0.c.b16.cont [4/8] %v169_v42, 128  ;;  %330 = vxpose.xlu1.c.b16.end [3/3] (short) %v214_v43, 128  ;;  %v179_v42 = vpack.c.bf16 %v86_v38, %v83_v37 }
  0x5e   :  { %236 = vxpose.xlu0.c.b16.cont [5/8] %v172_v46, 128  ;;  %v92_v46 = vld [vmem:[#allocation2 + $0x178] sm:$0xff] }
  0x5f   :  { %v182_v50 = vpack.c.bf16 %v92_v46, %v89_v45 }
  0x62   :  { %237 = vxpose.xlu0.c.b16.cont [6/8] %v175_v49, 128  ;;  %v140_v49 = vld [vmem:[#allocation2 + $0x2f8] sm:$0xff] }
  0x66   :  { %238 = vxpose.xlu0.c.b16.cont [7/8] %v178_v52, 128  ;;  %v206_v52 = vpack.c.bf16 %v140_v49, %v137_v48 }
  0x6a   :  { %239 = vxpose.xlu0.c.b16.end [8/8] %v181_v55, 128 }
  0x6e   :  { %248 = vxpose.xlu0.c.b16.start [1/8] (narrow) %v161_v60, 48 }
  0x6f   :  { %296 = vxpose.xlu1.c.b16.start [1/8] (narrow) %v185_v61, 48  ;;  %v212_v61 = vpack.c.bf16 %v152_v59, %v149_v58 }
  0x72   :  { %249 = vxpose.xlu0.c.b16.cont [2/8] (narrow) %v164_v5, 48  ;;  %v215_v5 = vpack.c.bf16 %v158_v3, %v155_v63 }
  0x73   :  { %v4779_v12 = vpop.trf.xlu0  ;;  %297 = vxpose.xlu1.c.b16.cont [2/8] (narrow) %v188_v6, 48 }
  0x74   :  { %6991 = vst [vmem:[#allocation5_spill] sm:$0xff] %v4779_v12  ;;  %454 = vmatprep.mubr.bf16.mxu0 %v4779_v12  ;;  %v4782_v16 = vpop.trf.xlu1 }
  0x75   :  { %455 = vmatmul.mubr.bf16.vlgmr.msra.gmra.mxu0 %v4782_v16 }
  0x76   :  { %250 = vxpose.xlu0.c.b16.cont [3/8] (narrow) %v167_v11, 48 }
  0x77   :  { %v4785_v20 = vpop.trf.xlu0  ;;  %298 = vxpose.xlu1.c.b16.cont [3/8] (narrow) %v191_v13, 48 }
  0x78   :  { %462 = vmatprep.mubr.bf16.mxu0 %v4785_v20  ;;  %v4788_v24 = vpop.trf.xlu1 }
  0x7a   :  { %251 = vxpose.xlu0.c.b16.cont [4/8] (narrow) %v170_v19, 48 }
  0x7b   :  { %v4790_v28 = vpop.trf.xlu0  ;;  %299 = vxpose.xlu1.c.b16.cont [4/8] (narrow) %v194_v21, 48 }
  0x7c   :  { %v4792_v32 = vpop.trf.xlu1 }
  0x7d   :  { %463 = vmatmul.mubr.bf16.gmra.mxu0 %v4788_v24 }
  0x7e   :  { %470 = vmatprep.mubr.bf16.mxu0 %v4790_v28  ;;  %252 = vxpose.xlu0.c.b16.cont [5/8] (narrow) %v173_v27, 48 }
  0x7f   :  { %v4796_v35 = vpop.trf.xlu0  ;;  %300 = vxpose.xlu1.c.b16.cont [5/8] (narrow) %v197_v29, 48 }
  0x80   :  { %v4798_v39 = vpop.trf.xlu1 }
  0x82   :  { %253 = vxpose.xlu0.c.b16.cont [6/8] (narrow) %v176_v34, 48 }
  0x83   :  { %v4800_v43 = vpop.trf.xlu0  ;;  %301 = vxpose.xlu1.c.b16.cont [6/8] (narrow) %v200_v36, 48 }
  0x84   :  { %v4802_v47 = vpop.trf.xlu1 }
  0x85   :  { %471 = vmatmul.mubr.bf16.gmra.mxu0 %v4792_v32 }
  0x86   :  { %478 = vmatprep.mubr.bf16.mxu0 %v4796_v35  ;;  %254 = vxpose.xlu0.c.b16.cont [7/8] (narrow) %v179_v42, 48 }
  0x87   :  { %v4806_v51 = vpop.trf.xlu0  ;;  %302 = vxpose.xlu1.c.b16.cont [7/8] (narrow) %v203_v44, 48 }
  0x88   :  { %v4808_v55 = vpop.trf.xlu1 }
  0x8a   :  { %255 = vxpose.xlu0.c.b16.end [8/8] (narrow) %v182_v50, 48 }
  0x8b   :  { %v4810_v57 = vpop.trf.xlu0  ;;  %303 = vxpose.xlu1.c.b16.end [8/8] (narrow) %v206_v52, 48 }
  0x8c   :  { %v4812_v60 = vpop.trf.xlu1 }
  0x8d   :  { %479 = vmatmul.mubr.bf16.gmra.mxu0 %v4798_v39 }
  0x8e   :  { %486 = vmatprep.mubr.bf16.mxu0 %v4800_v43  ;;  %344 = vxpose.xlu0.c.b16.start [1/3] (short) (narrow) %v209_v56, 48 }
  0x8f   :  { %v4816_v62 = vpop.trf.xlu0  ;;  %4430 = vset.pattern.permute.xlu1 %v6799_v0 }
  0x90   :  { %v4819_v4 = vpop.trf.xlu1 }
  0x92   :  { %345 = vxpose.xlu0.c.b16.cont [2/3] (short) (narrow) %v212_v61, 48 }
  0x93   :  { %v4821_v6 = vpop.trf.xlu0 }
  0x94   :  { %3909 = vmatmul.mubr.msk.bf16.vlgmr.msra.gmra.mxu1 %vm360_vm2, %v4821_v6  ;;  %v4825_v7 = vpop.trf.xlu1 }
  0x95   :  { %487 = vmatmul.mubr.bf16.gmra.mxu0 %v4802_v47  ;;  %3912 = vmatprep.mubr.msk.bf16.mxu1 %vm4688_vm1, %v6814_v1 }
  0x96   :  { %494 = vmatprep.mubr.bf16.mxu0 %v4806_v51  ;;  %346 = vxpose.xlu0.c.b16.end [3/3] (short) (narrow) %v215_v5, 48 }
  0x97   :  { %v4831_v8 = vpop.trf.xlu0 }
  0x98   :  { %v4833_v9 = vpop.trf.xlu1 }
  0x99   :  { %6992 = vst [vmem:[#allocation6_spill] sm:$0xff] %v4833_v9 }
  0x9b   :  { %v4835_v10 = vpop.trf.xlu0 }
  0x9c   :  { %3913 = vmatmul.mubr.msk.bf16.gmra.mxu1 %vm360_vm2, %v4831_v8  ;;  %v4839_v11 = vpop.trf.xlu1 }
  0x9d   :  { %6993 = vst [vmem:[#allocation7_spill] sm:$0xff] %v4839_v11  ;;  %495 = vmatmul.mubr.bf16.gmra.mxu0 %v4808_v55  ;;  %3916 = vmatprep.mubr.msk.bf16.mxu1 %vm4688_vm1, %v6814_v1 }
  0x9e   :  { %502 = vmatprep.mubr.bf16.mxu0 %v4810_v57 }
  0x9f   :  { %v4845_v13 = vpop.trf.xlu0  ;;  %4431 = vset.pattern.permute.xlu0 %v6799_v0 }
  0xa0   :  { %v4848_v14 = vpop.trf.xlu1 }
  0xa1   :  { %6994 = vst [vmem:[#allocation8_spill] sm:$0xff] %v4848_v14 }
  0xa3   :  { %v4850_v15 = vpop.trf.xlu0 }
  0xa4   :  { %3917 = vmatmul.mubr.msk.bf16.gmra.mxu1 %vm360_vm2, %v4835_v10  ;;  %v4854_v17 = vpop.trf.xlu1 }
  0xa5   :  { %6995 = vst [vmem:[#allocation9_spill] sm:$0xff] %v4854_v17  ;;  %503 = vmatmul.mubr.bf16.gmra.mxu0 %v4812_v60  ;;  %3920 = vmatprep.mubr.msk.bf16.mxu1 %vm4688_vm1, %v6814_v1 }
  0xa6   :  { %510 = vmatprep.mubr.bf16.mxu0 %v4816_v62 }
  0xa7   :  { %v4860_v18 = vpop.trf.xlu0 }
  0xa8   :  { %v4862_v19 = vpop.trf.xlu1 }
  0xa9   :  { %6996 = vst [vmem:[#allocation10_spill] sm:$0xff] %v4862_v19 }
  0xab   :  { %v4864_v21 = vpop.trf.xlu0 }
  0xac   :  { %3921 = vmatmul.mubr.msk.bf16.gmra.mxu1 %vm360_vm2, %v4845_v13  ;;  %v4874_v23 = vpop.trf.xlu1 }
  0xad   :  { %511 = vmatmul.mubr.bf16.gmra.mxu0 %v4819_v4  ;;  %3924 = vmatprep.mubr.msk.bf16.mxu1 %vm4688_vm1, %v6814_v1  ;;  %6998 = vst [vmem:[#allocation12_spill] sm:$0xff] %v4874_v23 }
  0xae   :  { %518 = vmatprep.mubr.bf16.mxu0 %v4825_v7 }
  0xaf   :  { %v4872_v22 = vpop.trf.xlu0 }
  0xb0   :  { %6997 = vst [vmem:[#allocation11_spill] sm:$0xff] %v4872_v22  ;;  %v4883_v26 = vpop.trf.xlu1 }
  0xb1   :  { %7000 = vst [vmem:[#allocation14_spill] sm:$0xff] %v4883_v26 }
  0xb3   :  { %v4876_v25 = vpop.trf.xlu0 }
  0xb4   :  { %6999 = vst [vmem:[#allocation13_spill] sm:$0xff] %v4876_v25  ;;  %3925 = vmatmul.mubr.msk.bf16.gmra.mxu1 %vm360_vm2, %v4850_v15  ;;  %v4888_v29 = vpop.trf.xlu1 }
  0xb5   :  { %519 = vmatmul.mubr.bf16.gmra.mxu0 %v4876_v25  ;;  %3928 = vmatprep.mubr.msk.bf16.mxu1 %vm4688_vm1, %v6814_v1  ;;  %7002 = vst [vmem:[#allocation16_spill] sm:$0xff] %v4888_v29 }
  0xb6   :  { %526 = vmatprep.mubr.bf16.mxu0 %v4833_v9 }
  0xb7   :  { %v4886_v27 = vpop.trf.xlu0 }
  0xb8   :  { %7001 = vst [vmem:[#allocation15_spill] sm:$0xff] %v4886_v27  ;;  %v4896_v30 = vpop.trf.xlu1 }
  0xb9   :  { %7003 = vst [vmem:[#allocation17_spill] sm:$0xff] %v4896_v30 }
  0xbb   :  { %v4898_v31 = vpop.trf.xlu0 }
  0xbc   :  { %3929 = vmatmul.mubr.msk.bf16.gmra.mxu1 %vm360_vm2, %v4860_v18  ;;  %7004 = vst [vmem:[#allocation18_spill] sm:$0xff] %v4898_v31  ;;  %v4906_v2 = vpop.trf.xlu1 }
  0xbd   :  { %527 = vmatmul.mubr.bf16.gmra.mxu0 %v4886_v27  ;;  %3932 = vmatprep.mubr.msk.bf16.mxu1 %vm4688_vm1, %v6814_v1  ;;  %7005 = vst [vmem:[#allocation19_spill] sm:$0xff] %v4906_v2 }
  0xbe   :  { %534 = vmatprep.mubr.bf16.mxu0 %v4839_v11 }
  0xbf   :  { %v4908_v33 = vpop.trf.xlu0 }
  0xc0   :  { %7006 = vst [vmem:[#allocation20_spill] sm:$0xff] %v4908_v33  ;;  %v4915_v34 = vpop.trf.xlu1 }
  0xc1   :  { %7007 = vst [vmem:[#allocation21_spill] sm:$0xff] %v4915_v34 }
  0xc3   :  { %v4918_v36 = vpop.trf.xlu0 }
  0xc4   :  { %3933 = vmatmul.mubr.msk.bf16.gmra.mxu1 %vm360_vm2, %v4864_v21  ;;  %7008 = vst [vmem:[#allocation22_spill] sm:$0xff] %v4918_v36  ;;  %v4920_v37 = vpop.trf.xlu1 }
  0xc5   :  { %535 = vmatmul.mubr.bf16.gmra.mxu0 %v4898_v31  ;;  %3936 = vmatprep.mubr.msk.bf16.mxu1 %vm4688_vm1, %v6814_v1  ;;  %7009 = vst [vmem:[#allocation23_spill] sm:$0xff] %v4920_v37 }
  0xc6   :  { %542 = vmatprep.mubr.bf16.mxu0 %v4848_v14 }
  0xc7   :  { %v4930_v40 = vpop.trf.xlu0 }
  0xc8   :  { %v4928_v38 = vpop.trf.xlu1  ;;  %7011 = vst [vmem:[#allocation25_spill] sm:$0xff] %v4930_v40 }
  0xc9   :  { %7010 = vst [vmem:[#allocation24_spill] sm:$0xff] %v4928_v38 }
  0xcb   :  { %v4940_v42 = vpop.trf.xlu0 }
  0xcc   :  { %3937 = vmatmul.mubr.msk.bf16.gmra.mxu1 %vm360_vm2, %v4872_v22  ;;  %v4938_v41 = vpop.trf.xlu1  ;;  %7013 = vst [vmem:[#allocation27_spill] sm:$0xff] %v4940_v42 }
  0xcd   :  { %543 = vmatmul.mubr.bf16.gmra.mxu0 %v4908_v33  ;;  %3940 = vmatprep.mubr.msk.bf16.mxu1 %vm4688_vm1, %v6814_v1  ;;  %7012 = vst [vmem:[#allocation26_spill] sm:$0xff] %v4938_v41 }
  0xce   :  { %550 = vmatprep.mubr.bf16.mxu0 %v4854_v17 }
  0xcf   :  { %v4950_v45 = vpop.trf.xlu0 }
  0xd0   :  { %v4947_v44 = vpop.trf.xlu1  ;;  %7015 = vst [vmem:[#allocation29_spill] sm:$0xff] %v4950_v45 }
  0xd1   :  { %7014 = vst [vmem:[#allocation28_spill] sm:$0xff] %v4947_v44 }
  0xd3   :  { %v4960_v48 = vpop.trf.xlu0 }
  0xd4   :  { %3941 = vmatmul.mubr.msk.bf16.gmra.mxu1 %vm360_vm2, %v4888_v29  ;;  %v4952_v46 = vpop.trf.xlu1  ;;  %7017 = vst [vmem:[#allocation31_spill] sm:$0xff] %v4960_v48 }
  0xd5   :  { %551 = vmatmul.mubr.bf16.gmra.mxu0 %v4918_v36  ;;  %3944 = vmatprep.mubr.msk.bf16.mxu1 %vm4688_vm1, %v6814_v1  ;;  %7016 = vst [vmem:[#allocation30_spill] sm:$0xff] %v4952_v46 }
  0xd6   :  { %558 = vmatprep.mubr.bf16.mxu0 %v4862_v19 }
  0xd7   :  { %v4970_v50 = vpop.trf.xlu0 }
  0xd8   :  { %v4962_v49 = vpop.trf.xlu1  ;;  %7019 = vst [vmem:[#allocation33_spill] sm:$0xff] %v4970_v50 }
  0xd9   :  { %7018 = vst [vmem:[#allocation32_spill] sm:$0xff] %v4962_v49 }
  0xdb   :  { %v4980_v53 = vpop.trf.xlu0 }
  0xdc   :  { %3945 = vmatmul.mubr.msk.bf16.gmra.mxu1 %vm360_vm2, %v4896_v30  ;;  %v4972_v52 = vpop.trf.xlu1  ;;  %7021 = vst [vmem:[#allocation35_spill] sm:$0xff] %v4980_v53 }
  0xdd   :  { %559 = vmatmul.mubr.bf16.gmra.mxu0 %v4930_v40  ;;  %3948 = vmatprep.mubr.msk.bf16.mxu1 %vm4688_vm1, %v6814_v1  ;;  %7020 = vst [vmem:[#allocation34_spill] sm:$0xff] %v4972_v52 }
  0xde   :  { %566 = vmatprep.mubr.bf16.mxu0 %v4874_v23 }
  0xe4   :  { %3949 = vmatmul.mubr.msk.bf16.gmra.mxu1 %vm360_vm2, %v4906_v2 }
  0xe5   :  { %567 = vmatmul.mubr.bf16.gmra.mxu0 %v4940_v42  ;;  %3952 = vmatprep.mubr.msk.bf16.mxu1 %vm4688_vm1, %v6814_v1 }
  0xe6   :  { %574 = vmatprep.mubr.bf16.mxu0 %v4883_v26 }
  0xec   :  { %3953 = vmatmul.mubr.msk.bf16.gmra.mxu1 %vm360_vm2, %v4915_v34 }
  0xed   :  { %575 = vmatmul.mubr.bf16.gmra.mxu0 %v4950_v45  ;;  %3956 = vmatprep.mubr.msk.bf16.mxu1 %vm4688_vm1, %v6814_v1 }
  0xee   :  { %582 = vmatprep.mubr.bf16.mxu0 %v4952_v46 }
  0xf0   :  { %v4992_v54 = vpop.trf.xlu0 }
  0xf1   :  { %7022 = vst [vmem:[#allocation36_spill] sm:$0xff] %v4992_v54 }
  0xf4   :  { %3957 = vmatmul.mubr.msk.bf16.gmra.mxu1 %vm360_vm2, %v4920_v37  ;;  %v4998_v56 = vpop.trf.xlu0 }
  0xf5   :  { %583 = vmatmul.mubr.bf16.gmra.mxu0 %v4960_v48  ;;  %3960 = vmatprep.mubr.msk.bf16.mxu1 %vm4688_vm1, %v6814_v1  ;;  %7023 = vst [vmem:[#allocation37_spill] sm:$0xff] %v4998_v56 }
  0xf6   :  { %590 = vmatprep.mubr.bf16.mxu0 %v4962_v49 }
  0xf8   :  { %v5004_v58 = vpop.trf.xlu0 }
  0xf9   :  { %7024 = vst [vmem:[#allocation38_spill] sm:$0xff] %v5004_v58 }
  0xfc   :  { %3961 = vmatmul.mubr.msk.bf16.gmra.mxu1 %vm360_vm2, %v4928_v38 }
  0xfd   :  { %591 = vmatmul.mubr.bf16.gmra.mxu0 %v4970_v50  ;;  %3964 = vmatprep.mubr.msk.bf16.mxu1 %vm4688_vm1, %v6814_v1 }
  0xfe   :  { %598 = vmatprep.mubr.bf16.mxu0 %v4972_v52 }
 0x104   :  { %3965 = vmatmul.mubr.msk.bf16.gmra.mxu1 %vm360_vm2, %v4938_v41 }
 0x105   :  { %599 = vmatmul.mubr.bf16.gmra.mxu0 %v4980_v53  ;;  %3968 = vmatprep.mubr.msk.bf16.mxu1 %vm4688_vm1, %v6814_v1 }
 0x106   :  { %1562 = vmatprep.mubr.bf16.mxu0 %v4779_v12 }
 0x10c   :  { %3969 = vmatmul.mubr.msk.bf16.gmra.mxu1 %vm360_vm2, %v4947_v44 }
 0x10d   :  { %3972 = vmatprep.mubr.msk.bf16.mxu1 %vm4688_vm1, %v6814_v1 }
 0x114   :  { %3973 = vmatmul.mubr.msk.bf16.gmra.mxu1 %vm360_vm2, %v4992_v54 }
 0x115   :  { %3976 = vmatprep.mubr.msk.bf16.mxu1 %vm4688_vm1, %v6814_v1 }
 0x11c   :  { %3977 = vmatmul.mubr.msk.bf16.gmra.mxu1 %vm360_vm2, %v4998_v56 }
 0x11d   :  { %3980 = vmatprep.mubr.msk.bf16.mxu1 %vm4688_vm1, %v6814_v1 }
 0x124   :  { %3981 = vmatmul.mubr.msk.bf16.gmra.mxu1 %vm360_vm2, %v5004_v58 }
 0x135   :  { %v456_v59 = vpop.f32.mrf.mxu0 }
 0x136   :  { %v457_v48 = vadd.f32 1.0, %v456_v59 }
 0x137   :  { %v458_v61 = vpop.f32.mrf.mxu0 }
 0x139   :  { %v459_v63 = vpop.f32.mrf.mxu0 }
 0x13b   :  { %v461_v3 = vpop.f32.mrf.mxu0 }
 0x13d   :  { %v464_v5 = vpop.f32.mrf.mxu0 }
 0x13e   :  { %v465_v26 = vadd.f32 1.0, %v464_v5  ;;  %v1136_v5 = vld [vmem:[%s6792_s2 + $0x10] sm:$0xff] }
 0x13f   :  { %v466_v0 = vpop.f32.mrf.mxu0 }
 0x140   :  { %v1137_v0 = vld [vmem:[%s6792_s2 + $0x18] sm:$0xff] }
 0x141   :  { %v467_v12 = vpop.f32.mrf.mxu0  ;;  %3984 = vmatprep.subr.mxu1 %v1137_v0 }
 0x142   :  { %3985 = vmatpush3.msra.mxu1 %v1137_v0  ;;  %v468_v40 = vadd.f32 1.0, %v467_v12  ;;  %v1135_v12 = vld [vmem:[%s6792_s2 + $0x8] sm:$0xff] }
 0x143   :  { %v469_v53 = vpop.f32.mrf.mxu0  ;;  %3986 = vmatprep.subr.mxu1 %v1136_v5 }
 0x144   :  { %3987 = vmatpush3.msra.mxu1 %v1136_v5 }
 0x145   :  { %v472_v52 = vpop.f32.mrf.mxu0  ;;  %3988 = vmatprep.subr.mxu1 %v1135_v12 }
 0x146   :  { %3989 = vmatpush3.msra.mxu1 %v1135_v12 }
 0x147   :  { %v474_v50 = vpop.f32.mrf.mxu0 }
 0x148   :  { %v460_v50 = vadd.f32 1.0, %v459_v63 }
 0x149   :  { %v475_v54 = vpop.f32.mrf.mxu0 }
 0x14b   :  { %v477_v56 = vpop.f32.mrf.mxu0 }
 0x14d   :  { %v5008_v49 = vpop.f32.mrf.mxu0 }
 0x14f   :  { %v482_v1 = vpop.f32.mrf.mxu0 }
 0x151   :  { %v5010_v44 = vpop.f32.mrf.mxu0 }
 0x153   :  { %v485_v46 = vpop.f32.mrf.mxu0 }
 0x154   :  { %v641_v58 = vpop.f32.mrf.mxu1 }
 0x155   :  { %v642_v45 = vadd.f32 %v641_v58, %v457_v48  ;;  %v5012_v61 = vpop.f32.mrf.mxu0 }
 0x156   :  { %v3910_v53 = vpop.f32.mrf.mxu1 }
 0x157   :  { %v792_v3 = vmax.f32 %v642_v45, 1e-12  ;;  %v490_v56 = vpop.f32.mrf.mxu0 }
 0x158   :  { %v644_v41 = vpop.f32.mrf.mxu1 }
 0x159   :  { %4432 = vrsqrt.f32 %v792_v3  ;;  %v645_v1 = vadd.f32 %v644_v41, %v460_v50  ;;  %v5017_v59 = vpop.f32.mrf.mxu0  ;;  %v473_v50 = vadd.f32 1.0, %v472_v52  ;;  %v1134_v52 = vld [vmem:[%s6792_s2] sm:$0xff] }
 0x15a   :  { %v3911_v46 = vpop.f32.mrf.mxu1  ;;  %3990 = vmatprep.subr.mxu1 %v1134_v52 }
 0x15b   :  { %v793_v48 = vmax.f32 %v645_v1, 1e-12  ;;  %v493_v58 = vpop.f32.mrf.mxu0  ;;  %3991 = vmatpush3.msra.mxu1 %v1134_v52  ;;  %v484_v52 = vadd.f32 1.0, %v5010_v44 }
 0x15c   :  { %v649_v42 = vpop.f32.mrf.mxu1  ;;  %v476_v58 = vadd.f32 1.0, %v475_v54 }
 0x15d   :  { %4434 = vrsqrt.f32 %v793_v48  ;;  %v650_v38 = vadd.f32 %v649_v42, %v465_v26  ;;  %v5019_v23 = vpop.f32.mrf.mxu0 }
 0x15e   :  { %v3914_v53 = vpop.f32.mrf.mxu1 }
 0x15f   :  { %v794_v63 = vmax.f32 %v650_v38, 1e-12  ;;  %v498_v45 = vpop.f32.mrf.mxu0 }
 0x160   :  { %v652_v56 = vpop.f32.mrf.mxu1 }
 0x161   :  { %4436 = vrsqrt.f32 %v794_v63  ;;  %v653_v0 = vadd.f32 %v652_v56, %v468_v40  ;;  %v5021_v3 = vpop.f32.mrf.mxu0 }
 0x162   :  { %v3915_v41 = vpop.f32.mrf.mxu1 }
 0x163   :  { %v795_v1 = vmax.f32 %v653_v0, 1e-12  ;;  %v501_v46 = vpop.f32.mrf.mxu0  ;;  %v7025_v41 = vmov 0.0  }
 0x164   :  { %v657_v26 = vpop.f32.mrf.mxu1  ;;  %4049 = vmatprep.subr.bf16.mxu1 %v7025_v41 }
 0x165   :  { %4438 = vrsqrt.f32 %v795_v1  ;;  %v658_v38 = vadd.f32 %v657_v26, %v473_v50  ;;  %v5029_v40 = vpop.f32.mrf.mxu0  ;;  %v481_v1 = vadd.f32 1.0, %v5008_v49 }
 0x166   :  { %v4433_v42 = vpop.eup %4432  ;;  %v3918_v48 = vpop.f32.mrf.mxu1 }
 0x167   :  { %v796_v53 = vmax.f32 %v658_v38, 1e-12  ;;  %908 = vperm.xlu1 %4430, %v4433_v42   ;;  %v506_v63 = vpop.f32.mrf.mxu0 }
 0x168   :  { %v660_v45 = vpop.f32.mrf.mxu1 }
 0x169   :  { %4440 = vrsqrt.f32 %v796_v53  ;;  %v661_v56 = vadd.f32 %v660_v45, %v476_v58  ;;  %v5034_v0 = vpop.f32.mrf.mxu0 }
 0x16a   :  { %v4435_v5 = vpop.eup %4434  ;;  %v3919_v50 = vpop.f32.mrf.mxu1 }
 0x16b   :  { %v797_v46 = vmax.f32 %v661_v56, 1e-12  ;;  %913 = vperm.xlu1 %4430, %v4435_v5   ;;  %v509_v26 = vpop.f32.mrf.mxu0  ;;  %v489_v5 = vadd.f32 1.0, %v5012_v61 }
 0x16c   :  { %v665_v54 = vpop.f32.mrf.mxu1 }
 0x16d   :  { %4442 = vrsqrt.f32 %v797_v46  ;;  %v666_v12 = vadd.f32 %v665_v54, %v481_v1  ;;  %v5038_v38 = vpop.f32.mrf.mxu0 }
 0x16e   :  { %v4437_v42 = vpop.eup %4436  ;;  %v3922_v48 = vpop.f32.mrf.mxu1 }
 0x16f   :  { %v798_v58 = vmax.f32 %v666_v12, 1e-12  ;;  %918 = vperm.xlu1 %4430, %v4437_v42   ;;  %v514_v53 = vpop.f32.mrf.mxu0  ;;  %v492_v42 = vadd.f32 1.0, %v5017_v59 }
 0x170   :  { %v668_v63 = vpop.f32.mrf.mxu1 }
 0x171   :  { %4444 = vrsqrt.f32 %v798_v58  ;;  %v669_v45 = vadd.f32 %v668_v63, %v484_v52  ;;  %v5041_v50 = vpop.f32.mrf.mxu0 }
 0x172   :  { %v4439_v49 = vpop.eup %4438  ;;  %v3923_v56 = vpop.f32.mrf.mxu1 }
 0x173   :  { %v799_v46 = vmax.f32 %v669_v45, 1e-12  ;;  %923 = vperm.xlu0 %4431, %v4439_v49   ;;  %v517_v1 = vpop.f32.mrf.mxu0  ;;  %v497_v49 = vadd.f32 1.0, %v5019_v23 }
 0x174   :  { %v673_v26 = vpop.f32.mrf.mxu1 }
 0x175   :  { %4446 = vrsqrt.f32 %v799_v46  ;;  %v674_v54 = vadd.f32 %v673_v26, %v489_v5  ;;  %v5044_v48 = vpop.f32.mrf.mxu0 }
 0x176   :  { %v4441_v44 = vpop.eup %4440  ;;  %v3926_v12 = vpop.f32.mrf.mxu1 }
 0x177   :  { %v800_v58 = vmax.f32 %v674_v54, 1e-12  ;;  %928 = vperm.xlu1 %4430, %v4441_v44   ;;  %v522_v52 = vpop.f32.mrf.mxu0  ;;  %v500_v44 = vadd.f32 1.0, %v5021_v3 }
 0x178   :  { %v676_v53 = vpop.f32.mrf.mxu1 }
 0x179   :  { %4448 = vrsqrt.f32 %v800_v58  ;;  %v677_v63 = vadd.f32 %v676_v53, %v492_v42  ;;  %v5047_v56 = vpop.f32.mrf.mxu0 }
 0x17a   :  { %v4443_v61 = vpop.eup %4442  ;;  %v3927_v45 = vpop.f32.mrf.mxu1 }
 0x17b   :  { %v801_v46 = vmax.f32 %v677_v63, 1e-12  ;;  %933 = vperm.xlu1 %4430, %v4443_v61   ;;  %v525_v5 = vpop.f32.mrf.mxu0  ;;  %v505_v61 = vadd.f32 1.0, %v5029_v40 }
 0x17c   :  { %v681_v1 = vpop.f32.mrf.mxu1 }
 0x17d   :  { %4450 = vrsqrt.f32 %v801_v46  ;;  %v682_v26 = vadd.f32 %v681_v1, %v497_v49  ;;  %v5050_v12 = vpop.f32.mrf.mxu0 }
 0x17e   :  { %v4445_v59 = vpop.eup %4444  ;;  %v3930_v54 = vpop.f32.mrf.mxu1 }
 0x17f   :  { %v802_v58 = vmax.f32 %v682_v26, 1e-12  ;;  %938 = vperm.xlu1 %4430, %v4445_v59   ;;  %v530_v42 = vpop.f32.mrf.mxu0  ;;  %v508_v59 = vadd.f32 1.0, %v5034_v0 }
 0x180   :  { %v684_v52 = vpop.f32.mrf.mxu1 }
 0x181   :  { %4452 = vrsqrt.f32 %v802_v58  ;;  %v685_v53 = vadd.f32 %v684_v52, %v500_v44  ;;  %v5053_v45 = vpop.f32.mrf.mxu0 }
 0x182   :  { %v4447_v23 = vpop.eup %4446  ;;  %v3931_v63 = vpop.f32.mrf.mxu1 }
 0x183   :  { %v803_v46 = vmax.f32 %v685_v53, 1e-12  ;;  %943 = vperm.xlu0 %4431, %v4447_v23   ;;  %v533_v49 = vpop.f32.mrf.mxu0  ;;  %v513_v23 = vadd.f32 1.0, %v5038_v38 }
 0x184   :  { %v689_v5 = vpop.f32.mrf.mxu1 }
 0x185   :  { %4454 = vrsqrt.f32 %v803_v46  ;;  %v690_v1 = vadd.f32 %v689_v5, %v505_v61  ;;  %v5056_v54 = vpop.f32.mrf.mxu0 }
 0x186   :  { %v4449_v3 = vpop.eup %4448  ;;  %v3934_v26 = vpop.f32.mrf.mxu1 }
 0x187   :  { %v804_v58 = vmax.f32 %v690_v1, 1e-12  ;;  %948 = vperm.xlu1 %4430, %v4449_v3   ;;  %v538_v44 = vpop.f32.mrf.mxu0  ;;  %v516_v3 = vadd.f32 1.0, %v5041_v50 }
 0x188   :  { %v692_v42 = vpop.f32.mrf.mxu1 }
 0x189   :  { %4456 = vrsqrt.f32 %v804_v58  ;;  %v693_v52 = vadd.f32 %v692_v42, %v508_v59  ;;  %v5059_v63 = vpop.f32.mrf.mxu0  ;;  %v521_v42 = vadd.f32 1.0, %v5044_v48 }
 0x18a   :  { %v4451_v40 = vpop.eup %4450  ;;  %v3935_v53 = vpop.f32.mrf.mxu1 }
 0x18b   :  { %v805_v46 = vmax.f32 %v693_v52, 1e-12  ;;  %953 = vperm.xlu0 %4431, %v4451_v40   ;;  %v541_v61 = vpop.f32.mrf.mxu0 }
 0x18c   :  { %v697_v49 = vpop.f32.mrf.mxu1 }
 0x18d   :  { %4458 = vrsqrt.f32 %v805_v46  ;;  %v698_v5 = vadd.f32 %v697_v49, %v513_v23  ;;  %v5062_v26 = vpop.f32.mrf.mxu0 }
 0x18e   :  { %v4453_v0 = vpop.eup %4452  ;;  %v3938_v1 = vpop.f32.mrf.mxu1 }
 0x18f   :  { %v806_v58 = vmax.f32 %v698_v5, 1e-12  ;;  %958 = vperm.xlu1 %4430, %v4453_v0   ;;  %v546_v59 = vpop.f32.mrf.mxu0  ;;  %v524_v0 = vadd.f32 1.0, %v5047_v56 }
 0x190   :  { %v700_v44 = vpop.f32.mrf.mxu1 }
 0x191   :  { %4460 = vrsqrt.f32 %v806_v58  ;;  %v701_v38 = vadd.f32 %v700_v44, %v516_v3  ;;  %v5066_v52 = vpop.f32.mrf.mxu0  ;;  %v529_v58 = vadd.f32 1.0, %v5050_v12 }
 0x192   :  { %v4455_v40 = vpop.eup %4454  ;;  %v3939_v53 = vpop.f32.mrf.mxu1 }
 0x193   :  { %v807_v46 = vmax.f32 %v701_v38, 1e-12  ;;  %963 = vperm.xlu0 %4431, %v4455_v40   ;;  %v549_v23 = vpop.f32.mrf.mxu0 }
 0x194   :  { %v705_v61 = vpop.f32.mrf.mxu1 }
 0x195   :  { %4462 = vrsqrt.f32 %v807_v46  ;;  %v706_v49 = vadd.f32 %v705_v61, %v521_v42  ;;  %v5068_v1 = vpop.f32.mrf.mxu0 }
 0x196   :  { %v4457_v50 = vpop.eup %4456  ;;  %v3942_v5 = vpop.f32.mrf.mxu1 }
 0x197   :  { %v808_v59 = vmax.f32 %v706_v49, 1e-12  ;;  %968 = vperm.xlu1 %4430, %v4457_v50   ;;  %v554_v48 = vpop.f32.mrf.mxu0  ;;  %v532_v50 = vadd.f32 1.0, %v5053_v45 }
 0x198   :  { %v708_v3 = vpop.f32.mrf.mxu1 }
 0x199   :  { %4464 = vrsqrt.f32 %v808_v59  ;;  %v709_v44 = vadd.f32 %v708_v3, %v524_v0  ;;  %v5072_v38 = vpop.f32.mrf.mxu0  ;;  %v537_v59 = vadd.f32 1.0, %v5056_v54 }
 0x19a   :  { %v4459_v40 = vpop.eup %4458  ;;  %v3943_v53 = vpop.f32.mrf.mxu1 }
 0x19b   :  { %v809_v46 = vmax.f32 %v709_v44, 1e-12  ;;  %973 = vperm.xlu0 %4431, %v4459_v40   ;;  %v557_v42 = vpop.f32.mrf.mxu0 }
 0x19c   :  { %v713_v23 = vpop.f32.mrf.mxu1 }
 0x19d   :  { %4466 = vrsqrt.f32 %v809_v46  ;;  %v714_v61 = vadd.f32 %v713_v23, %v529_v58  ;;  %v5074_v5 = vpop.f32.mrf.mxu0 }
 0x19e   :  { %v4461_v56 = vpop.eup %4460  ;;  %v3946_v49 = vpop.f32.mrf.mxu1 }
 0x19f   :  { %v810_v48 = vmax.f32 %v714_v61, 1e-12  ;;  %978 = vperm.xlu1 %4430, %v4461_v56   ;;  %v562_v12 = vpop.f32.mrf.mxu0  ;;  %v540_v56 = vadd.f32 1.0, %v5059_v63 }
 0x1a0   :  { %v716_v0 = vpop.f32.mrf.mxu1 }
 0x1a1   :  { %4468 = vrsqrt.f32 %v810_v48  ;;  %v717_v3 = vadd.f32 %v716_v0, %v532_v50  ;;  %v5078_v44 = vpop.f32.mrf.mxu0  ;;  %v545_v48 = vadd.f32 1.0, %v5062_v26 }
 0x1a2   :  { %v4463_v40 = vpop.eup %4462  ;;  %v3947_v53 = vpop.f32.mrf.mxu1 }
 0x1a3   :  { %v811_v46 = vmax.f32 %v717_v3, 1e-12  ;;  %983 = vperm.xlu0 %4431, %v4463_v40   ;;  %v565_v58 = vpop.f32.mrf.mxu0 }
 0x1a4   :  { %v721_v42 = vpop.f32.mrf.mxu1 }
 0x1a5   :  { %4470 = vrsqrt.f32 %v811_v46  ;;  %v722_v23 = vadd.f32 %v721_v42, %v537_v59  ;;  %v5080_v49 = vpop.f32.mrf.mxu0 }
 0x1a6   :  { %v4465_v45 = vpop.eup %4464  ;;  %v3950_v61 = vpop.f32.mrf.mxu1 }
 0x1a7   :  { %v812_v12 = vmax.f32 %v722_v23, 1e-12  ;;  %988 = vperm.xlu1 %4430, %v4465_v45   ;;  %v570_v54 = vpop.f32.mrf.mxu0  ;;  %v548_v45 = vadd.f32 1.0, %v5066_v52 }
 0x1a8   :  { %v724_v50 = vpop.f32.mrf.mxu1 }
 0x1a9   :  { %4472 = vrsqrt.f32 %v812_v12  ;;  %v725_v0 = vadd.f32 %v724_v50, %v540_v56  ;;  %v5084_v3 = vpop.f32.mrf.mxu0  ;;  %v553_v12 = vadd.f32 1.0, %v5068_v1 }
 0x1aa   :  { %v4467_v40 = vpop.eup %4466  ;;  %v3951_v53 = vpop.f32.mrf.mxu1 }
 0x1ab   :  { %v813_v46 = vmax.f32 %v725_v0, 1e-12  ;;  %993 = vperm.xlu0 %4431, %v4467_v40   ;;  %v573_v59 = vpop.f32.mrf.mxu0 }
 0x1ac   :  { %v729_v58 = vpop.f32.mrf.mxu1 }
 0x1ad   :  { %4474 = vrsqrt.f32 %v813_v46  ;;  %v730_v42 = vadd.f32 %v729_v58, %v545_v48  ;;  %v5086_v61 = vpop.f32.mrf.mxu0 }
 0x1ae   :  { %v4469_v63 = vpop.eup %4468  ;;  %v3954_v23 = vpop.f32.mrf.mxu1 }
 0x1af   :  { %v814_v54 = vmax.f32 %v730_v42, 1e-12  ;;  %998 = vperm.xlu1 %4430, %v4469_v63   ;;  %v578_v26 = vpop.f32.mrf.mxu0  ;;  %v556_v63 = vadd.f32 1.0, %v5072_v38 }
 0x1b0   :  { %v732_v56 = vpop.f32.mrf.mxu1 }
 0x1b1   :  { %4476 = vrsqrt.f32 %v814_v54  ;;  %v733_v50 = vadd.f32 %v732_v56, %v548_v45  ;;  %v5090_v0 = vpop.f32.mrf.mxu0  ;;  %v561_v54 = vadd.f32 1.0, %v5074_v5 }
 0x1b2   :  { %v4471_v40 = vpop.eup %4470  ;;  %v3955_v53 = vpop.f32.mrf.mxu1 }
 0x1b3   :  { %v815_v46 = vmax.f32 %v733_v50, 1e-12  ;;  %1003 = vperm.xlu0 %4431, %v4471_v40   ;;  %v581_v48 = vpop.f32.mrf.mxu0 }
 0x1b4   :  { %v737_v59 = vpop.f32.mrf.mxu1 }
 0x1b5   :  { %4478 = vrsqrt.f32 %v815_v46  ;;  %v738_v58 = vadd.f32 %v737_v59, %v553_v12  ;;  %v5092_v23 = vpop.f32.mrf.mxu0 }
 0x1b6   :  { %v4473_v52 = vpop.eup %4472  ;;  %v3958_v42 = vpop.f32.mrf.mxu1 }
 0x1b7   :  { %v816_v26 = vmax.f32 %v738_v58, 1e-12  ;;  %1008 = vperm.xlu1 %4430, %v4473_v52   ;;  %v586_v1 = vpop.f32.mrf.mxu0  ;;  %v564_v52 = vadd.f32 1.0, %v5078_v44 }
 0x1b8   :  { %v740_v45 = vpop.f32.mrf.mxu1 }
 0x1b9   :  { %4480 = vrsqrt.f32 %v816_v26  ;;  %v741_v56 = vadd.f32 %v740_v45, %v556_v63  ;;  %v5096_v50 = vpop.f32.mrf.mxu0 }
 0x1ba   :  { %v4475_v40 = vpop.eup %4474  ;;  %v3959_v53 = vpop.f32.mrf.mxu1 }
 0x1bb   :  { %v817_v46 = vmax.f32 %v741_v56, 1e-12  ;;  %1013 = vperm.xlu0 %4431, %v4475_v40   ;;  %v589_v12 = vpop.f32.mrf.mxu0  ;;  %v569_v53 = vadd.f32 1.0, %v5080_v49 }
 0x1bc   :  { %v745_v48 = vpop.f32.mrf.mxu1 }
 0x1bd   :  { %4482 = vrsqrt.f32 %v817_v46  ;;  %v746_v59 = vadd.f32 %v745_v48, %v561_v54  ;;  %v5098_v42 = vpop.f32.mrf.mxu0 }
 0x1be   :  { %v4477_v38 = vpop.eup %4476  ;;  %v3962_v58 = vpop.f32.mrf.mxu1 }
 0x1bf   :  { %v818_v1 = vmax.f32 %v746_v59, 1e-12  ;;  %1018 = vperm.xlu1 %4430, %v4477_v38   ;;  %v594_v5 = vpop.f32.mrf.mxu0  ;;  %v572_v38 = vadd.f32 1.0, %v5084_v3 }
 0x1c0   :  { %v748_v63 = vpop.f32.mrf.mxu1 }
 0x1c1   :  { %4484 = vrsqrt.f32 %v818_v1  ;;  %v749_v26 = vadd.f32 %v748_v63, %v564_v52  ;;  %v5101_v45 = vpop.f32.mrf.mxu0 }
 0x1c2   :  { %v4479_v56 = vpop.eup %4478  ;;  %v3963_v40 = vpop.f32.mrf.mxu1 }
 0x1c3   :  { %v819_v46 = vmax.f32 %v749_v26, 1e-12  ;;  %1023 = vperm.xlu0 %4431, %v4479_v56   ;;  %v597_v54 = vpop.f32.mrf.mxu0  ;;  %v577_v56 = vadd.f32 1.0, %v5086_v61 }
 0x1c4   :  { %v753_v12 = vpop.f32.mrf.mxu1 }
 0x1c5   :  { %4486 = vrsqrt.f32 %v819_v46  ;;  %v754_v48 = vadd.f32 %v753_v12, %v569_v53  ;;  %v5104_v58 = vpop.f32.mrf.mxu0 }
 0x1c6   :  { %v4481_v44 = vpop.eup %4480  ;;  %v3966_v59 = vpop.f32.mrf.mxu1 }
 0x1c7   :  { %v820_v1 = vmax.f32 %v754_v48, 1e-12  ;;  %1028 = vperm.xlu1 %4430, %v4481_v44   ;;  %v602_v52 = vpop.f32.mrf.mxu0  ;;  %v580_v48 = vadd.f32 1.0, %v5090_v0 }
 0x1c8   :  { %v756_v5 = vpop.f32.mrf.mxu1 }
 0x1c9   :  { %4488 = vrsqrt.f32 %v820_v1  ;;  %v757_v63 = vadd.f32 %v756_v5, %v572_v38  ;;  %v5107_v40 = vpop.f32.mrf.mxu0 }
 0x1ca   :  { %v4483_v49 = vpop.eup %4482  ;;  %v3967_v26 = vpop.f32.mrf.mxu1 }
 0x1cb   :  { %v821_v46 = vmax.f32 %v757_v63, 1e-12  ;;  %1033 = vperm.xlu0 %4431, %v4483_v49   ;;  %v605_v53 = vpop.f32.mrf.mxu0  ;;  %v585_v26 = vadd.f32 1.0, %v5092_v23 }
 0x1cc   :  { %v761_v54 = vpop.f32.mrf.mxu1  ;;  %v588_v53 = vadd.f32 1.0, %v5096_v50 }
 0x1cd   :  { %4490 = vrsqrt.f32 %v821_v46  ;;  %v762_v12 = vadd.f32 %v761_v54, %v577_v56 }
 0x1ce   :  { %v4485_v59 = vpop.eup %4484  ;;  %v3970_v3 = vpop.f32.mrf.mxu1 }
 0x1cf   :  { %v822_v44 = vmax.f32 %v762_v12, 1e-12  ;;  %1038 = vperm.xlu1 %4430, %v4485_v59  }
 0x1d0   :  { %v764_v1 = vpop.f32.mrf.mxu1 }
 0x1d1   :  { %4492 = vrsqrt.f32 %v822_v44  ;;  %v765_v38 = vadd.f32 %v764_v1, %v580_v48  ;;  %v593_v48 = vadd.f32 1.0, %v5098_v42 }
 0x1d2   :  { %v4487_v52 = vpop.eup %4486  ;;  %v3971_v5 = vpop.f32.mrf.mxu1 }
 0x1d3   :  { %v823_v61 = vmax.f32 %v765_v38, 1e-12  ;;  %1043 = vperm.xlu0 %4431, %v4487_v52   ;;  %v596_v5 = vadd.f32 1.0, %v5101_v45 }
 0x1d4   :  { %v769_v63 = vpop.f32.mrf.mxu1 }
 0x1d5   :  { %4494 = vrsqrt.f32 %v823_v61  ;;  %v770_v49 = vadd.f32 %v769_v63, %v585_v26  ;;  %v868_v61 = vld [vmem:[%s6790_s0] sm:$0xff] }
 0x1d6   :  { %v4489_v46 = vpop.eup %4488  ;;  %v3974_v56 = vpop.f32.mrf.mxu1 }
 0x1d7   :  { %v824_v54 = vmax.f32 %v770_v49, 1e-12  ;;  %1048 = vperm.xlu1 %4430, %v4489_v46   ;;  %v601_v56 = vadd.f32 1.0, %v5104_v58 }
 0x1d8   :  { %v772_v0 = vpop.f32.mrf.mxu1 }
 0x1d9   :  { %4496 = vrsqrt.f32 %v824_v54  ;;  %v773_v12 = vadd.f32 %v772_v0, %v588_v53  ;;  %v869_v0 = vld [vmem:[%s6790_s0 + $0x8] sm:$0xff] }
 0x1da   :  { %v4491_v59 = vpop.eup %4490  ;;  %v3975_v3 = vpop.f32.mrf.mxu1 }
 0x1db   :  { %v825_v44 = vmax.f32 %v773_v12, 1e-12  ;;  %1053 = vperm.xlu0 %4431, %v4491_v59  }
 0x1dc   :  { %v777_v23 = vpop.f32.mrf.mxu1 }
 0x1dd   :  { %4498 = vrsqrt.f32 %v825_v44  ;;  %v778_v1 = vadd.f32 %v777_v23, %v593_v48  ;;  %v604_v44 = vadd.f32 1.0, %v5107_v40 }
 0x1de   :  { %v4493_v38 = vpop.eup %4492  ;;  %v3978_v52 = vpop.f32.mrf.mxu1 }
 0x1df   :  { %v826_v26 = vmax.f32 %v778_v1, 1e-12  ;;  %1058 = vperm.xlu1 %4430, %v4493_v38   ;;  %v870_v38 = vld [vmem:[%s6790_s0 + $0x10] sm:$0xff] }
 0x1e0   :  { %v780_v50 = vpop.f32.mrf.mxu1 }
 0x1e1   :  { %4500 = vrsqrt.f32 %v826_v26  ;;  %v781_v63 = vadd.f32 %v780_v50, %v596_v5 }
 0x1e2   :  { %v4495_v49 = vpop.eup %4494  ;;  %v3979_v42 = vpop.f32.mrf.mxu1 }
 0x1e3   :  { %v5118_v46 = vpop.permute.xlu1 %908  ;;  %v827_v53 = vmax.f32 %v781_v63, 1e-12  ;;  %1063 = vperm.xlu0 %4431, %v4495_v49   ;;  %v871_v63 = vld [vmem:[%s6790_s0 + $0x18] sm:$0xff] }
 0x1e4   :  { %7026 = vst [vmem:[#allocation39_spill] sm:$0xff] %v5118_v46  ;;  %v1096_v45 = vmul.f32 %v5118_v46, %v868_v61  ;;  %v785_v54 = vpop.f32.mrf.mxu1 }
 0x1e5   :  { %4502 = vrsqrt.f32 %v827_v53  ;;  %v786_v12 = vadd.f32 %v785_v54, %v601_v56  ;;  %v872_v53 = vld [vmem:[%s6790_s0 + $0x20] sm:$0xff] }
 0x1e6   :  { %3992 = vmatprep.mubr.msk.f32.mxu1 %vm1138_vm3, %v1096_v45  ;;  %v4497_v59 = vpop.eup %4496  ;;  %v3982_v3 = vpop.f32.mrf.mxu1 }
 0x1e7   :  { %v5126_v48 = vpop.permute.xlu1 %913  ;;  %v828_v58 = vmax.f32 %v786_v12, 1e-12  ;;  %1068 = vperm.xlu1 %4430, %v4497_v59   ;;  %v873_v12 = vld [vmem:[%s6790_s0 + $0x28] sm:$0xff] }
 0x1e8   :  { %7027 = vst [vmem:[#allocation40_spill] sm:$0xff] %v5126_v48  ;;  %v1097_v23 = vmul.f32 %v5126_v48, %v869_v0  ;;  %v788_v1 = vpop.f32.mrf.mxu1 }
 0x1e9   :  { %4504 = vrsqrt.f32 %v828_v58  ;;  %v789_v52 = vadd.f32 %v788_v1, %v604_v44  ;;  %v874_v58 = vld [vmem:[%s6790_s0 + $0x30] sm:$0xff] }
 0x1ea   :  { %3993 = vmatmul.mubr.msk.f32.vlgmr.msra.gmra.mxu1 %vm1138_vm3, %v1097_v23  ;;  %v4499_v5 = vpop.eup %4498  ;;  %v3983_v26 = vpop.f32.mrf.mxu1 }
 0x1eb   :  { %v5134_v50 = vpop.permute.xlu1 %918  ;;  %v829_v61 = vmax.f32 %v789_v52, 1e-12  ;;  %1073 = vperm.xlu0 %4431, %v4499_v5   ;;  %v875_v52 = vld [vmem:[%s6790_s0 + $0x38] sm:$0xff] }
 0x1ec   :  { %7028 = vst [vmem:[#allocation41_spill] sm:$0xff] %v5134_v50  ;;  %v1098_v40 = vmul.f32 %v5134_v50, %v870_v38 }
 0x1ed   :  { %4506 = vrsqrt.f32 %v829_v61  ;;  %v876_v61 = vld [vmem:[%s6790_s0 + $0x40] sm:$0xff] }
 0x1ee   :  { %3995 = vmatprep.mubr.msk.f32.mxu1 %vm1138_vm3, %v1098_v40  ;;  %v4501_v49 = vpop.eup %4500  ;;  %v5141_v42 = vpop.permute.xlu0 %923 }
 0x1ef   :  { %7029 = vst [vmem:[#allocation42_spill] sm:$0xff] %v5141_v42  ;;  %1078 = vperm.xlu1 %4430, %v4501_v49   ;;  %v1099_v56 = vmul.f32 %v5141_v42, %v871_v63  ;;  %v877_v49 = vld [vmem:[%s6790_s0 + $0x48] sm:$0xff] }
 0x1f1   :  { %3996 = vmatmul.mubr.msk.f32.gmra.mxu1 %vm1138_vm3, %v1099_v56 }
 0x1f2   :  { %v4503_v45 = vpop.eup %4502  ;;  %v5148_v54 = vpop.permute.xlu1 %928 }
 0x1f3   :  { %7030 = vst [vmem:[#allocation43_spill] sm:$0xff] %v5148_v54  ;;  %1083 = vperm.xlu0 %4431, %v4503_v45   ;;  %v1100_v0 = vmul.f32 %v5148_v54, %v872_v53  ;;  %v878_v45 = vld [vmem:[%s6790_s0 + $0x50] sm:$0xff] }
 0x1f5   :  { %3998 = vmatprep.mubr.msk.f32.mxu1 %vm1138_vm3, %v1100_v0 }
 0x1f6   :  { %v4505_v59 = vpop.eup %4504  ;;  %v5155_v3 = vpop.permute.xlu1 %933 }
 0x1f7   :  { %7031 = vst [vmem:[#allocation44_spill] sm:$0xff] %v5155_v3  ;;  %1088 = vperm.xlu1 %4430, %v4505_v59   ;;  %v1101_v44 = vmul.f32 %v5155_v3, %v873_v12  ;;  %v879_v59 = vld [vmem:[%s6790_s0 + $0x58] sm:$0xff] }
 0x1f9   :  { %3999 = vmatmul.mubr.msk.f32.gmra.mxu1 %vm1138_vm3, %v1101_v44 }
 0x1fa   :  { %v4507_v23 = vpop.eup %4506  ;;  %v5162_v1 = vpop.permute.xlu1 %938 }
 0x1fb   :  { %7032 = vst [vmem:[#allocation45_spill] sm:$0xff] %v5162_v1  ;;  %1093 = vperm.xlu0 %4431, %v4507_v23   ;;  %v1102_v38 = vmul.f32 %v5162_v1, %v874_v58  ;;  %v880_v23 = vld [vmem:[%s6790_s0 + $0x60] sm:$0xff]  ;;  %v7078_v1 = vmov 0  }
 0x1fd   :  { %4001 = vmatprep.mubr.msk.f32.mxu1 %vm1138_vm3, %v1102_v38 }
 0x1fe   :  { %v5169_v5 = vpop.permute.xlu0 %943 }
 0x1ff   :  { %7033 = vst [vmem:[#allocation46_spill] sm:$0xff] %v5169_v5  ;;  %v1103_v26 = vmul.f32 %v5169_v5, %v875_v52 }
 0x201   :  { %4002 = vmatmul.mubr.msk.f32.gmra.mxu1 %vm1138_vm3, %v1103_v26  ;;  %v881_v26 = vld [vmem:[%s6790_s0 + $0x68] sm:$0xff] }
 0x202   :  { %v5176_v40 = vpop.permute.xlu1 %948 }
 0x203   :  { %7034 = vst [vmem:[#allocation47_spill] sm:$0xff] %v5176_v40  ;;  %v1104_v63 = vmul.f32 %v5176_v40, %v876_v61 }
 0x205   :  { %4004 = vmatprep.mubr.msk.f32.mxu1 %vm1138_vm3, %v1104_v63 }
 0x206   :  { %v5183_v56 = vpop.permute.xlu0 %953 }
 0x207   :  { %7035 = vst [vmem:[#allocation48_spill] sm:$0xff] %v5183_v56  ;;  %v1105_v53 = vmul.f32 %v5183_v56, %v877_v49  ;;  %v882_v49 = vld [vmem:[%s6790_s0 + $0x70] sm:$0xff] }
 0x209   :  { %4005 = vmatmul.mubr.msk.f32.gmra.mxu1 %vm1138_vm3, %v1105_v53 }
 0x20a   :  { %v5190_v0 = vpop.permute.xlu1 %958 }
 0x20b   :  { %7036 = vst [vmem:[#allocation49_spill] sm:$0xff] %v5190_v0  ;;  %v1106_v12 = vmul.f32 %v5190_v0, %v878_v45 }
 0x20d   :  { %4007 = vmatprep.mubr.msk.f32.mxu1 %vm1138_vm3, %v1106_v12  ;;  %v883_v12 = vld [vmem:[%s6790_s0 + $0x78] sm:$0xff] }
 0x20e   :  { %v5197_v44 = vpop.permute.xlu0 %963 }
 0x20f   :  { %7037 = vst [vmem:[#allocation50_spill] sm:$0xff] %v5197_v44  ;;  %v1107_v58 = vmul.f32 %v5197_v44, %v879_v59 }
 0x211   :  { %4008 = vmatmul.mubr.msk.f32.gmra.mxu1 %vm1138_vm3, %v1107_v58 }
 0x212   :  { %v5204_v38 = vpop.permute.xlu1 %968 }
 0x213   :  { %7038 = vst [vmem:[#allocation51_spill] sm:$0xff] %v5204_v38  ;;  %v1108_v52 = vmul.f32 %v5204_v38, %v880_v23  ;;  %v884_v23 = vld [vmem:[%s6790_s0 + $0x80] sm:$0xff] }
 0x215   :  { %4010 = vmatprep.mubr.msk.f32.mxu1 %vm1138_vm3, %v1108_v52 }
 0x216   :  { %v5211_v61 = vpop.permute.xlu0 %973 }
 0x217   :  { %7039 = vst [vmem:[#allocation52_spill] sm:$0xff] %v5211_v61  ;;  %v1109_v63 = vmul.f32 %v5211_v61, %v881_v26 }
 0x219   :  { %4011 = vmatmul.mubr.msk.f32.gmra.mxu1 %vm1138_vm3, %v1109_v63  ;;  %v885_v63 = vld [vmem:[%s6790_s0 + $0x88] sm:$0xff] }
 0x21a   :  { %v5218_v53 = vpop.permute.xlu1 %978 }
 0x21b   :  { %7040 = vst [vmem:[#allocation53_spill] sm:$0xff] %v5218_v53  ;;  %v1110_v45 = vmul.f32 %v5218_v53, %v882_v49 }
 0x21d   :  { %4013 = vmatprep.mubr.msk.f32.mxu1 %vm1138_vm3, %v1110_v45 }
 0x21e   :  { %v5225_v59 = vpop.permute.xlu0 %983 }
 0x21f   :  { %7041 = vst [vmem:[#allocation54_spill] sm:$0xff] %v5225_v59  ;;  %v1111_v58 = vmul.f32 %v5225_v59, %v883_v12  ;;  %v886_v12 = vld [vmem:[%s6790_s0 + $0x90] sm:$0xff] }
 0x221   :  { %4014 = vmatmul.mubr.msk.f32.gmra.mxu1 %vm1138_vm3, %v1111_v58 }
 0x222   :  { %v5232_v52 = vpop.permute.xlu1 %988 }
 0x223   :  { %7042 = vst [vmem:[#allocation55_spill] sm:$0xff] %v5232_v52  ;;  %v1112_v26 = vmul.f32 %v5232_v52, %v884_v23  ;;  %v887_v52 = vld [vmem:[%s6790_s0 + $0x98] sm:$0xff] }
 0x225   :  { %4016 = vmatprep.mubr.msk.f32.mxu1 %vm1138_vm3, %v1112_v26 }
 0x226   :  { %v5239_v49 = vpop.permute.xlu0 %993 }
 0x227   :  { %7043 = vst [vmem:[#allocation56_spill] sm:$0xff] %v5239_v49  ;;  %v1113_v45 = vmul.f32 %v5239_v49, %v885_v63  ;;  %v888_v49 = vld [vmem:[%s6790_s0 + $0xa0] sm:$0xff] }
 0x229   :  { %4017 = vmatmul.mubr.msk.f32.gmra.mxu1 %vm1138_vm3, %v1113_v45 }
 0x22a   :  { %v5246_v58 = vpop.permute.xlu1 %998 }
 0x22b   :  { %7044 = vst [vmem:[#allocation57_spill] sm:$0xff] %v5246_v58  ;;  %v1114_v23 = vmul.f32 %v5246_v58, %v886_v12  ;;  %v889_v58 = vld [vmem:[%s6790_s0 + $0xa8] sm:$0xff] }
 0x22d   :  { %4019 = vmatprep.mubr.msk.f32.mxu1 %vm1138_vm3, %v1114_v23 }
 0x22e   :  { %v5253_v26 = vpop.permute.xlu0 %1003 }
 0x22f   :  { %7045 = vst [vmem:[#allocation58_spill] sm:$0xff] %v5253_v26  ;;  %v1115_v63 = vmul.f32 %v5253_v26, %v887_v52  ;;  %v890_v26 = vld [vmem:[%s6790_s0 + $0xb0] sm:$0xff] }
 0x231   :  { %4020 = vmatmul.mubr.msk.f32.gmra.mxu1 %vm1138_vm3, %v1115_v63 }
 0x232   :  { %v5260_v45 = vpop.permute.xlu1 %1008 }
 0x233   :  { %7046 = vst [vmem:[#allocation59_spill] sm:$0xff] %v5260_v45  ;;  %v1116_v12 = vmul.f32 %v5260_v45, %v888_v49  ;;  %v891_v45 = vld [vmem:[%s6790_s0 + $0xb8] sm:$0xff] }
 0x235   :  { %4022 = vmatprep.mubr.msk.f32.mxu1 %vm1138_vm3, %v1116_v12 }
 0x236   :  { %v5267_v23 = vpop.permute.xlu0 %1013 }
 0x237   :  { %7047 = vst [vmem:[#allocation60_spill] sm:$0xff] %v5267_v23  ;;  %v1117_v52 = vmul.f32 %v5267_v23, %v889_v58  ;;  %v892_v23 = vld [vmem:[%s6790_s0 + $0xc0] sm:$0xff] }
 0x239   :  { %4023 = vmatmul.mubr.msk.f32.gmra.mxu1 %vm1138_vm3, %v1117_v52 }
 0x23a   :  { %v5274_v63 = vpop.permute.xlu1 %1018 }
 0x23b   :  { %7048 = vst [vmem:[#allocation61_spill] sm:$0xff] %v5274_v63  ;;  %v1118_v49 = vmul.f32 %v5274_v63, %v890_v26  ;;  %v893_v63 = vld [vmem:[%s6790_s0 + $0xc8] sm:$0xff] }
 0x23d   :  { %4025 = vmatprep.mubr.msk.f32.mxu1 %vm1138_vm3, %v1118_v49 }
 0x23e   :  { %v5281_v12 = vpop.permute.xlu0 %1023 }
 0x23f   :  { %7049 = vst [vmem:[#allocation62_spill] sm:$0xff] %v5281_v12  ;;  %v1119_v58 = vmul.f32 %v5281_v12, %v891_v45  ;;  %v894_v12 = vld [vmem:[%s6790_s0 + $0xd0] sm:$0xff] }
 0x241   :  { %4026 = vmatmul.mubr.msk.f32.gmra.mxu1 %vm1138_vm3, %v1119_v58 }
 0x242   :  { %v5288_v52 = vpop.permute.xlu1 %1028 }
 0x243   :  { %7050 = vst [vmem:[#allocation63_spill] sm:$0xff] %v5288_v52  ;;  %v1120_v26 = vmul.f32 %v5288_v52, %v892_v23  ;;  %v895_v52 = vld [vmem:[%s6790_s0 + $0xd8] sm:$0xff] }
 0x245   :  { %4028 = vmatprep.mubr.msk.f32.mxu1 %vm1138_vm3, %v1120_v26 }
 0x246   :  { %v5295_v49 = vpop.permute.xlu0 %1033 }
 0x247   :  { %7051 = vst [vmem:[#allocation64_spill] sm:$0xff] %v5295_v49  ;;  %v1121_v45 = vmul.f32 %v5295_v49, %v893_v63  ;;  %v896_v49 = vld [vmem:[%s6790_s0 + $0xe0] sm:$0xff] }
 0x249   :  { %4029 = vmatmul.mubr.msk.f32.gmra.mxu1 %vm1138_vm3, %v1121_v45 }
 0x24a   :  { %v5302_v58 = vpop.permute.xlu1 %1038 }
 0x24b   :  { %7052 = vst [vmem:[#allocation65_spill] sm:$0xff] %v5302_v58  ;;  %v1122_v23 = vmul.f32 %v5302_v58, %v894_v12  ;;  %v897_v58 = vld [vmem:[%s6790_s0 + $0xe8] sm:$0xff] }
 0x24d   :  { %4031 = vmatprep.mubr.msk.f32.mxu1 %vm1138_vm3, %v1122_v23 }
 0x24e   :  { %v5309_v26 = vpop.permute.xlu0 %1043 }
 0x24f   :  { %7053 = vst [vmem:[#allocation66_spill] sm:$0xff] %v5309_v26  ;;  %v1123_v63 = vmul.f32 %v5309_v26, %v895_v52  ;;  %v898_v26 = vld [vmem:[%s6790_s0 + $0xf0] sm:$0xff] }
 0x251   :  { %4032 = vmatmul.mubr.msk.f32.gmra.mxu1 %vm1138_vm3, %v1123_v63 }
 0x252   :  { %v5316_v45 = vpop.permute.xlu1 %1048 }
 0x253   :  { %7054 = vst [vmem:[#allocation67_spill] sm:$0xff] %v5316_v45  ;;  %v1124_v12 = vmul.f32 %v5316_v45, %v896_v49  ;;  %v899_v45 = vld [vmem:[%s6790_s0 + $0xf8] sm:$0xff] }
 0x255   :  { %4034 = vmatprep.mubr.msk.f32.mxu1 %vm1138_vm3, %v1124_v12 }
 0x256   :  { %v5323_v23 = vpop.permute.xlu0 %1053 }
 0x257   :  { %7055 = vst [vmem:[#allocation68_spill] sm:$0xff] %v5323_v23  ;;  %v1125_v52 = vmul.f32 %v5323_v23, %v897_v58  ;;  %v900_v23 = vld [vmem:[%s6790_s0 + $0x100] sm:$0xff] }
 0x259   :  { %4035 = vmatmul.mubr.msk.f32.gmra.mxu1 %vm1138_vm3, %v1125_v52 }
 0x25a   :  { %v5330_v63 = vpop.permute.xlu1 %1058 }
 0x25b   :  { %7056 = vst [vmem:[#allocation69_spill] sm:$0xff] %v5330_v63  ;;  %v1126_v49 = vmul.f32 %v5330_v63, %v898_v26  ;;  %v901_v63 = vld [vmem:[%s6790_s0 + $0x108] sm:$0xff] }
 0x25d   :  { %4037 = vmatprep.mubr.msk.f32.mxu1 %vm1138_vm3, %v1126_v49 }
 0x25e   :  { %v5337_v12 = vpop.permute.xlu0 %1063 }
 0x25f   :  { %7057 = vst [vmem:[#allocation70_spill] sm:$0xff] %v5337_v12  ;;  %v1127_v58 = vmul.f32 %v5337_v12, %v899_v45  ;;  %v902_v12 = vld [vmem:[%s6790_s0 + $0x110] sm:$0xff] }
 0x261   :  { %4038 = vmatmul.mubr.msk.f32.gmra.mxu1 %vm1138_vm3, %v1127_v58 }
 0x262   :  { %v5344_v52 = vpop.permute.xlu1 %1068 }
 0x263   :  { %7058 = vst [vmem:[#allocation71_spill] sm:$0xff] %v5344_v52  ;;  %v1128_v26 = vmul.f32 %v5344_v52, %v900_v23  ;;  %v903_v52 = vld [vmem:[%s6790_s0 + $0x118] sm:$0xff] }
 0x265   :  { %4040 = vmatprep.mubr.msk.f32.mxu1 %vm1138_vm3, %v1128_v26 }
 0x266   :  { %v5351_v49 = vpop.permute.xlu0 %1073 }
 0x267   :  { %7059 = vst [vmem:[#allocation72_spill] sm:$0xff] %v5351_v49  ;;  %v1129_v45 = vmul.f32 %v5351_v49, %v901_v63  ;;  %v904_v49 = vld [vmem:[%s6790_s0 + $0x120] sm:$0xff] }
 0x269   :  { %4041 = vmatmul.mubr.msk.f32.gmra.mxu1 %vm1138_vm3, %v1129_v45 }
 0x26a   :  { %v5358_v58 = vpop.permute.xlu1 %1078 }
 0x26b   :  { %7060 = vst [vmem:[#allocation73_spill] sm:$0xff] %v5358_v58  ;;  %v1130_v23 = vmul.f32 %v5358_v58, %v902_v12  ;;  %v905_v58 = vld [vmem:[%s6790_s0 + $0x128] sm:$0xf] }
 0x26d   :  { %4043 = vmatprep.mubr.msk.f32.mxu1 %vm1138_vm3, %v1130_v23 }
 0x26e   :  { %v5365_v26 = vpop.permute.xlu0 %1083 }
 0x26f   :  { %7061 = vst [vmem:[#allocation74_spill] sm:$0xff] %v5365_v26  ;;  %v1131_v63 = vmul.f32 %v5365_v26, %v903_v52 }
 0x271   :  { %4044 = vmatmul.mubr.msk.f32.gmra.mxu1 %vm1138_vm3, %v1131_v63 }
 0x272   :  { %v5372_v45 = vpop.permute.xlu1 %1088 }
 0x273   :  { %7062 = vst [vmem:[#allocation75_spill] sm:$0xff] %v5372_v45  ;;  %v1132_v12 = vmul.f32 %v5372_v45, %v904_v49 }
 0x275   :  { %4046 = vmatprep.mubr.msk.f32.mxu1 %vm1138_vm3, %v1132_v12 }
 0x276   :  { %v5379_v23 = vpop.permute.xlu0 %1093 }
 0x277   :  { %7063 = vst [vmem:[#allocation76_spill] sm:$0xff] %v5379_v23  ;;  %v1133_v52 = vmul.f32 %v5379_v23, %v905_v58 }
 0x279   :  { %4047 = vmatmul.mubr.msk.f32.gmra.mxu1 %vm1138_vm3, %v1133_v52 }
 0x27a   :  { %4055 = vmatprep.mubr.msk.bf16.mxu1 %vm4688_vm1, %v7025_v41 }
 0x2aa   :  { %v5385_v63 = vpop.f32.mrf.mxu1 }
 0x2ac   :  { %v5387_v26 = vpop.f32.mrf.mxu1 }
 0x2b1   :  { %v5389_v49 = vpop.f32.mrf.mxu1 }
 0x2b2   :  { %7064 = vst [vmem:[#allocation77_spill] sm:$0xff] %v5389_v49 }
 0x2b3   :  { %v5391_v45 = vpop.f32.mrf.mxu1 }
 0x2b4   :  { %7065 = vst [vmem:[#allocation78_spill] sm:$0xff] %v5391_v45 }
 0x2b9   :  { %v5393_v59 = vpop.f32.mrf.mxu1 }
 0x2ba   :  { %7066 = vst [vmem:[#allocation79_spill] sm:$0xff] %v5393_v59 }
 0x2bb   :  { %v5395_v12 = vpop.f32.mrf.mxu1 }
 0x2bc   :  { %7067 = vst [vmem:[#allocation80_spill] sm:$0xff] %v5395_v12 }
 0x2c1   :  { %v5397_v53 = vpop.f32.mrf.mxu1 }
 0x2c2   :  { %7068 = vst [vmem:[#allocation81_spill] sm:$0xff] %v5397_v53 }
 0x2c3   :  { %v5399_v58 = vpop.f32.mrf.mxu1 }
 0x2c4   :  { %7069 = vst [vmem:[#allocation82_spill] sm:$0xff] %v5399_v58 }
 0x2c9   :  { %v5401_v52 = vpop.f32.mrf.mxu1 }
 0x2ca   :  { %7070 = vst [vmem:[#allocation83_spill] sm:$0xff] %v5401_v52 }
 0x2cb   :  { %v5403_v23 = vpop.f32.mrf.mxu1 }
 0x2cc   :  { %7071 = vst [vmem:[#allocation84_spill] sm:$0xff] %v5403_v23  ;;  %v1512_v42 = vpack.c.bf16 %v5401_v52, %v5403_v23 }
 0x2d1   :  { %v5405_v61 = vpop.f32.mrf.mxu1 }
 0x2d2   :  { %7072 = vst [vmem:[#allocation85_spill] sm:$0xff] %v5405_v61 }
 0x2d3   :  { %v5407_v38 = vpop.f32.mrf.mxu1 }
 0x2d4   :  { %7073 = vst [vmem:[#allocation86_spill] sm:$0xff] %v5407_v38  ;;  %v1513_v54 = vpack.c.bf16 %v5405_v61, %v5407_v38 }
 0x2d9   :  { %v5409_v44 = vpop.f32.mrf.mxu1 }
 0x2da   :  { %7074 = vst [vmem:[#allocation87_spill] sm:$0xff] %v5409_v44 }
 0x2db   :  { %v5411_v0 = vpop.f32.mrf.mxu1 }
 0x2dc   :  { %7075 = vst [vmem:[#allocation88_spill] sm:$0xff] %v5411_v0  ;;  %v1514_v3 = vpack.c.bf16 %v5409_v44, %v5411_v0 }
 0x2e1   :  { %v5413_v56 = vpop.f32.mrf.mxu1 }
 0x2e2   :  { %7076 = vst [vmem:[#allocation89_spill] sm:$0xff] %v5413_v56 }
 0x2e3   :  { %v5415_v40 = vpop.f32.mrf.mxu1 }
 0x2e4   :  { %7077 = vst [vmem:[#allocation90_spill] sm:$0xff] %v5415_v40  ;;  %v1515_v5 = vpack.c.bf16 %v5413_v56, %v5415_v40 }
 0x2e6   :  { %1531 = vmatpush1.bf16.msra.mxu0 %v1515_v5  ;;  %v1511_v5 = vpack.c.bf16 %v5397_v53, %v5399_v58 }
 0x2e7   :  { %1532 = vmatprep.subr.bf16.mxu0 %v7078_v1 }
 0x2e9   :  { %v5431_v56 = vpop.f32.mrf.mxu1 }
 0x2ea   :  { %1533 = vmatpush1.bf16.msra.mxu0 %v1514_v3  ;;  %v1510_v3 = vpack.c.bf16 %v5393_v59, %v5395_v12 }
 0x2eb   :  { %1534 = vmatprep.subr.bf16.mxu0 %v7078_v1 }
 0x2ee   :  { %1535 = vmatpush1.bf16.msra.mxu0 %v1513_v54  ;;  %v5436_v54 = vpop.f32.mrf.mxu1 }
 0x2ef   :  { %1536 = vmatprep.subr.bf16.mxu0 %v7078_v1 }
 0x2f1   :  { %v5441_v40 = vpop.f32.mrf.mxu1 }
 0x2f2   :  { %1537 = vmatpush1.bf16.msra.mxu0 %v1512_v42  ;;  %v1509_v42 = vpack.c.bf16 %v5389_v49, %v5391_v45 }
 0x2f3   :  { %1538 = vmatprep.subr.bf16.mxu0 %v7078_v1  ;;  %v5446_v44 = vpop.f32.mrf.mxu1 }
 0x2f6   :  { %1539 = vmatpush1.bf16.msra.mxu0 %v1511_v5  ;;  %v1508_v5 = vpack.c.bf16 %v5385_v63, %v5387_v26 }
 0x2f7   :  { %1540 = vmatprep.subr.bf16.mxu0 %v7078_v1 }
 0x2f9   :  { %v5448_v0 = vpop.f32.mrf.mxu1 }
 0x2fa   :  { %1541 = vmatpush1.bf16.msra.mxu0 %v1510_v3 }
 0x2fb   :  { %1542 = vmatprep.subr.bf16.mxu0 %v7078_v1  ;;  %v5451_v3 = vpop.f32.mrf.mxu1 }
 0x2fe   :  { %1543 = vmatpush1.bf16.msra.mxu0 %v1509_v42 }
 0x2ff   :  { %1544 = vmatprep.subr.bf16.mxu0 %v7078_v1 }
 0x301   :  { %v5453_v61 = vpop.f32.mrf.mxu1 }
 0x302   :  { %1545 = vmatpush1.bf16.msra.mxu0 %v1508_v5 }
 0x303   :  { %1546 = vmatprep.subr.bf16.mxu0 %v7078_v1  ;;  %v5455_v38 = vpop.f32.mrf.mxu1 }
 0x309   :  { %v5457_v52 = vpop.f32.mrf.mxu1 }
 0x30a   :  { %7079 = vst [vmem:[#allocation91_spill] sm:$0xff] %v5457_v52 }
 0x30b   :  { %v5459_v42 = vpop.f32.mrf.mxu1 }
 0x311   :  { %v5461_v23 = vpop.f32.mrf.mxu1 }
 0x312   :  { %7080 = vst [vmem:[#allocation92_spill] sm:$0xff] %v5461_v23 }
 0x313   :  { %v5463_v53 = vpop.f32.mrf.mxu1 }
 0x314   :  { %7081 = vst [vmem:[#allocation93_spill] sm:$0xff] %v5463_v53  ;;  %v1521_v48 = vpack.c.bf16 %v5461_v23, %v5463_v53 }
 0x319   :  { %v5465_v58 = vpop.f32.mrf.mxu1 }
 0x31a   :  { %7082 = vst [vmem:[#allocation94_spill] sm:$0xff] %v5465_v58 }
 0x31b   :  { %v5467_v5 = vpop.f32.mrf.mxu1 }
 0x31c   :  { %7083 = vst [vmem:[#allocation95_spill] sm:$0xff] %v5467_v5  ;;  %v1522_v49 = vpack.c.bf16 %v5465_v58, %v5467_v5 }
 0x321   :  { %v5469_v59 = vpop.f32.mrf.mxu1 }
 0x322   :  { %7084 = vst [vmem:[#allocation96_spill] sm:$0xff] %v5469_v59 }
 0x323   :  { %v5471_v12 = vpop.f32.mrf.mxu1 }
 0x324   :  { %7085 = vst [vmem:[#allocation97_spill] sm:$0xff] %v5471_v12  ;;  %v1523_v50 = vpack.c.bf16 %v5469_v59, %v5471_v12  ;;  %v1520_v59 = vpack.c.bf16 %v5457_v52, %v5459_v42  ;;  %v1516_v52 = vpack.c.bf16 %v5431_v56, %v5436_v54 }
 0x326   :  { %1547 = vmatpush2.bf16.msra.mxu0 %v1523_v50 }
 0x327   :  { %1548 = vmatprep.subr.bf16.mxu0 %v7078_v1 }
 0x329   :  { %v5481_v45 = vpop.f32.mrf.mxu1 }
 0x32a   :  { %1549 = vmatpush2.bf16.msra.mxu0 %v1522_v49  ;;  %v1519_v49 = vpack.c.bf16 %v5453_v61, %v5455_v38 }
 0x32b   :  { %1550 = vmatprep.subr.bf16.mxu0 %v7078_v1  ;;  %v5486_v50 = vpop.f32.mrf.mxu1 }
 0x32e   :  { %1551 = vmatpush2.bf16.msra.mxu0 %v1521_v48  ;;  %v1518_v48 = vpack.c.bf16 %v5448_v0, %v5451_v3 }
 0x32f   :  { %1552 = vmatprep.subr.bf16.mxu0 %v7078_v1 }
 0x331   :  { %v5488_v12 = vpop.f32.mrf.mxu1 }
 0x332   :  { %1553 = vmatpush2.bf16.msra.mxu0 %v1520_v59  ;;  %v1517_v59 = vpack.c.bf16 %v5441_v40, %v5446_v44 }
 0x333   :  { %1554 = vmatprep.subr.bf16.mxu0 %v7078_v1  ;;  %v5493_v58 = vpop.f32.mrf.mxu1 }
 0x336   :  { %1555 = vmatpush2.bf16.msra.mxu0 %v1519_v49 }
 0x337   :  { %1556 = vmatprep.subr.bf16.mxu0 %v7078_v1 }
 0x339   :  { %v5498_v5 = vpop.f32.mrf.mxu1 }
 0x33a   :  { %1557 = vmatpush2.bf16.msra.mxu0 %v1518_v48  ;;  %v1525_v48 = vpack.c.bf16 %v5488_v12, %v5493_v58 }
 0x33b   :  { %v5500_v23 = vpop.f32.mrf.mxu1  ;;  %1558 = vmatprep.subr.bf16.mxu0 %v7078_v1 }
 0x33c   :  { %v1526_v49 = vpack.c.bf16 %v5498_v5, %v5500_v23 }
 0x33e   :  { %1559 = vmatpush2.bf16.msra.mxu0 %v1517_v59  ;;  %v1528_v53 = vsel %vm418_vm0, %v1526_v49, 0  ;;  %v1524_v59 = vpack.c.bf16 %v5481_v45, %v5486_v50  ;;  %v2072_v49 = vld [vmem:[%s6794_s4 + $0x68] sm:$0xff] }
 0x33f   :  { %4050 = vmatpush3.bf16.msra.mxu1 %v1528_v53  ;;  %1560 = vmatprep.subr.bf16.mxu0 %v7078_v1  ;;  %v2074_v53 = vld [vmem:[%s6794_s4 + $0x78] sm:$0xff] }
 0x340   :  { %4051 = vmatprep.subr.bf16.mxu1 %v7025_v41 }
 0x342   :  { %1561 = vmatpush2.bf16.msra.mxu0 %v1516_v52  ;;  %v2073_v52 = vld [vmem:[%s6794_s4 + $0x70] sm:$0xff] }
 0x343   :  { %4052 = vmatpush3.bf16.msra.mxu1 %v1525_v48  ;;  %4131 = vmatprep.subr.mxu0 %v2074_v53  ;;  %v2071_v48 = vld [vmem:[%s6794_s4 + $0x60] sm:$0xff] }
 0x344   :  { %4053 = vmatprep.subr.bf16.mxu1 %v7025_v41 }
 0x345   :  { %1563 = vmatmul.mubr.bf16.vlgmr.msra.gmra.mxu0 %v4782_v16 }
 0x346   :  { %1570 = vmatprep.mubr.bf16.mxu0 %v4785_v20  ;;  %4132 = vmatpush3.msra.mxu0 %v2074_v53  ;;  %v2069_v53 = vld [vmem:[%s6794_s4 + $0x50] sm:$0xff] }
 0x347   :  { %4054 = vmatpush3.bf16.msra.mxu1 %v1524_v59  ;;  %4133 = vmatprep.subr.mxu0 %v2073_v52  ;;  %v2070_v59 = vld [vmem:[%s6794_s4 + $0x58] sm:$0xff] }
 0x348   :  { %2352 = vmatprep.subr.bf16.mxu1 %v7078_v1  ;;  %4134 = vmatpush3.msra.mxu0 %v2073_v52  ;;  %v2068_v52 = vld [vmem:[%s6794_s4 + $0x48] sm:$0xff] }
 0x349   :  { %4135 = vmatprep.subr.mxu0 %v2072_v49 }
 0x34a   :  { %4056 = vmatmul.mubr.msk.bf16.vlgmr.msra.gmra.mxu1 %vm360_vm2, %v4821_v6  ;;  %4136 = vmatpush3.msra.mxu0 %v2072_v49  ;;  %v2067_v49 = vld [vmem:[%s6794_s4 + $0x40] sm:$0xff] }
 0x34b   :  { %4059 = vmatprep.mubr.msk.bf16.mxu1 %vm4688_vm1, %v7025_v41  ;;  %4137 = vmatprep.subr.mxu0 %v2071_v48 }
 0x34c   :  { %4138 = vmatpush3.msra.mxu0 %v2071_v48  ;;  %v2066_v48 = vld [vmem:[%s6794_s4 + $0x38] sm:$0xff] }
 0x34d   :  { %1571 = vmatmul.mubr.bf16.gmra.mxu0 %v4788_v24  ;;  %4139 = vmatprep.subr.mxu0 %v2070_v59 }
 0x34e   :  { %1578 = vmatprep.mubr.bf16.mxu0 %v4790_v28  ;;  %4140 = vmatpush3.msra.mxu0 %v2070_v59  ;;  %v2065_v59 = vld [vmem:[%s6794_s4 + $0x30] sm:$0xff] }
 0x34f   :  { %4141 = vmatprep.subr.mxu0 %v2069_v53 }
 0x350   :  { %4142 = vmatpush3.msra.mxu0 %v2069_v53  ;;  %v2064_v53 = vld [vmem:[%s6794_s4 + $0x28] sm:$0xff] }
 0x351   :  { %4143 = vmatprep.subr.mxu0 %v2068_v52 }
 0x352   :  { %4060 = vmatmul.mubr.msk.bf16.gmra.mxu1 %vm360_vm2, %v4831_v8  ;;  %4144 = vmatpush3.msra.mxu0 %v2068_v52  ;;  %v2063_v52 = vld [vmem:[%s6794_s4 + $0x20] sm:$0xff] }
 0x353   :  { %4063 = vmatprep.mubr.msk.bf16.mxu1 %vm4688_vm1, %v7025_v41  ;;  %4145 = vmatprep.subr.mxu0 %v2067_v49 }
 0x354   :  { %4146 = vmatpush3.msra.mxu0 %v2067_v49  ;;  %v2062_v49 = vld [vmem:[%s6794_s4 + $0x18] sm:$0xff] }
 0x355   :  { %1579 = vmatmul.mubr.bf16.gmra.mxu0 %v4792_v32  ;;  %4147 = vmatprep.subr.mxu0 %v2066_v48 }
 0x356   :  { %1586 = vmatprep.mubr.bf16.mxu0 %v4796_v35  ;;  %4148 = vmatpush3.msra.mxu0 %v2066_v48  ;;  %v2061_v48 = vld [vmem:[%s6794_s4 + $0x10] sm:$0xff] }
 0x357   :  { %4149 = vmatprep.subr.mxu0 %v2065_v59 }
 0x358   :  { %4150 = vmatpush3.msra.mxu0 %v2065_v59  ;;  %v2060_v59 = vld [vmem:[%s6794_s4 + $0x8] sm:$0xff] }
 0x359   :  { %4151 = vmatprep.subr.mxu0 %v2064_v53 }
 0x35a   :  { %4064 = vmatmul.mubr.msk.bf16.gmra.mxu1 %vm360_vm2, %v4835_v10  ;;  %4152 = vmatpush3.msra.mxu0 %v2064_v53  ;;  %v2059_v53 = vld [vmem:[%s6794_s4] sm:$0xff] }
 0x35b   :  { %4067 = vmatprep.mubr.msk.bf16.mxu1 %vm4688_vm1, %v7025_v41  ;;  %4153 = vmatprep.subr.mxu0 %v2063_v52 }
 0x35c   :  { %4154 = vmatpush3.msra.mxu0 %v2063_v52  ;;  %v7086_v52 = vld [vmem:[#allocation25_spill] sm:$0xff] }
 0x35d   :  { %1587 = vmatmul.mubr.bf16.gmra.mxu0 %v4798_v39  ;;  %4155 = vmatprep.subr.mxu0 %v2062_v49 }
 0x35e   :  { %1594 = vmatprep.mubr.bf16.mxu0 %v4800_v43  ;;  %4156 = vmatpush3.msra.mxu0 %v2062_v49  ;;  %v7087_v49 = vld [vmem:[#allocation12_spill] sm:$0xff] }
 0x35f   :  { %4157 = vmatprep.subr.mxu0 %v2061_v48 }
 0x360   :  { %4158 = vmatpush3.msra.mxu0 %v2061_v48  ;;  %v7088_v48 = vld [vmem:[#allocation24_spill] sm:$0xff] }
 0x361   :  { %4159 = vmatprep.subr.mxu0 %v2060_v59 }
 0x362   :  { %4068 = vmatmul.mubr.msk.bf16.gmra.mxu1 %vm360_vm2, %v4845_v13  ;;  %4160 = vmatpush3.msra.mxu0 %v2060_v59  ;;  %v7089_v59 = vld [vmem:[#allocation27_spill] sm:$0xff] }
 0x363   :  { %4071 = vmatprep.mubr.msk.bf16.mxu1 %vm4688_vm1, %v7025_v41  ;;  %4161 = vmatprep.subr.mxu0 %v2059_v53 }
 0x364   :  { %4162 = vmatpush3.msra.mxu0 %v2059_v53  ;;  %v7090_v53 = vld [vmem:[#allocation14_spill] sm:$0xff] }
 0x365   :  { %1595 = vmatmul.mubr.bf16.gmra.mxu0 %v4802_v47  ;;  %4220 = vmatprep.subr.bf16.mxu0 %v7025_v41 }
 0x366   :  { %1602 = vmatprep.mubr.bf16.mxu0 %v4806_v51 }
 0x36a   :  { %4072 = vmatmul.mubr.msk.bf16.gmra.mxu1 %vm360_vm2, %v4850_v15 }
 0x36b   :  { %4075 = vmatprep.mubr.msk.bf16.mxu1 %vm4688_vm1, %v7025_v41 }
 0x36d   :  { %1603 = vmatmul.mubr.bf16.gmra.mxu0 %v4808_v55 }
 0x36e   :  { %1610 = vmatprep.mubr.bf16.mxu0 %v4810_v57 }
 0x372   :  { %4076 = vmatmul.mubr.msk.bf16.gmra.mxu1 %vm360_vm2, %v4860_v18 }
 0x373   :  { %4079 = vmatprep.mubr.msk.bf16.mxu1 %vm4688_vm1, %v7025_v41 }
 0x375   :  { %1611 = vmatmul.mubr.bf16.gmra.mxu0 %v4812_v60 }
 0x376   :  { %1618 = vmatprep.mubr.bf16.mxu0 %v4816_v62 }
 0x37a   :  { %4080 = vmatmul.mubr.msk.bf16.gmra.mxu1 %vm360_vm2, %v4864_v21 }
 0x37b   :  { %4083 = vmatprep.mubr.msk.bf16.mxu1 %vm4688_vm1, %v7025_v41 }
 0x37d   :  { %1619 = vmatmul.mubr.bf16.gmra.mxu0 %v4819_v4 }
 0x37e   :  { %1626 = vmatprep.mubr.bf16.mxu0 %v4825_v7 }
 0x382   :  { %4084 = vmatmul.mubr.msk.bf16.gmra.mxu1 %vm360_vm2, %v4872_v22  ;;  %v7106_v22 = vld [vmem:[#allocation77_spill] sm:$0xff] }
 0x383   :  { %4087 = vmatprep.mubr.msk.bf16.mxu1 %vm4688_vm1, %v7025_v41 }
 0x385   :  { %1627 = vmatmul.mubr.bf16.gmra.mxu0 %v4876_v25 }
 0x386   :  { %1634 = vmatprep.mubr.bf16.mxu0 %v4833_v9 }
 0x38a   :  { %4088 = vmatmul.mubr.msk.bf16.gmra.mxu1 %vm360_vm2, %v4888_v29 }
 0x38b   :  { %4091 = vmatprep.mubr.msk.bf16.mxu1 %vm4688_vm1, %v7025_v41 }
 0x38d   :  { %1635 = vmatmul.mubr.bf16.gmra.mxu0 %v4886_v27 }
 0x38e   :  { %1642 = vmatprep.mubr.bf16.mxu0 %v4839_v11 }
 0x392   :  { %4092 = vmatmul.mubr.msk.bf16.gmra.mxu1 %vm360_vm2, %v4896_v30 }
 0x393   :  { %4095 = vmatprep.mubr.msk.bf16.mxu1 %vm4688_vm1, %v7025_v41 }
 0x395   :  { %1643 = vmatmul.mubr.bf16.gmra.mxu0 %v4898_v31 }
 0x396   :  { %1650 = vmatprep.mubr.bf16.mxu0 %v4848_v14 }
 0x39a   :  { %4096 = vmatmul.mubr.msk.bf16.gmra.mxu1 %vm360_vm2, %v4906_v2 }
 0x39b   :  { %4099 = vmatprep.mubr.msk.bf16.mxu1 %vm4688_vm1, %v7025_v41 }
 0x39d   :  { %1651 = vmatmul.mubr.bf16.gmra.mxu0 %v4908_v33 }
 0x39e   :  { %1658 = vmatprep.mubr.bf16.mxu0 %v4854_v17 }
 0x3a2   :  { %4100 = vmatmul.mubr.msk.bf16.gmra.mxu1 %vm360_vm2, %v4915_v34 }
 0x3a3   :  { %4103 = vmatprep.mubr.msk.bf16.mxu1 %vm4688_vm1, %v7025_v41 }
 0x3a5   :  { %1659 = vmatmul.mubr.bf16.gmra.mxu0 %v4918_v36 }
 0x3a6   :  { %1666 = vmatprep.mubr.bf16.mxu0 %v4862_v19  ;;  %v7091_v19 = vld [vmem:[#allocation26_spill] sm:$0xff] }
 0x3aa   :  { %4104 = vmatmul.mubr.msk.bf16.gmra.mxu1 %vm360_vm2, %v4920_v37  ;;  %v7092_v37 = vld [vmem:[#allocation29_spill] sm:$0xff] }
 0x3ab   :  { %4107 = vmatprep.mubr.msk.bf16.mxu1 %vm4688_vm1, %v7025_v41 }
 0x3ad   :  { %1667 = vmatmul.mubr.bf16.gmra.mxu0 %v7086_v52  ;;  %v7093_v52 = vld [vmem:[#allocation30_spill] sm:$0xff] }
 0x3ae   :  { %1674 = vmatprep.mubr.bf16.mxu0 %v7087_v49  ;;  %v7094_v49 = vld [vmem:[#allocation28_spill] sm:$0xff] }
 0x3b2   :  { %4108 = vmatmul.mubr.msk.bf16.gmra.mxu1 %vm360_vm2, %v7088_v48  ;;  %v7095_v48 = vld [vmem:[#allocation31_spill] sm:$0xff] }
 0x3b3   :  { %4111 = vmatprep.mubr.msk.bf16.mxu1 %vm4688_vm1, %v7025_v41 }
 0x3b5   :  { %1675 = vmatmul.mubr.bf16.gmra.mxu0 %v7089_v59  ;;  %v7096_v59 = vld [vmem:[#allocation32_spill] sm:$0xff] }
 0x3b6   :  { %1682 = vmatprep.mubr.bf16.mxu0 %v7090_v53  ;;  %v7097_v53 = vld [vmem:[#allocation36_spill] sm:$0xff] }
 0x3ba   :  { %4112 = vmatmul.mubr.msk.bf16.gmra.mxu1 %vm360_vm2, %v7091_v19  ;;  %v7098_v19 = vld [vmem:[#allocation33_spill] sm:$0xff] }
 0x3bb   :  { %4115 = vmatprep.mubr.msk.bf16.mxu1 %vm4688_vm1, %v7025_v41 }
 0x3bd   :  { %1683 = vmatmul.mubr.bf16.gmra.mxu0 %v7092_v37  ;;  %v7099_v37 = vld [vmem:[#allocation34_spill] sm:$0xff] }
 0x3be   :  { %1690 = vmatprep.mubr.bf16.mxu0 %v7093_v52  ;;  %v7100_v52 = vld [vmem:[#allocation37_spill] sm:$0xff] }
 0x3c2   :  { %4116 = vmatmul.mubr.msk.bf16.gmra.mxu1 %vm360_vm2, %v7094_v49  ;;  %v7101_v49 = vld [vmem:[#allocation35_spill] sm:$0xff] }
 0x3c3   :  { %4119 = vmatprep.mubr.msk.bf16.mxu1 %vm4688_vm1, %v7025_v41 }
 0x3c5   :  { %1691 = vmatmul.mubr.bf16.gmra.mxu0 %v7095_v48  ;;  %v7102_v48 = vld [vmem:[#allocation38_spill] sm:$0xff] }
 0x3c6   :  { %1698 = vmatprep.mubr.bf16.mxu0 %v7096_v59  ;;  %v7103_v59 = vld [vmem:[#allocation5_spill] sm:$0xff] }
 0x3ca   :  { %4120 = vmatmul.mubr.msk.bf16.gmra.mxu1 %vm360_vm2, %v7097_v53 }
 0x3cb   :  { %4123 = vmatprep.mubr.msk.bf16.mxu1 %vm4688_vm1, %v7025_v41 }
 0x3cd   :  { %1699 = vmatmul.mubr.bf16.gmra.mxu0 %v7098_v19 }
 0x3ce   :  { %1706 = vmatprep.mubr.bf16.mxu0 %v7099_v37 }
 0x3d2   :  { %4124 = vmatmul.mubr.msk.bf16.gmra.mxu1 %vm360_vm2, %v7100_v52  ;;  %v5683_v52 = vld [vmem:[%s6793_s3] ss:$0 sm:$0xff] }
 0x3d3   :  { %4127 = vmatprep.mubr.msk.bf16.mxu1 %vm4688_vm1, %v7025_v41 }
 0x3d5   :  { %1707 = vmatmul.mubr.bf16.gmra.mxu0 %v7101_v49 }
 0x3da   :  { %4128 = vmatmul.mubr.msk.bf16.gmra.mxu1 %vm360_vm2, %v7102_v48 }
 0x3db   :  { %2384 = vmatprep.mubr.bf16.mxu1 %v7103_v59 }
 0x405   :  { %v1564_v53 = vpop.f32.mrf.mxu0 }
 0x406   :  { %v1565_v34 = vadd.f32 %v1564_v53, %v5387_v26 }
 0x407   :  { %v1566_v36 = vpop.f32.mrf.mxu0 }
 0x409   :  { %v1567_v19 = vpop.f32.mrf.mxu0 }
 0x40a   :  { %v1749_v17 = vpop.f32.mrf.mxu1  ;;  %v1568_v49 = vadd.f32 %v5385_v63, %v1567_v19 }
 0x40b   :  { %v1750_v37 = vadd.f32 %v1749_v17, %v1565_v34  ;;  %v1569_v33 = vpop.f32.mrf.mxu0  ;;  %v7104_v17 = vld [vmem:[#allocation78_spill] sm:$0xff]  ;;  %v7105_v34 = vld [vmem:[#allocation40_spill] sm:$0xff] }
 0x40c   :  { %v4057_v2 = vpop.f32.mrf.mxu1 }
 0x40d   :  { %v1900_v48 = vmul.f32 %v1750_v37, %v5118_v46  ;;  %v1572_v14 = vpop.f32.mrf.mxu0 }
 0x40e   :  { %v1752_v59 = vpop.f32.mrf.mxu1  ;;  %v1573_v33 = vadd.f32 %v1572_v14, %v7104_v17 }
 0x40f   :  { %v1945_v36 = vadd.f32 %v5683_v52, %v1900_v48  ;;  %v1753_v31 = vadd.f32 %v1752_v59, %v1568_v49  ;;  %v1574_v26 = vpop.f32.mrf.mxu0  ;;  %v7107_v49 = vld [vmem:[#allocation41_spill] sm:$0xff] }
 0x410   :  { %v4058_v53 = vpop.f32.mrf.mxu1 }
 0x411   :  { %v1983_v30 = vmax.f32 %v1945_v36, 0.0  ;;  %v1901_v11 = vmul.f32 %v1753_v31, %v7105_v34  ;;  %v1575_v27 = vpop.f32.mrf.mxu0 }
 0x412   :  { %v1757_v29 = vpop.f32.mrf.mxu1  ;;  %v1576_v48 = vadd.f32 %v7106_v22, %v1575_v27 }
 0x413   :  { %v1946_v2 = vadd.f32 %v5683_v52, %v1901_v11  ;;  %v1758_v9 = vadd.f32 %v1757_v29, %v1573_v33  ;;  %v1577_v19 = vpop.f32.mrf.mxu0  ;;  %v2021_v37 = vmul.f32 %v1983_v30, %v5118_v46  ;;  %v7108_v33 = vld [vmem:[#allocation80_spill] sm:$0xff]  ;;  %v7109_v30 = vld [vmem:[#allocation42_spill] sm:$0xff] }
 0x414   :  { %v4061_v63 = vpop.f32.mrf.mxu1 }
 0x415   :  { %v1984_v25 = vmax.f32 %v1946_v2, 0.0  ;;  %v1902_v59 = vmul.f32 %v1758_v9, %v7107_v49  ;;  %v1580_v26 = vpop.f32.mrf.mxu0  ;;  %4163 = vmatprep.mubr.f32.mxu0 %v2021_v37 }
 0x416   :  { %v1760_v36 = vpop.f32.mrf.mxu1  ;;  %v1581_v19 = vadd.f32 %v1580_v26, %v7108_v33 }
 0x417   :  { %v2022_v14 = vmul.f32 %v1984_v25, %v7105_v34  ;;  %v1947_v31 = vadd.f32 %v5683_v52, %v1902_v59  ;;  %v1761_v53 = vadd.f32 %v1760_v36, %v1576_v48  ;;  %v1582_v17 = vpop.f32.mrf.mxu0  ;;  %v7110_v59 = vld [vmem:[#allocation79_spill] sm:$0xff] }
 0x418   :  { %v4062_v11 = vpop.f32.mrf.mxu1  ;;  %v7111_v36 = vld [vmem:[#allocation43_spill] sm:$0xff] }
 0x419   :  { %v1985_v29 = vmax.f32 %v1947_v31, 0.0  ;;  %v1903_v63 = vmul.f32 %v1761_v53, %v7109_v30  ;;  %v1583_v2 = vpop.f32.mrf.mxu0  ;;  %4164 = vmatmul.mubr.f32.vlgmr.msra.gmra.mxu0 %v2022_v14 }
 0x41a   :  { %v1765_v22 = vpop.f32.mrf.mxu1  ;;  %v1584_v48 = vadd.f32 %v7110_v59, %v1583_v2 }
 0x41b   :  { %v1948_v9 = vadd.f32 %v5683_v52, %v1903_v63  ;;  %v1766_v27 = vadd.f32 %v1765_v22, %v1581_v19  ;;  %v1585_v37 = vpop.f32.mrf.mxu0  ;;  %v2023_v46 = vmul.f32 %v1985_v29, %v7107_v49  ;;  %v7112_v22 = vld [vmem:[#allocation82_spill] sm:$0xff]  ;;  %v7113_v29 = vld [vmem:[#allocation44_spill] sm:$0xff] }
 0x41c   :  { %v4065_v25 = vpop.f32.mrf.mxu1 }
 0x41d   :  { %v1986_v34 = vmax.f32 %v1948_v9, 0.0  ;;  %v1904_v17 = vmul.f32 %v1766_v27, %v7111_v36  ;;  %v1588_v31 = vpop.f32.mrf.mxu0  ;;  %4166 = vmatprep.mubr.f32.mxu0 %v2023_v46 }
 0x41e   :  { %v1768_v26 = vpop.f32.mrf.mxu1  ;;  %v1589_v37 = vadd.f32 %v1588_v31, %v7112_v22 }
 0x41f   :  { %v2024_v53 = vmul.f32 %v1986_v34, %v7109_v30  ;;  %v1949_v14 = vadd.f32 %v5683_v52, %v1904_v17  ;;  %v1769_v11 = vadd.f32 %v1768_v26, %v1584_v48  ;;  %v1590_v33 = vpop.f32.mrf.mxu0  ;;  %v7114_v17 = vld [vmem:[#allocation81_spill] sm:$0xff] }
 0x420   :  { %v4066_v63 = vpop.f32.mrf.mxu1  ;;  %v7115_v26 = vld [vmem:[#allocation45_spill] sm:$0xff] }
 0x421   :  { %v1987_v19 = vmax.f32 %v1949_v14, 0.0  ;;  %v1905_v25 = vmul.f32 %v1769_v11, %v7113_v29  ;;  %v1591_v9 = vpop.f32.mrf.mxu0  ;;  %4167 = vmatmul.mubr.f32.gmra.mxu0 %v2024_v53 }
 0x422   :  { %v1773_v2 = vpop.f32.mrf.mxu1  ;;  %v1592_v48 = vadd.f32 %v7114_v17, %v1591_v9 }
 0x423   :  { %v1950_v27 = vadd.f32 %v5683_v52, %v1905_v25  ;;  %v1774_v59 = vadd.f32 %v1773_v2, %v1589_v37  ;;  %v1593_v46 = vpop.f32.mrf.mxu0  ;;  %v2025_v49 = vmul.f32 %v1987_v19, %v7111_v36  ;;  %v7116_v2 = vld [vmem:[#allocation84_spill] sm:$0xff]  ;;  %v7117_v19 = vld [vmem:[#allocation46_spill] sm:$0xff] }
 0x424   :  { %v4069_v34 = vpop.f32.mrf.mxu1 }
 0x425   :  { %v1988_v30 = vmax.f32 %v1950_v27, 0.0  ;;  %v1906_v33 = vmul.f32 %v1774_v59, %v7115_v26  ;;  %v1596_v14 = vpop.f32.mrf.mxu0  ;;  %4169 = vmatprep.mubr.f32.mxu0 %v2025_v49 }
 0x426   :  { %v1776_v31 = vpop.f32.mrf.mxu1  ;;  %v1597_v46 = vadd.f32 %v1596_v14, %v7116_v2 }
 0x427   :  { %v2026_v11 = vmul.f32 %v1988_v30, %v7113_v29  ;;  %v1951_v53 = vadd.f32 %v5683_v52, %v1906_v33  ;;  %v1777_v63 = vadd.f32 %v1776_v31, %v1592_v48  ;;  %v1598_v22 = vpop.f32.mrf.mxu0  ;;  %v7118_v33 = vld [vmem:[#allocation83_spill] sm:$0xff] }
 0x428   :  { %v4070_v25 = vpop.f32.mrf.mxu1  ;;  %v7119_v31 = vld [vmem:[#allocation47_spill] sm:$0xff] }
 0x429   :  { %v1989_v37 = vmax.f32 %v1951_v53, 0.0  ;;  %v1907_v34 = vmul.f32 %v1777_v63, %v7117_v19  ;;  %v1599_v27 = vpop.f32.mrf.mxu0  ;;  %4170 = vmatmul.mubr.f32.gmra.mxu0 %v2026_v11 }
 0x42a   :  { %v1781_v9 = vpop.f32.mrf.mxu1  ;;  %v1600_v48 = vadd.f32 %v7118_v33, %v1599_v27 }
 0x42b   :  { %v1952_v59 = vadd.f32 %v5683_v52, %v1907_v34  ;;  %v1782_v17 = vadd.f32 %v1781_v9, %v1597_v46  ;;  %v1601_v49 = vpop.f32.mrf.mxu0  ;;  %v2027_v36 = vmul.f32 %v1989_v37, %v7115_v26  ;;  %v7120_v9 = vld [vmem:[#allocation86_spill] sm:$0xff]  ;;  %v7121_v37 = vld [vmem:[#allocation48_spill] sm:$0xff] }
 0x42c   :  { %v4073_v30 = vpop.f32.mrf.mxu1 }
 0x42d   :  { %v1990_v29 = vmax.f32 %v1952_v59, 0.0  ;;  %v1908_v22 = vmul.f32 %v1782_v17, %v7119_v31  ;;  %v1604_v53 = vpop.f32.mrf.mxu0  ;;  %4172 = vmatprep.mubr.f32.mxu0 %v2027_v36 }
 0x42e   :  { %v1784_v14 = vpop.f32.mrf.mxu1  ;;  %v1605_v49 = vadd.f32 %v1604_v53, %v7120_v9 }
 0x42f   :  { %v2028_v63 = vmul.f32 %v1990_v29, %v7117_v19  ;;  %v1953_v11 = vadd.f32 %v5683_v52, %v1908_v22  ;;  %v1785_v25 = vadd.f32 %v1784_v14, %v1600_v48  ;;  %v1606_v2 = vpop.f32.mrf.mxu0  ;;  %v7122_v22 = vld [vmem:[#allocation85_spill] sm:$0xff] }
 0x430   :  { %v4074_v34 = vpop.f32.mrf.mxu1  ;;  %v7123_v14 = vld [vmem:[#allocation49_spill] sm:$0xff] }
 0x431   :  { %v1991_v46 = vmax.f32 %v1953_v11, 0.0  ;;  %v1909_v30 = vmul.f32 %v1785_v25, %v7121_v37  ;;  %v1607_v59 = vpop.f32.mrf.mxu0  ;;  %4173 = vmatmul.mubr.f32.gmra.mxu0 %v2028_v63 }
 0x432   :  { %v1789_v27 = vpop.f32.mrf.mxu1  ;;  %v1608_v48 = vadd.f32 %v7122_v22, %v1607_v59 }
 0x433   :  { %v1954_v17 = vadd.f32 %v5683_v52, %v1909_v30  ;;  %v1790_v33 = vadd.f32 %v1789_v27, %v1605_v49  ;;  %v1609_v36 = vpop.f32.mrf.mxu0  ;;  %v2029_v26 = vmul.f32 %v1991_v46, %v7119_v31  ;;  %v7124_v27 = vld [vmem:[#allocation88_spill] sm:$0xff]  ;;  %v7125_v46 = vld [vmem:[#allocation50_spill] sm:$0xff] }
 0x434   :  { %v4077_v29 = vpop.f32.mrf.mxu1 }
 0x435   :  { %v1992_v19 = vmax.f32 %v1954_v17, 0.0  ;;  %v1910_v2 = vmul.f32 %v1790_v33, %v7123_v14  ;;  %v1612_v11 = vpop.f32.mrf.mxu0  ;;  %4175 = vmatprep.mubr.f32.mxu0 %v2029_v26 }
 0x436   :  { %v1792_v53 = vpop.f32.mrf.mxu1  ;;  %v1613_v36 = vadd.f32 %v1612_v11, %v7124_v27 }
 0x437   :  { %v2030_v25 = vmul.f32 %v1992_v19, %v7121_v37  ;;  %v1955_v63 = vadd.f32 %v5683_v52, %v1910_v2  ;;  %v1793_v34 = vadd.f32 %v1792_v53, %v1608_v48  ;;  %v1614_v9 = vpop.f32.mrf.mxu0  ;;  %v7126_v2 = vld [vmem:[#allocation87_spill] sm:$0xff] }
 0x438   :  { %v4078_v30 = vpop.f32.mrf.mxu1  ;;  %v7127_v53 = vld [vmem:[#allocation51_spill] sm:$0xff] }
 0x439   :  { %v1993_v49 = vmax.f32 %v1955_v63, 0.0  ;;  %v1911_v29 = vmul.f32 %v1793_v34, %v7125_v46  ;;  %v1615_v17 = vpop.f32.mrf.mxu0  ;;  %4176 = vmatmul.mubr.f32.gmra.mxu0 %v2030_v25 }
 0x43a   :  { %v1797_v59 = vpop.f32.mrf.mxu1  ;;  %v1616_v48 = vadd.f32 %v7126_v2, %v1615_v17 }
 0x43b   :  { %v1956_v33 = vadd.f32 %v5683_v52, %v1911_v29  ;;  %v1798_v22 = vadd.f32 %v1797_v59, %v1613_v36  ;;  %v1617_v26 = vpop.f32.mrf.mxu0  ;;  %v2031_v31 = vmul.f32 %v1993_v49, %v7123_v14  ;;  %v7128_v59 = vld [vmem:[#allocation90_spill] sm:$0xff]  ;;  %v7129_v49 = vld [vmem:[#allocation52_spill] sm:$0xff] }
 0x43c   :  { %v4081_v19 = vpop.f32.mrf.mxu1 }
 0x43d   :  { %v1994_v37 = vmax.f32 %v1956_v33, 0.0  ;;  %v1912_v9 = vmul.f32 %v1798_v22, %v7127_v53  ;;  %v1620_v63 = vpop.f32.mrf.mxu0  ;;  %4178 = vmatprep.mubr.f32.mxu0 %v2031_v31 }
 0x43e   :  { %v1800_v11 = vpop.f32.mrf.mxu1  ;;  %v1621_v26 = vadd.f32 %v1620_v63, %v7128_v59 }
 0x43f   :  { %v2032_v34 = vmul.f32 %v1994_v37, %v7125_v46  ;;  %v1957_v25 = vadd.f32 %v5683_v52, %v1912_v9  ;;  %v1801_v30 = vadd.f32 %v1800_v11, %v1616_v48  ;;  %v1622_v27 = vpop.f32.mrf.mxu0  ;;  %v7130_v9 = vld [vmem:[#allocation89_spill] sm:$0xff] }
 0x440   :  { %v4082_v29 = vpop.f32.mrf.mxu1  ;;  %v7131_v11 = vld [vmem:[#allocation53_spill] sm:$0xff] }
 0x441   :  { %v1995_v36 = vmax.f32 %v1957_v25, 0.0  ;;  %v1913_v19 = vmul.f32 %v1801_v30, %v7129_v49  ;;  %v1623_v33 = vpop.f32.mrf.mxu0  ;;  %4179 = vmatmul.mubr.f32.gmra.mxu0 %v2032_v34 }
 0x442   :  { %v1805_v17 = vpop.f32.mrf.mxu1  ;;  %v1624_v48 = vadd.f32 %v7130_v9, %v1623_v33 }
 0x443   :  { %v1958_v22 = vadd.f32 %v5683_v52, %v1913_v19  ;;  %v1806_v2 = vadd.f32 %v1805_v17, %v1621_v26  ;;  %v1625_v31 = vpop.f32.mrf.mxu0  ;;  %v2033_v14 = vmul.f32 %v1995_v36, %v7127_v53  ;;  %v7132_v36 = vld [vmem:[#allocation54_spill] sm:$0xff] }
 0x444   :  { %v4085_v37 = vpop.f32.mrf.mxu1 }
 0x445   :  { %v1996_v46 = vmax.f32 %v1958_v22, 0.0  ;;  %v1914_v27 = vmul.f32 %v1806_v2, %v7131_v11  ;;  %v1628_v25 = vpop.f32.mrf.mxu0  ;;  %4181 = vmatprep.mubr.f32.mxu0 %v2033_v14 }
 0x446   :  { %v1808_v63 = vpop.f32.mrf.mxu1  ;;  %v1629_v17 = vadd.f32 %v1628_v25, %v5436_v54 }
 0x447   :  { %v2034_v30 = vmul.f32 %v1996_v46, %v7129_v49  ;;  %v1959_v34 = vadd.f32 %v5683_v52, %v1914_v27  ;;  %v1809_v29 = vadd.f32 %v1808_v63, %v1624_v48  ;;  %v1630_v59 = vpop.f32.mrf.mxu0  ;;  %v7133_v27 = vld [vmem:[#allocation55_spill] sm:$0xff] }
 0x448   :  { %v4086_v19 = vpop.f32.mrf.mxu1 }
 0x449   :  { %v1997_v26 = vmax.f32 %v1959_v34, 0.0  ;;  %v1915_v31 = vmul.f32 %v1809_v29, %v7132_v36  ;;  %v1631_v22 = vpop.f32.mrf.mxu0  ;;  %4182 = vmatmul.mubr.f32.gmra.mxu0 %v2034_v30 }
 0x44a   :  { %v1813_v33 = vpop.f32.mrf.mxu1  ;;  %v1632_v48 = vadd.f32 %v5431_v56, %v1631_v22 }
 0x44b   :  { %v1960_v2 = vadd.f32 %v5683_v52, %v1915_v31  ;;  %v1814_v37 = vadd.f32 %v1813_v33, %v1629_v17  ;;  %v1633_v14 = vpop.f32.mrf.mxu0  ;;  %v2035_v9 = vmul.f32 %v1997_v26, %v7131_v11  ;;  %v7134_v26 = vld [vmem:[#allocation56_spill] sm:$0xff] }
 0x44c   :  { %v4089_v46 = vpop.f32.mrf.mxu1 }
 0x44d   :  { %v1998_v49 = vmax.f32 %v1960_v2, 0.0  ;;  %v1916_v63 = vmul.f32 %v1814_v37, %v7133_v27  ;;  %v1636_v34 = vpop.f32.mrf.mxu0  ;;  %4184 = vmatprep.mubr.f32.mxu0 %v2035_v9 }
 0x44e   :  { %v1816_v54 = vpop.f32.mrf.mxu1  ;;  %v1637_v31 = vadd.f32 %v1636_v34, %v5446_v44 }
 0x44f   :  { %v2036_v25 = vmul.f32 %v1998_v49, %v7132_v36  ;;  %v1961_v30 = vadd.f32 %v5683_v52, %v1916_v63  ;;  %v1817_v29 = vadd.f32 %v1816_v54, %v1632_v48  ;;  %v1638_v59 = vpop.f32.mrf.mxu0  ;;  %v7135_v63 = vld [vmem:[#allocation57_spill] sm:$0xff] }
 0x450   :  { %v4090_v19 = vpop.f32.mrf.mxu1 }
 0x451   :  { %v1999_v17 = vmax.f32 %v1961_v30, 0.0  ;;  %v1917_v33 = vmul.f32 %v1817_v29, %v7134_v26  ;;  %v1639_v2 = vpop.f32.mrf.mxu0  ;;  %4185 = vmatmul.mubr.f32.gmra.mxu0 %v2036_v25 }
 0x452   :  { %v1821_v56 = vpop.f32.mrf.mxu1  ;;  %v1640_v48 = vadd.f32 %v5441_v40, %v1639_v2 }
 0x453   :  { %v1962_v22 = vadd.f32 %v5683_v52, %v1917_v33  ;;  %v1822_v37 = vadd.f32 %v1821_v56, %v1637_v31  ;;  %v1641_v14 = vpop.f32.mrf.mxu0  ;;  %v2037_v9 = vmul.f32 %v1999_v17, %v7133_v27  ;;  %v7136_v17 = vld [vmem:[#allocation58_spill] sm:$0xff] }
 0x454   :  { %v4093_v49 = vpop.f32.mrf.mxu1 }
 0x455   :  { %v2000_v46 = vmax.f32 %v1962_v22, 0.0  ;;  %v1918_v54 = vmul.f32 %v1822_v37, %v7135_v63  ;;  %v1644_v30 = vpop.f32.mrf.mxu0  ;;  %4187 = vmatprep.mubr.f32.mxu0 %v2037_v9 }
 0x456   :  { %v1824_v44 = vpop.f32.mrf.mxu1  ;;  %v1645_v33 = vadd.f32 %v1644_v30, %v5451_v3 }
 0x457   :  { %v2038_v34 = vmul.f32 %v2000_v46, %v7134_v26  ;;  %v1963_v25 = vadd.f32 %v5683_v52, %v1918_v54  ;;  %v1825_v29 = vadd.f32 %v1824_v44, %v1640_v48  ;;  %v1646_v59 = vpop.f32.mrf.mxu0  ;;  %v7137_v54 = vld [vmem:[#allocation59_spill] sm:$0xff] }
 0x458   :  { %v4094_v19 = vpop.f32.mrf.mxu1 }
 0x459   :  { %v2001_v31 = vmax.f32 %v1963_v25, 0.0  ;;  %v1919_v56 = vmul.f32 %v1825_v29, %v7136_v17  ;;  %v1647_v22 = vpop.f32.mrf.mxu0  ;;  %4188 = vmatmul.mubr.f32.gmra.mxu0 %v2038_v34 }
 0x45a   :  { %v1829_v40 = vpop.f32.mrf.mxu1  ;;  %v1648_v48 = vadd.f32 %v5448_v0, %v1647_v22 }
 0x45b   :  { %v1964_v2 = vadd.f32 %v5683_v52, %v1919_v56  ;;  %v1830_v37 = vadd.f32 %v1829_v40, %v1645_v33  ;;  %v1649_v14 = vpop.f32.mrf.mxu0  ;;  %v2039_v9 = vmul.f32 %v2001_v31, %v7135_v63  ;;  %v7138_v31 = vld [vmem:[#allocation60_spill] sm:$0xff] }
 0x45c   :  { %v4097_v49 = vpop.f32.mrf.mxu1 }
 0x45d   :  { %v2002_v46 = vmax.f32 %v1964_v2, 0.0  ;;  %v1920_v44 = vmul.f32 %v1830_v37, %v7137_v54  ;;  %v1652_v25 = vpop.f32.mrf.mxu0  ;;  %4190 = vmatprep.mubr.f32.mxu0 %v2039_v9 }
 0x45e   :  { %v1832_v3 = vpop.f32.mrf.mxu1  ;;  %v1653_v56 = vadd.f32 %v1652_v25, %v5455_v38 }
 0x45f   :  { %v2040_v30 = vmul.f32 %v2002_v46, %v7136_v17  ;;  %v1965_v34 = vadd.f32 %v5683_v52, %v1920_v44  ;;  %v1833_v29 = vadd.f32 %v1832_v3, %v1648_v48  ;;  %v1654_v59 = vpop.f32.mrf.mxu0  ;;  %v7139_v44 = vld [vmem:[#allocation61_spill] sm:$0xff] }
 0x460   :  { %v4098_v19 = vpop.f32.mrf.mxu1 }
 0x461   :  { %v2003_v33 = vmax.f32 %v1965_v34, 0.0  ;;  %v1921_v40 = vmul.f32 %v1833_v29, %v7138_v31  ;;  %v1655_v2 = vpop.f32.mrf.mxu0  ;;  %4191 = vmatmul.mubr.f32.gmra.mxu0 %v2040_v30 }
 0x462   :  { %v1837_v0 = vpop.f32.mrf.mxu1  ;;  %v1656_v48 = vadd.f32 %v5453_v61, %v1655_v2 }
 0x463   :  { %v1966_v22 = vadd.f32 %v5683_v52, %v1921_v40  ;;  %v1838_v37 = vadd.f32 %v1837_v0, %v1653_v56  ;;  %v1657_v14 = vpop.f32.mrf.mxu0  ;;  %v2041_v9 = vmul.f32 %v2003_v33, %v7137_v54  ;;  %v7140_v33 = vld [vmem:[#allocation62_spill] sm:$0xff] }
 0x464   :  { %v4101_v49 = vpop.f32.mrf.mxu1 }
 0x465   :  { %v2004_v46 = vmax.f32 %v1966_v22, 0.0  ;;  %v1922_v3 = vmul.f32 %v1838_v37, %v7139_v44  ;;  %v1660_v34 = vpop.f32.mrf.mxu0  ;;  %4193 = vmatprep.mubr.f32.mxu0 %v2041_v9 }
 0x466   :  { %v1840_v38 = vpop.f32.mrf.mxu1  ;;  %v1661_v40 = vadd.f32 %v1660_v34, %v5459_v42 }
 0x467   :  { %v2042_v25 = vmul.f32 %v2004_v46, %v7138_v31  ;;  %v1967_v30 = vadd.f32 %v5683_v52, %v1922_v3  ;;  %v1841_v29 = vadd.f32 %v1840_v38, %v1656_v48  ;;  %v1662_v59 = vpop.f32.mrf.mxu0  ;;  %v7141_v3 = vld [vmem:[#allocation91_spill] sm:$0xff] }
 0x468   :  { %v4102_v19 = vpop.f32.mrf.mxu1  ;;  %v7142_v38 = vld [vmem:[#allocation63_spill] sm:$0xff] }
 0x469   :  { %v2005_v56 = vmax.f32 %v1967_v30, 0.0  ;;  %v1923_v0 = vmul.f32 %v1841_v29, %v7140_v33  ;;  %v1663_v22 = vpop.f32.mrf.mxu0  ;;  %4194 = vmatmul.mubr.f32.gmra.mxu0 %v2042_v25 }
 0x46a   :  { %v1845_v61 = vpop.f32.mrf.mxu1  ;;  %v1664_v48 = vadd.f32 %v7141_v3, %v1663_v22 }
 0x46b   :  { %v1968_v2 = vadd.f32 %v5683_v52, %v1923_v0  ;;  %v1846_v37 = vadd.f32 %v1845_v61, %v1661_v40  ;;  %v1665_v14 = vpop.f32.mrf.mxu0  ;;  %v2043_v9 = vmul.f32 %v2005_v56, %v7139_v44  ;;  %v7143_v61 = vld [vmem:[#allocation93_spill] sm:$0xff]  ;;  %v7144_v56 = vld [vmem:[#allocation64_spill] sm:$0xff] }
 0x46c   :  { %v4105_v49 = vpop.f32.mrf.mxu1 }
 0x46d   :  { %v2006_v46 = vmax.f32 %v1968_v2, 0.0  ;;  %v1924_v59 = vmul.f32 %v1846_v37, %v7142_v38  ;;  %v1668_v30 = vpop.f32.mrf.mxu0  ;;  %4196 = vmatprep.mubr.f32.mxu0 %v2043_v9 }
 0x46e   :  { %v1848_v42 = vpop.f32.mrf.mxu1  ;;  %v1669_v14 = vadd.f32 %v1668_v30, %v7143_v61 }
 0x46f   :  { %v2044_v34 = vmul.f32 %v2006_v46, %v7140_v33  ;;  %v1969_v25 = vadd.f32 %v5683_v52, %v1924_v59  ;;  %v1849_v29 = vadd.f32 %v1848_v42, %v1664_v48  ;;  %v1670_v19 = vpop.f32.mrf.mxu0  ;;  %v7145_v59 = vld [vmem:[#allocation92_spill] sm:$0xff]  ;;  %v7146_v42 = vld [vmem:[#allocation65_spill] sm:$0xff] }
 0x470   :  { %v4106_v0 = vpop.f32.mrf.mxu1 }
 0x471   :  { %v2007_v40 = vmax.f32 %v1969_v25, 0.0  ;;  %v1925_v49 = vmul.f32 %v1849_v29, %v7144_v56  ;;  %v1671_v2 = vpop.f32.mrf.mxu0  ;;  %4197 = vmatmul.mubr.f32.gmra.mxu0 %v2044_v34 }
 0x472   :  { %v1853_v22 = vpop.f32.mrf.mxu1  ;;  %v1672_v48 = vadd.f32 %v7145_v59, %v1671_v2 }
 0x473   :  { %v1970_v37 = vadd.f32 %v5683_v52, %v1925_v49  ;;  %v1854_v3 = vadd.f32 %v1853_v22, %v1669_v14  ;;  %v1673_v9 = vpop.f32.mrf.mxu0  ;;  %v2045_v44 = vmul.f32 %v2007_v40, %v7142_v38  ;;  %v7147_v22 = vld [vmem:[#allocation95_spill] sm:$0xff]  ;;  %v7148_v40 = vld [vmem:[#allocation66_spill] sm:$0xff] }
 0x474   :  { %v4109_v46 = vpop.f32.mrf.mxu1 }
 0x475   :  { %v2008_v33 = vmax.f32 %v1970_v37, 0.0  ;;  %v1926_v19 = vmul.f32 %v1854_v3, %v7146_v42  ;;  %v1676_v25 = vpop.f32.mrf.mxu0  ;;  %4199 = vmatprep.mubr.f32.mxu0 %v2045_v44 }
 0x476   :  { %v1856_v30 = vpop.f32.mrf.mxu1  ;;  %v1677_v9 = vadd.f32 %v1676_v25, %v7147_v22 }
 0x477   :  { %v2046_v29 = vmul.f32 %v2008_v33, %v7144_v56  ;;  %v1971_v34 = vadd.f32 %v5683_v52, %v1926_v19  ;;  %v1857_v0 = vadd.f32 %v1856_v30, %v1672_v48  ;;  %v1678_v61 = vpop.f32.mrf.mxu0  ;;  %v7149_v19 = vld [vmem:[#allocation94_spill] sm:$0xff]  ;;  %v7150_v30 = vld [vmem:[#allocation67_spill] sm:$0xff] }
 0x478   :  { %v4110_v49 = vpop.f32.mrf.mxu1 }
 0x479   :  { %v2009_v14 = vmax.f32 %v1971_v34, 0.0  ;;  %v1927_v46 = vmul.f32 %v1857_v0, %v7148_v40  ;;  %v1679_v37 = vpop.f32.mrf.mxu0  ;;  %4200 = vmatmul.mubr.f32.gmra.mxu0 %v2046_v29 }
 0x47a   :  { %v1861_v2 = vpop.f32.mrf.mxu1  ;;  %v1680_v48 = vadd.f32 %v7149_v19, %v1679_v37 }
 0x47b   :  { %v1972_v3 = vadd.f32 %v5683_v52, %v1927_v46  ;;  %v1862_v59 = vadd.f32 %v1861_v2, %v1677_v9  ;;  %v1681_v44 = vpop.f32.mrf.mxu0  ;;  %v2047_v38 = vmul.f32 %v2009_v14, %v7146_v42  ;;  %v7151_v2 = vld [vmem:[#allocation97_spill] sm:$0xff]  ;;  %v7152_v14 = vld [vmem:[#allocation68_spill] sm:$0xff] }
 0x47c   :  { %v4113_v33 = vpop.f32.mrf.mxu1 }
 0x47d   :  { %v2010_v56 = vmax.f32 %v1972_v3, 0.0  ;;  %v1928_v61 = vmul.f32 %v1862_v59, %v7150_v30  ;;  %v1684_v34 = vpop.f32.mrf.mxu0  ;;  %4202 = vmatprep.mubr.f32.mxu0 %v2047_v38 }
 0x47e   :  { %v1864_v25 = vpop.f32.mrf.mxu1  ;;  %v1685_v44 = vadd.f32 %v1684_v34, %v7151_v2 }
 0x47f   :  { %v2048_v0 = vmul.f32 %v2010_v56, %v7148_v40  ;;  %v1973_v29 = vadd.f32 %v5683_v52, %v1928_v61  ;;  %v1865_v49 = vadd.f32 %v1864_v25, %v1680_v48  ;;  %v1686_v22 = vpop.f32.mrf.mxu0  ;;  %v7153_v61 = vld [vmem:[#allocation96_spill] sm:$0xff]  ;;  %v7154_v25 = vld [vmem:[#allocation69_spill] sm:$0xff] }
 0x480   :  { %v4114_v46 = vpop.f32.mrf.mxu1 }
 0x481   :  { %v2011_v9 = vmax.f32 %v1973_v29, 0.0  ;;  %v1929_v33 = vmul.f32 %v1865_v49, %v7152_v14  ;;  %v1687_v3 = vpop.f32.mrf.mxu0  ;;  %4203 = vmatmul.mubr.f32.gmra.mxu0 %v2048_v0 }
 0x482   :  { %v1869_v37 = vpop.f32.mrf.mxu1  ;;  %v1688_v48 = vadd.f32 %v7153_v61, %v1687_v3 }
 0x483   :  { %v1974_v59 = vadd.f32 %v5683_v52, %v1929_v33  ;;  %v1870_v19 = vadd.f32 %v1869_v37, %v1685_v44  ;;  %v1689_v38 = vpop.f32.mrf.mxu0  ;;  %v2049_v42 = vmul.f32 %v2011_v9, %v7150_v30  ;;  %v7155_v9 = vld [vmem:[#allocation70_spill] sm:$0xff] }
 0x484   :  { %v4117_v56 = vpop.f32.mrf.mxu1 }
 0x485   :  { %v2012_v40 = vmax.f32 %v1974_v59, 0.0  ;;  %v1930_v22 = vmul.f32 %v1870_v19, %v7154_v25  ;;  %v1692_v29 = vpop.f32.mrf.mxu0  ;;  %4205 = vmatprep.mubr.f32.mxu0 %v2049_v42 }
 0x486   :  { %v1872_v34 = vpop.f32.mrf.mxu1  ;;  %v1693_v37 = vadd.f32 %v1692_v29, %v5486_v50 }
 0x487   :  { %v2050_v49 = vmul.f32 %v2012_v40, %v7152_v14  ;;  %v1975_v0 = vadd.f32 %v5683_v52, %v1930_v22  ;;  %v1873_v46 = vadd.f32 %v1872_v34, %v1688_v48  ;;  %v1694_v2 = vpop.f32.mrf.mxu0  ;;  %v7156_v22 = vld [vmem:[#allocation71_spill] sm:$0xff] }
 0x488   :  { %v4118_v33 = vpop.f32.mrf.mxu1 }
 0x489   :  { %v2013_v44 = vmax.f32 %v1975_v0, 0.0  ;;  %v1931_v38 = vmul.f32 %v1873_v46, %v7155_v9  ;;  %v1695_v59 = vpop.f32.mrf.mxu0  ;;  %4206 = vmatmul.mubr.f32.gmra.mxu0 %v2050_v49 }
 0x48a   :  { %v1877_v3 = vpop.f32.mrf.mxu1  ;;  %v1696_v48 = vadd.f32 %v5481_v45, %v1695_v59 }
 0x48b   :  { %v1976_v19 = vadd.f32 %v5683_v52, %v1931_v38  ;;  %v1878_v56 = vadd.f32 %v1877_v3, %v1693_v37  ;;  %v1697_v42 = vpop.f32.mrf.mxu0  ;;  %v2051_v61 = vmul.f32 %v2013_v44, %v7154_v25  ;;  %v7157_v44 = vld [vmem:[#allocation72_spill] sm:$0xff] }
 0x48c   :  { %v4121_v40 = vpop.f32.mrf.mxu1 }
 0x48d   :  { %v2014_v14 = vmax.f32 %v1976_v19, 0.0  ;;  %v1932_v34 = vmul.f32 %v1878_v56, %v7156_v22  ;;  %v1700_v0 = vpop.f32.mrf.mxu0  ;;  %4208 = vmatprep.mubr.f32.mxu0 %v2051_v61 }
 0x48e   :  { %v1880_v50 = vpop.f32.mrf.mxu1  ;;  %v1701_v38 = vadd.f32 %v1700_v0, %v5493_v58 }
 0x48f   :  { %v2052_v29 = vmul.f32 %v2014_v14, %v7155_v9  ;;  %v1977_v49 = vadd.f32 %v5683_v52, %v1932_v34  ;;  %v1881_v46 = vadd.f32 %v1880_v50, %v1696_v48  ;;  %v1702_v2 = vpop.f32.mrf.mxu0  ;;  %v7158_v34 = vld [vmem:[#allocation73_spill] sm:$0xff] }
 0x490   :  { %v4122_v33 = vpop.f32.mrf.mxu1 }
 0x491   :  { %v2015_v37 = vmax.f32 %v1977_v49, 0.0  ;;  %v1933_v3 = vmul.f32 %v1881_v46, %v7157_v44  ;;  %v1703_v19 = vpop.f32.mrf.mxu0  ;;  %4209 = vmatmul.mubr.f32.gmra.mxu0 %v2052_v29 }
 0x492   :  { %v1885_v45 = vpop.f32.mrf.mxu1  ;;  %v1704_v48 = vadd.f32 %v5488_v12, %v1703_v19 }
 0x493   :  { %v1978_v59 = vadd.f32 %v5683_v52, %v1933_v3  ;;  %v1886_v56 = vadd.f32 %v1885_v45, %v1701_v38  ;;  %v1705_v42 = vpop.f32.mrf.mxu0  ;;  %v2053_v61 = vmul.f32 %v2015_v37, %v7156_v22  ;;  %v7159_v37 = vld [vmem:[#allocation74_spill] sm:$0xff] }
 0x494   :  { %v4125_v14 = vpop.f32.mrf.mxu1 }
 0x495   :  { %v2016_v40 = vmax.f32 %v1978_v59, 0.0  ;;  %v1934_v50 = vmul.f32 %v1886_v56, %v7158_v34  ;;  %v1708_v49 = vpop.f32.mrf.mxu0  ;;  %4211 = vmatprep.mubr.f32.mxu0 %v2053_v61 }
 0x496   :  { %v1888_v58 = vpop.f32.mrf.mxu1  ;;  %v1709_v3 = vadd.f32 %v1708_v49, %v5500_v23 }
 0x497   :  { %v2054_v0 = vmul.f32 %v2016_v40, %v7157_v44  ;;  %v1979_v29 = vadd.f32 %v5683_v52, %v1934_v50  ;;  %v1889_v46 = vadd.f32 %v1888_v58, %v1704_v48  ;;  %v1710_v2 = vpop.f32.mrf.mxu0  ;;  %v7160_v50 = vld [vmem:[#allocation75_spill] sm:$0xff] }
 0x498   :  { %v4126_v33 = vpop.f32.mrf.mxu1 }
 0x499   :  { %v2017_v38 = vmax.f32 %v1979_v29, 0.0  ;;  %v1935_v45 = vmul.f32 %v1889_v46, %v7159_v37  ;;  %v1711_v59 = vpop.f32.mrf.mxu0  ;;  %4212 = vmatmul.mubr.f32.gmra.mxu0 %v2054_v0  ;;  %v7161_v33 = vld [vmem:[#allocation76_spill] sm:$0xff] }
 0x49a   :  { %v1893_v12 = vpop.f32.mrf.mxu1  ;;  %v1712_v48 = vadd.f32 %v5498_v5, %v1711_v59 }
 0x49b   :  { %v1980_v19 = vadd.f32 %v5683_v52, %v1935_v45  ;;  %v1894_v56 = vadd.f32 %v1893_v12, %v1709_v3  ;;  %v1713_v42 = vpop.f32.mrf.mxu0  ;;  %v2055_v61 = vmul.f32 %v2017_v38, %v7158_v34 }
 0x49c   :  { %v4129_v14 = vpop.f32.mrf.mxu1 }
 0x49d   :  { %v2018_v40 = vmax.f32 %v1980_v19, 0.0  ;;  %v1936_v58 = vmul.f32 %v1894_v56, %v7160_v50  ;;  %4214 = vmatprep.mubr.f32.mxu0 %v2055_v61 }
 0x49e   :  { %v1896_v29 = vpop.f32.mrf.mxu1 }
 0x49f   :  { %v2056_v23 = vmul.f32 %v2018_v40, %v7159_v37  ;;  %v1981_v49 = vadd.f32 %v5683_v52, %v1936_v58  ;;  %v1897_v0 = vadd.f32 %v1896_v29, %v1712_v48 }
 0x4a0   :  { %v4130_v46 = vpop.f32.mrf.mxu1 }
 0x4a1   :  { %v2019_v2 = vmax.f32 %v1981_v49, 0.0  ;;  %v1937_v3 = vmul.f32 %v1897_v0, %v7161_v33  ;;  %4215 = vmatmul.mubr.f32.gmra.mxu0 %v2056_v23 }
 0x4a3   :  { %v1982_v38 = vadd.f32 %v5683_v52, %v1937_v3  ;;  %v2057_v45 = vmul.f32 %v2019_v2, %v7160_v50 }
 0x4a5   :  { %v2020_v12 = vmax.f32 %v1982_v38, 0.0  ;;  %4217 = vmatprep.mubr.f32.mxu0 %v2057_v45 }
 0x4a7   :  { %v2058_v5 = vmul.f32 %v2020_v12, %v7161_v33 }
 0x4a9   :  { %4218 = vmatmul.mubr.f32.gmra.mxu0 %v2058_v5 }
 0x4aa   :  { %4226 = vmatprep.mubr.msk.bf16.mxu0 %vm4688_vm1, %v7025_v41 }
 0x4d9   :  { %v5838_v59 = vpop.f32.mrf.mxu0 }
 0x4db   :  { %v5840_v19 = vpop.f32.mrf.mxu0 }
 0x4e1   :  { %v5842_v56 = vpop.f32.mrf.mxu0 }
 0x4e3   :  { %v5844_v42 = vpop.f32.mrf.mxu0 }
 0x4e9   :  { %v5846_v61 = vpop.f32.mrf.mxu0 }
 0x4eb   :  { %v5848_v52 = vpop.f32.mrf.mxu0 }
 0x4f1   :  { %v5850_v14 = vpop.f32.mrf.mxu0 }
 0x4f3   :  { %v5852_v40 = vpop.f32.mrf.mxu0 }
 0x4f4   :  { %v2333_v5 = vpack.c.bf16 %v5850_v14, %v5852_v40 }
 0x4f9   :  { %v5854_v48 = vpop.f32.mrf.mxu0 }
 0x4fb   :  { %v5856_v58 = vpop.f32.mrf.mxu0 }
 0x4fc   :  { %v2334_v12 = vpack.c.bf16 %v5854_v48, %v5856_v58 }
 0x501   :  { %v5858_v29 = vpop.f32.mrf.mxu0 }
 0x503   :  { %v5860_v23 = vpop.f32.mrf.mxu0 }
 0x504   :  { %v2335_v45 = vpack.c.bf16 %v5858_v29, %v5860_v23 }
 0x509   :  { %v5862_v49 = vpop.f32.mrf.mxu0 }
 0x50b   :  { %v5864_v0 = vpop.f32.mrf.mxu0 }
 0x50c   :  { %v2336_v38 = vpack.c.bf16 %v5862_v49, %v5864_v0 }
 0x511   :  { %v5866_v46 = vpop.f32.mrf.mxu0 }
 0x513   :  { %v5868_v2 = vpop.f32.mrf.mxu0 }
 0x514   :  { %v2337_v3 = vpack.c.bf16 %v5866_v46, %v5868_v2 }
 0x516   :  { %2353 = vmatpush1.bf16.msra.mxu1 %v2337_v3 }
 0x517   :  { %2354 = vmatprep.subr.bf16.mxu1 %v7078_v1 }
 0x519   :  { %v5884_v3 = vpop.f32.mrf.mxu0 }
 0x51a   :  { %2355 = vmatpush1.bf16.msra.mxu1 %v2336_v38  ;;  %v2332_v38 = vpack.c.bf16 %v5846_v61, %v5848_v52 }
 0x51b   :  { %2356 = vmatprep.subr.bf16.mxu1 %v7078_v1 }
 0x51e   :  { %2357 = vmatpush1.bf16.msra.mxu1 %v2335_v45  ;;  %v5889_v45 = vpop.f32.mrf.mxu0 }
 0x51f   :  { %2358 = vmatprep.subr.bf16.mxu1 %v7078_v1 }
 0x521   :  { %v5894_v33 = vpop.f32.mrf.mxu0 }
 0x522   :  { %2359 = vmatpush1.bf16.msra.mxu1 %v2334_v12  ;;  %v2331_v12 = vpack.c.bf16 %v5842_v56, %v5844_v42 }
 0x523   :  { %2360 = vmatprep.subr.bf16.mxu1 %v7078_v1  ;;  %v5899_v50 = vpop.f32.mrf.mxu0 }
 0x526   :  { %2361 = vmatpush1.bf16.msra.mxu1 %v2333_v5  ;;  %v2330_v5 = vpack.c.bf16 %v5838_v59, %v5840_v19 }
 0x527   :  { %2362 = vmatprep.subr.bf16.mxu1 %v7078_v1 }
 0x529   :  { %v5901_v37 = vpop.f32.mrf.mxu0 }
 0x52a   :  { %2363 = vmatpush1.bf16.msra.mxu1 %v2332_v38 }
 0x52b   :  { %2364 = vmatprep.subr.bf16.mxu1 %v7078_v1  ;;  %v5904_v38 = vpop.f32.mrf.mxu0 }
 0x52e   :  { %2365 = vmatpush1.bf16.msra.mxu1 %v2331_v12 }
 0x52f   :  { %2366 = vmatprep.subr.bf16.mxu1 %v7078_v1 }
 0x531   :  { %v5906_v34 = vpop.f32.mrf.mxu0 }
 0x532   :  { %2367 = vmatpush1.bf16.msra.mxu1 %v2330_v5 }
 0x533   :  { %2368 = vmatprep.subr.bf16.mxu1 %v7078_v1  ;;  %v5908_v44 = vpop.f32.mrf.mxu0 }
 0x539   :  { %v5910_v22 = vpop.f32.mrf.mxu0 }
 0x53a   :  { %7162 = vst [vmem:[#allocation5_spill] sm:$0xff] %v5910_v22 }
 0x53b   :  { %v5912_v12 = vpop.f32.mrf.mxu0 }
 0x541   :  { %v5914_v9 = vpop.f32.mrf.mxu0 }
 0x542   :  { %7163 = vst [vmem:[#allocation78_spill] sm:$0xff] %v5914_v9 }
 0x543   :  { %v5916_v25 = vpop.f32.mrf.mxu0 }
 0x544   :  { %7164 = vst [vmem:[#allocation77_spill] sm:$0xff] %v5916_v25  ;;  %v2343_v26 = vpack.c.bf16 %v5914_v9, %v5916_v25 }
 0x549   :  { %v5918_v30 = vpop.f32.mrf.mxu0 }
 0x54a   :  { %7165 = vst [vmem:[#allocation80_spill] sm:$0xff] %v5918_v30 }
 0x54b   :  { %v5920_v5 = vpop.f32.mrf.mxu0 }
 0x54c   :  { %7166 = vst [vmem:[#allocation79_spill] sm:$0xff] %v5920_v5  ;;  %v2344_v63 = vpack.c.bf16 %v5918_v30, %v5920_v5 }
 0x551   :  { %v5922_v31 = vpop.f32.mrf.mxu0 }
 0x552   :  { %7167 = vst [vmem:[#allocation82_spill] sm:$0xff] %v5922_v31 }
 0x553   :  { %v5924_v54 = vpop.f32.mrf.mxu0 }
 0x554   :  { %7168 = vst [vmem:[#allocation81_spill] sm:$0xff] %v5924_v54  ;;  %v2345_v17 = vpack.c.bf16 %v5922_v31, %v5924_v54  ;;  %v2342_v31 = vpack.c.bf16 %v5910_v22, %v5912_v12  ;;  %v2338_v22 = vpack.c.bf16 %v5884_v3, %v5889_v45 }
 0x556   :  { %2369 = vmatpush2.bf16.msra.mxu1 %v2345_v17 }
 0x557   :  { %2370 = vmatprep.subr.bf16.mxu1 %v7078_v1 }
 0x559   :  { %v5934_v27 = vpop.f32.mrf.mxu0 }
 0x55a   :  { %2371 = vmatpush2.bf16.msra.mxu1 %v2344_v63  ;;  %v2341_v63 = vpack.c.bf16 %v5906_v34, %v5908_v44 }
 0x55b   :  { %2372 = vmatprep.subr.bf16.mxu1 %v7078_v1  ;;  %v5939_v17 = vpop.f32.mrf.mxu0 }
 0x55e   :  { %2373 = vmatpush2.bf16.msra.mxu1 %v2343_v26  ;;  %v2340_v26 = vpack.c.bf16 %v5901_v37, %v5904_v38 }
 0x55f   :  { %2374 = vmatprep.subr.bf16.mxu1 %v7078_v1 }
 0x561   :  { %v5941_v54 = vpop.f32.mrf.mxu0 }
 0x562   :  { %2375 = vmatpush2.bf16.msra.mxu1 %v2342_v31  ;;  %v2339_v31 = vpack.c.bf16 %v5894_v33, %v5899_v50 }
 0x563   :  { %2376 = vmatprep.subr.bf16.mxu1 %v7078_v1  ;;  %v5946_v30 = vpop.f32.mrf.mxu0 }
 0x566   :  { %2377 = vmatpush2.bf16.msra.mxu1 %v2341_v63 }
 0x567   :  { %2378 = vmatprep.subr.bf16.mxu1 %v7078_v1 }
 0x569   :  { %v5951_v5 = vpop.f32.mrf.mxu0 }
 0x56a   :  { %2379 = vmatpush2.bf16.msra.mxu1 %v2340_v26  ;;  %v2347_v26 = vpack.c.bf16 %v5941_v54, %v5946_v30 }
 0x56b   :  { %v5953_v9 = vpop.f32.mrf.mxu0  ;;  %2380 = vmatprep.subr.bf16.mxu1 %v7078_v1 }
 0x56c   :  { %v2348_v63 = vpack.c.bf16 %v5951_v5, %v5953_v9 }
 0x56e   :  { %2381 = vmatpush2.bf16.msra.mxu1 %v2339_v31  ;;  %v2350_v25 = vsel %vm418_vm0, %v2348_v63, 0  ;;  %v2346_v31 = vpack.c.bf16 %v5934_v27, %v5939_v17  ;;  %v7179_v63 = vld [vmem:[#allocation20_spill] sm:$0xff] }
 0x56f   :  { %4221 = vmatpush3.bf16.msra.mxu0 %v2350_v25  ;;  %2382 = vmatprep.subr.bf16.mxu1 %v7078_v1  ;;  %v7176_v1 = vld [vmem:[#allocation18_spill] sm:$0xff]  ;;  %v7177_v25 = vld [vmem:[#allocation8_spill] sm:$0xff] }
 0x570   :  { %4222 = vmatprep.subr.bf16.mxu0 %v7025_v41 }
 0x572   :  { %2383 = vmatpush2.bf16.msra.mxu1 %v2338_v22  ;;  %v7178_v22 = vld [vmem:[#allocation19_spill] sm:$0xff] }
 0x573   :  { %4223 = vmatpush3.bf16.msra.mxu0 %v2347_v26  ;;  %v7180_v26 = vld [vmem:[#allocation9_spill] sm:$0xff] }
 0x574   :  { %4224 = vmatprep.subr.bf16.mxu0 %v7025_v41 }
 0x575   :  { %2385 = vmatmul.mubr.bf16.vlgmr.msra.gmra.mxu1 %v4782_v16  ;;  %v2820_v16 = vld [vmem:[%s6796_s6 + $0x78] sm:$0xff] }
 0x576   :  { %2392 = vmatprep.mubr.bf16.mxu1 %v4785_v20  ;;  %v2819_v20 = vld [vmem:[%s6796_s6 + $0x70] sm:$0xff]  ;;  %4391 = vmatprep.subr.mxu1 %v2820_v16 }
 0x577   :  { %4225 = vmatpush3.bf16.msra.mxu0 %v2346_v31  ;;  %4407 = vmatpush3.msra.mxu1 %v2820_v16  ;;  %v7181_v31 = vld [vmem:[#allocation21_spill] sm:$0xff] }
 0x578   :  { %4302 = vmatprep.subr.mxu0 %v2820_v16  ;;  %4392 = vmatprep.subr.mxu1 %v2819_v20 }
 0x579   :  { %4408 = vmatpush3.msra.mxu1 %v2819_v20 }
 0x57a   :  { %4227 = vmatmul.mubr.msk.bf16.vlgmr.msra.gmra.mxu0 %vm360_vm2, %v4821_v6  ;;  %v2809_v6 = vld [vmem:[%s6796_s6 + $0x20] sm:$0xff] }
 0x57b   :  { %4230 = vmatprep.mubr.msk.bf16.mxu0 %vm4688_vm1, %v7025_v41  ;;  %4303 = vmatpush3.msra.mxu0 %v2820_v16  ;;  %v7182_v16 = vld [vmem:[#allocation22_spill] sm:$0xff] }
 0x57c   :  { %4304 = vmatprep.subr.mxu0 %v2819_v20 }
 0x57d   :  { %2393 = vmatmul.mubr.bf16.gmra.mxu1 %v4788_v24  ;;  %v2818_v24 = vld [vmem:[%s6796_s6 + $0x68] sm:$0xff]  ;;  %4305 = vmatpush3.msra.mxu0 %v2819_v20  ;;  %v7183_v20 = vld [vmem:[#allocation10_spill] sm:$0xff] }
 0x57e   :  { %2400 = vmatprep.mubr.bf16.mxu1 %v4790_v28  ;;  %v2817_v28 = vld [vmem:[%s6796_s6 + $0x60] sm:$0xff]  ;;  %4306 = vmatprep.subr.mxu0 %v2818_v24 }
 0x57f   :  { %4307 = vmatpush3.msra.mxu0 %v2818_v24  ;;  %4393 = vmatprep.subr.mxu1 %v2818_v24 }
 0x580   :  { %4308 = vmatprep.subr.mxu0 %v2817_v28  ;;  %4409 = vmatpush3.msra.mxu1 %v2818_v24  ;;  %v7184_v24 = vld [vmem:[#allocation23_spill] sm:$0xff] }
 0x581   :  { %4309 = vmatpush3.msra.mxu0 %v2817_v28  ;;  %4394 = vmatprep.subr.mxu1 %v2817_v28 }
 0x582   :  { %4231 = vmatmul.mubr.msk.bf16.gmra.mxu0 %vm360_vm2, %v4831_v8  ;;  %4410 = vmatpush3.msra.mxu1 %v2817_v28  ;;  %v7173_v8 = vld [vmem:[#allocation15_spill] sm:$0xff]  ;;  %v7185_v28 = vld [vmem:[#allocation25_spill] sm:$0xff] }
 0x583   :  { %4234 = vmatprep.mubr.msk.bf16.mxu0 %vm4688_vm1, %v7025_v41 }
 0x585   :  { %2401 = vmatmul.mubr.bf16.gmra.mxu1 %v4792_v32  ;;  %v2816_v32 = vld [vmem:[%s6796_s6 + $0x58] sm:$0xff] }
 0x586   :  { %2408 = vmatprep.mubr.bf16.mxu1 %v4796_v35  ;;  %v2815_v35 = vld [vmem:[%s6796_s6 + $0x50] sm:$0xff]  ;;  %4310 = vmatprep.subr.mxu0 %v2816_v32 }
 0x587   :  { %4311 = vmatpush3.msra.mxu0 %v2816_v32  ;;  %4395 = vmatprep.subr.mxu1 %v2816_v32 }
 0x588   :  { %4312 = vmatprep.subr.mxu0 %v2815_v35  ;;  %4411 = vmatpush3.msra.mxu1 %v2816_v32  ;;  %v7186_v32 = vld [vmem:[#allocation12_spill] sm:$0xff] }
 0x589   :  { %4313 = vmatpush3.msra.mxu0 %v2815_v35  ;;  %4396 = vmatprep.subr.mxu1 %v2815_v35 }
 0x58a   :  { %4235 = vmatmul.mubr.msk.bf16.gmra.mxu0 %vm360_vm2, %v4835_v10  ;;  %4412 = vmatpush3.msra.mxu1 %v2815_v35  ;;  %v7174_v10 = vld [vmem:[#allocation7_spill] sm:$0xff]  ;;  %v7187_v35 = vld [vmem:[#allocation24_spill] sm:$0xff] }
 0x58b   :  { %4238 = vmatprep.mubr.msk.bf16.mxu0 %vm4688_vm1, %v7025_v41 }
 0x58d   :  { %2409 = vmatmul.mubr.bf16.gmra.mxu1 %v4798_v39  ;;  %v2814_v39 = vld [vmem:[%s6796_s6 + $0x48] sm:$0xff] }
 0x58e   :  { %2416 = vmatprep.mubr.bf16.mxu1 %v4800_v43  ;;  %v2813_v43 = vld [vmem:[%s6796_s6 + $0x40] sm:$0xff]  ;;  %4314 = vmatprep.subr.mxu0 %v2814_v39 }
 0x58f   :  { %4315 = vmatpush3.msra.mxu0 %v2814_v39  ;;  %4397 = vmatprep.subr.mxu1 %v2814_v39 }
 0x590   :  { %4316 = vmatprep.subr.mxu0 %v2813_v43  ;;  %4413 = vmatpush3.msra.mxu1 %v2814_v39  ;;  %v7188_v39 = vld [vmem:[#allocation27_spill] sm:$0xff] }
 0x591   :  { %4317 = vmatpush3.msra.mxu0 %v2813_v43  ;;  %4398 = vmatprep.subr.mxu1 %v2813_v43 }
 0x592   :  { %4239 = vmatmul.mubr.msk.bf16.gmra.mxu0 %vm360_vm2, %v4845_v13  ;;  %4414 = vmatpush3.msra.mxu1 %v2813_v43  ;;  %v2807_v13 = vld [vmem:[%s6796_s6 + $0x10] sm:$0xff]  ;;  %v7189_v43 = vld [vmem:[#allocation14_spill] sm:$0xff] }
 0x593   :  { %4242 = vmatprep.mubr.msk.bf16.mxu0 %vm4688_vm1, %v7025_v41 }
 0x595   :  { %2417 = vmatmul.mubr.bf16.gmra.mxu1 %v4802_v47  ;;  %v7169_v47 = vld [vmem:[#allocation11_spill] sm:$0xff] }
 0x596   :  { %2424 = vmatprep.mubr.bf16.mxu1 %v4806_v51  ;;  %v2812_v51 = vld [vmem:[%s6796_s6 + $0x38] sm:$0xff] }
 0x597   :  { %4318 = vmatprep.subr.mxu0 %v2812_v51  ;;  %4399 = vmatprep.subr.mxu1 %v2812_v51 }
 0x598   :  { %4319 = vmatpush3.msra.mxu0 %v2812_v51  ;;  %4415 = vmatpush3.msra.mxu1 %v2812_v51  ;;  %v7191_v51 = vld [vmem:[#allocation29_spill] sm:$0xff] }
 0x59a   :  { %4243 = vmatmul.mubr.msk.bf16.gmra.mxu0 %vm360_vm2, %v4850_v15  ;;  %v2806_v15 = vld [vmem:[%s6796_s6 + $0x8] sm:$0xff] }
 0x59b   :  { %4246 = vmatprep.mubr.msk.bf16.mxu0 %vm4688_vm1, %v7025_v41 }
 0x59d   :  { %2425 = vmatmul.mubr.bf16.gmra.mxu1 %v4808_v55  ;;  %v7170_v55 = vld [vmem:[#allocation13_spill] sm:$0xff] }
 0x59e   :  { %2432 = vmatprep.mubr.bf16.mxu1 %v4810_v57  ;;  %v7171_v57 = vld [vmem:[#allocation6_spill] sm:$0xff] }
 0x5a2   :  { %4247 = vmatmul.mubr.msk.bf16.gmra.mxu0 %vm360_vm2, %v4860_v18  ;;  %v7175_v18 = vld [vmem:[#allocation17_spill] sm:$0xff] }
 0x5a3   :  { %4250 = vmatprep.mubr.msk.bf16.mxu0 %vm4688_vm1, %v7025_v41 }
 0x5a5   :  { %2433 = vmatmul.mubr.bf16.gmra.mxu1 %v4812_v60  ;;  %v2811_v60 = vld [vmem:[%s6796_s6 + $0x30] sm:$0xff] }
 0x5a6   :  { %2440 = vmatprep.mubr.bf16.mxu1 %v4816_v62  ;;  %4320 = vmatprep.subr.mxu0 %v2811_v60  ;;  %v2810_v62 = vld [vmem:[%s6796_s6 + $0x28] sm:$0xff] }
 0x5a7   :  { %4321 = vmatpush3.msra.mxu0 %v2811_v60  ;;  %4400 = vmatprep.subr.mxu1 %v2811_v60 }
 0x5a8   :  { %4322 = vmatprep.subr.mxu0 %v2810_v62  ;;  %4416 = vmatpush3.msra.mxu1 %v2811_v60  ;;  %v7194_v60 = vld [vmem:[#allocation31_spill] sm:$0xff] }
 0x5a9   :  { %4323 = vmatpush3.msra.mxu0 %v2810_v62  ;;  %4401 = vmatprep.subr.mxu1 %v2810_v62 }
 0x5aa   :  { %4251 = vmatmul.mubr.msk.bf16.gmra.mxu0 %vm360_vm2, %v4864_v21  ;;  %4324 = vmatprep.subr.mxu0 %v2809_v6  ;;  %v2805_v21 = vld [vmem:[%s6796_s6] sm:$0xff] }
 0x5ab   :  { %4254 = vmatprep.mubr.msk.bf16.mxu0 %vm4688_vm1, %v7025_v41  ;;  %4325 = vmatpush3.msra.mxu0 %v2809_v6 }
 0x5ac   :  { %4417 = vmatpush3.msra.mxu1 %v2810_v62  ;;  %v7195_v62 = vld [vmem:[#allocation32_spill] sm:$0xff] }
 0x5ad   :  { %2441 = vmatmul.mubr.bf16.gmra.mxu1 %v4819_v4  ;;  %v7172_v4 = vld [vmem:[#allocation16_spill] sm:$0xff]  ;;  %4402 = vmatprep.subr.mxu1 %v2809_v6 }
 0x5ae   :  { %2448 = vmatprep.mubr.bf16.mxu1 %v4825_v7  ;;  %v2808_v7 = vld [vmem:[%s6796_s6 + $0x18] sm:$0xff]  ;;  %4418 = vmatpush3.msra.mxu1 %v2809_v6  ;;  %v7197_v6 = vld [vmem:[#allocation33_spill] sm:$0xff] }
 0x5af   :  { %4326 = vmatprep.subr.mxu0 %v2808_v7  ;;  %4403 = vmatprep.subr.mxu1 %v2808_v7 }
 0x5b0   :  { %4327 = vmatpush3.msra.mxu0 %v2808_v7  ;;  %4419 = vmatpush3.msra.mxu1 %v2808_v7  ;;  %v7198_v7 = vld [vmem:[#allocation34_spill] sm:$0xff] }
 0x5b1   :  { %4328 = vmatprep.subr.mxu0 %v2807_v13  ;;  %4404 = vmatprep.subr.mxu1 %v2807_v13 }
 0x5b2   :  { %4255 = vmatmul.mubr.msk.bf16.gmra.mxu0 %vm360_vm2, %v7169_v47  ;;  %4420 = vmatpush3.msra.mxu1 %v2807_v13  ;;  %v7190_v47 = vld [vmem:[#allocation26_spill] sm:$0xff] }
 0x5b3   :  { %4258 = vmatprep.mubr.msk.bf16.mxu0 %vm4688_vm1, %v7025_v41  ;;  %4329 = vmatpush3.msra.mxu0 %v2807_v13  ;;  %v7201_v13 = vld [vmem:[#allocation38_spill] sm:$0xff] }
 0x5b4   :  { %4330 = vmatprep.subr.mxu0 %v2806_v15  ;;  %4405 = vmatprep.subr.mxu1 %v2806_v15 }
 0x5b5   :  { %2449 = vmatmul.mubr.bf16.gmra.mxu1 %v7170_v55  ;;  %4331 = vmatpush3.msra.mxu0 %v2806_v15  ;;  %v7192_v55 = vld [vmem:[#allocation30_spill] sm:$0xff] }
 0x5b6   :  { %2456 = vmatprep.mubr.bf16.mxu1 %v7171_v57  ;;  %4332 = vmatprep.subr.mxu0 %v2805_v21  ;;  %v7193_v57 = vld [vmem:[#allocation28_spill] sm:$0xff] }
 0x5b7   :  { %4333 = vmatpush3.msra.mxu0 %v2805_v21  ;;  %4421 = vmatpush3.msra.mxu1 %v2806_v15 }
 0x5b8   :  { %4406 = vmatprep.subr.mxu1 %v2805_v21 }
 0x5b9   :  { %4422 = vmatpush3.msra.mxu1 %v2805_v21 }
 0x5ba   :  { %4259 = vmatmul.mubr.msk.bf16.gmra.mxu0 %vm360_vm2, %v7172_v4  ;;  %v7196_v4 = vld [vmem:[#allocation36_spill] sm:$0xff] }
 0x5bb   :  { %4262 = vmatprep.mubr.msk.bf16.mxu0 %vm4688_vm1, %v7025_v41 }
 0x5bd   :  { %2457 = vmatmul.mubr.bf16.gmra.mxu1 %v7173_v8  ;;  %v7199_v8 = vld [vmem:[#allocation37_spill] sm:$0xff] }
 0x5be   :  { %2464 = vmatprep.mubr.bf16.mxu1 %v7174_v10  ;;  %v7200_v10 = vld [vmem:[#allocation35_spill] sm:$0xff] }
 0x5c2   :  { %4263 = vmatmul.mubr.msk.bf16.gmra.mxu0 %vm360_vm2, %v7175_v18 }
 0x5c3   :  { %4266 = vmatprep.mubr.msk.bf16.mxu0 %vm4688_vm1, %v7025_v41 }
 0x5c5   :  { %2465 = vmatmul.mubr.bf16.gmra.mxu1 %v7176_v1 }
 0x5c6   :  { %2472 = vmatprep.mubr.bf16.mxu1 %v7177_v25 }
 0x5ca   :  { %4267 = vmatmul.mubr.msk.bf16.gmra.mxu0 %vm360_vm2, %v7178_v22 }
 0x5cb   :  { %4270 = vmatprep.mubr.msk.bf16.mxu0 %vm4688_vm1, %v7025_v41 }
 0x5cd   :  { %2473 = vmatmul.mubr.bf16.gmra.mxu1 %v7179_v63 }
 0x5ce   :  { %2480 = vmatprep.mubr.bf16.mxu1 %v7180_v26 }
 0x5d2   :  { %4271 = vmatmul.mubr.msk.bf16.gmra.mxu0 %vm360_vm2, %v7181_v31  ;;  %v6133_v31 = vld [vmem:[%s6795_s5] ss:$0 sm:$0xff] }
 0x5d3   :  { %4274 = vmatprep.mubr.msk.bf16.mxu0 %vm4688_vm1, %v7025_v41 }
 0x5d5   :  { %2481 = vmatmul.mubr.bf16.gmra.mxu1 %v7182_v16  ;;  %v7202_v16 = vld [vmem:[#allocation39_spill] sm:$0xff] }
 0x5d6   :  { %2488 = vmatprep.mubr.bf16.mxu1 %v7183_v20 }
 0x5da   :  { %4275 = vmatmul.mubr.msk.bf16.gmra.mxu0 %vm360_vm2, %v7184_v24 }
 0x5db   :  { %4278 = vmatprep.mubr.msk.bf16.mxu0 %vm4688_vm1, %v7025_v41 }
 0x5dd   :  { %2489 = vmatmul.mubr.bf16.gmra.mxu1 %v7185_v28 }
 0x5de   :  { %2496 = vmatprep.mubr.bf16.mxu1 %v7186_v32 }
 0x5e2   :  { %4279 = vmatmul.mubr.msk.bf16.gmra.mxu0 %vm360_vm2, %v7187_v35 }
 0x5e3   :  { %4282 = vmatprep.mubr.msk.bf16.mxu0 %vm4688_vm1, %v7025_v41 }
 0x5e5   :  { %2497 = vmatmul.mubr.bf16.gmra.mxu1 %v7188_v39 }
 0x5e6   :  { %2504 = vmatprep.mubr.bf16.mxu1 %v7189_v43 }
 0x5ea   :  { %4283 = vmatmul.mubr.msk.bf16.gmra.mxu0 %vm360_vm2, %v7190_v47  ;;  %v7203_v47 = vld [vmem:[#allocation40_spill] sm:$0xff] }
 0x5eb   :  { %4286 = vmatprep.mubr.msk.bf16.mxu0 %vm4688_vm1, %v7025_v41 }
 0x5ed   :  { %2505 = vmatmul.mubr.bf16.gmra.mxu1 %v7191_v51 }
 0x5ee   :  { %2512 = vmatprep.mubr.bf16.mxu1 %v7192_v55 }
 0x5f2   :  { %4287 = vmatmul.mubr.msk.bf16.gmra.mxu0 %vm360_vm2, %v7193_v57 }
 0x5f3   :  { %4290 = vmatprep.mubr.msk.bf16.mxu0 %vm4688_vm1, %v7025_v41 }
 0x5f5   :  { %2513 = vmatmul.mubr.bf16.gmra.mxu1 %v7194_v60 }
 0x5f6   :  { %2520 = vmatprep.mubr.bf16.mxu1 %v7195_v62 }
 0x5fa   :  { %4291 = vmatmul.mubr.msk.bf16.gmra.mxu0 %vm360_vm2, %v7196_v4 }
 0x5fb   :  { %4294 = vmatprep.mubr.msk.bf16.mxu0 %vm4688_vm1, %v7025_v41 }
 0x5fd   :  { %2521 = vmatmul.mubr.bf16.gmra.mxu1 %v7197_v6 }
 0x5fe   :  { %2528 = vmatprep.mubr.bf16.mxu1 %v7198_v7  ;;  %v7204_v7 = vld [vmem:[#allocation41_spill] sm:$0xff] }
 0x602   :  { %4295 = vmatmul.mubr.msk.bf16.gmra.mxu0 %vm360_vm2, %v7199_v8 }
 0x603   :  { %4298 = vmatprep.mubr.msk.bf16.mxu0 %vm4688_vm1, %v7025_v41 }
 0x605   :  { %2529 = vmatmul.mubr.bf16.gmra.mxu1 %v7200_v10 }
 0x60a   :  { %4299 = vmatmul.mubr.msk.bf16.gmra.mxu0 %vm360_vm2, %v7201_v13 }
 0x635   :  { %v2386_v15 = vpop.f32.mrf.mxu1 }
 0x636   :  { %v2387_v21 = vadd.f32 %v2386_v15, %v5840_v19 }
 0x637   :  { %v2388_v18 = vpop.f32.mrf.mxu1 }
 0x639   :  { %v2389_v1 = vpop.f32.mrf.mxu1 }
 0x63a   :  { %v2571_v25 = vpop.f32.mrf.mxu0  ;;  %v2390_v41 = vadd.f32 %v5838_v59, %v2389_v1 }
 0x63b   :  { %v2572_v22 = vadd.f32 %v2571_v25, %v2387_v21  ;;  %v2391_v63 = vpop.f32.mrf.mxu1  ;;  %v7205_v25 = vld [vmem:[#allocation42_spill] sm:$0xff] }
 0x63c   :  { %v4228_v26 = vpop.f32.mrf.mxu0 }
 0x63d   :  { %v2722_v20 = vmul.f32 %v2572_v22, %v7202_v16  ;;  %v2394_v24 = vpop.f32.mrf.mxu1 }
 0x63e   :  { %v2574_v28 = vpop.f32.mrf.mxu0  ;;  %v2395_v43 = vadd.f32 %v2394_v24, %v5844_v42 }
 0x63f   :  { %v2575_v32 = vadd.f32 %v2574_v28, %v2390_v41  ;;  %v2396_v35 = vpop.f32.mrf.mxu1  ;;  %v2767_v19 = vadd.f32 %v6133_v31, %v2722_v20  ;;  %v7206_v28 = vld [vmem:[#allocation43_spill] sm:$0xff] }
 0x640   :  { %v4229_v39 = vpop.f32.mrf.mxu0 }
 0x641   :  { %v2723_v51 = vmul.f32 %v2575_v32, %v7203_v47  ;;  %v2397_v55 = vpop.f32.mrf.mxu1  ;;  %4334 = vmatprep.mubr.f32.mxu0 %v2767_v19 }
 0x642   :  { %v2579_v57 = vpop.f32.mrf.mxu0  ;;  %v2398_v6 = vadd.f32 %v5842_v56, %v2397_v55  ;;  %v7207_v55 = vld [vmem:[#allocation44_spill] sm:$0xff] }
 0x643   :  { %v2768_v60 = vadd.f32 %v6133_v31, %v2723_v51  ;;  %v2580_v62 = vadd.f32 %v2579_v57, %v2395_v43  ;;  %v2399_v59 = vpop.f32.mrf.mxu1 }
 0x644   :  { %v4232_v4 = vpop.f32.mrf.mxu0 }
 0x645   :  { %v2724_v8 = vmul.f32 %v2580_v62, %v7204_v7  ;;  %v2402_v10 = vpop.f32.mrf.mxu1  ;;  %4335 = vmatmul.mubr.f32.vlgmr.msra.gmra.mxu0 %v2768_v60 }
 0x646   :  { %v2582_v13 = vpop.f32.mrf.mxu0  ;;  %v2403_v1 = vadd.f32 %v2402_v10, %v5848_v52 }
 0x647   :  { %v2583_v15 = vadd.f32 %v2582_v13, %v2398_v6  ;;  %v2404_v18 = vpop.f32.mrf.mxu1  ;;  %v2769_v42 = vadd.f32 %v6133_v31, %v2724_v8  ;;  %v7208_v8 = vld [vmem:[#allocation45_spill] sm:$0xff] }
 0x648   :  { %v4233_v21 = vpop.f32.mrf.mxu0 }
 0x649   :  { %v2725_v22 = vmul.f32 %v2583_v15, %v7205_v25  ;;  %v2405_v63 = vpop.f32.mrf.mxu1  ;;  %4337 = vmatprep.mubr.f32.mxu0 %v2769_v42  ;;  %v7209_v25 = vld [vmem:[#allocation46_spill] sm:$0xff] }
 0x64a   :  { %v2587_v26 = vpop.f32.mrf.mxu0  ;;  %v2406_v24 = vadd.f32 %v5846_v61, %v2405_v63 }
 0x64b   :  { %v2770_v41 = vadd.f32 %v6133_v31, %v2725_v22  ;;  %v2588_v56 = vadd.f32 %v2587_v26, %v2403_v1  ;;  %v2407_v16 = vpop.f32.mrf.mxu1 }
 0x64c   :  { %v4236_v20 = vpop.f32.mrf.mxu0 }
 0x64d   :  { %v2726_v32 = vmul.f32 %v2588_v56, %v7206_v28  ;;  %v2410_v35 = vpop.f32.mrf.mxu1  ;;  %4338 = vmatmul.mubr.f32.gmra.mxu0 %v2770_v41 }
 0x64e   :  { %v2590_v19 = vpop.f32.mrf.mxu0  ;;  %v2411_v51 = vadd.f32 %v2410_v35, %v5852_v40 }
 0x64f   :  { %v2591_v39 = vadd.f32 %v2590_v19, %v2406_v24  ;;  %v2412_v43 = vpop.f32.mrf.mxu1  ;;  %v2771_v52 = vadd.f32 %v6133_v31, %v2726_v32  ;;  %v7210_v24 = vld [vmem:[#allocation47_spill] sm:$0xff] }
 0x650   :  { %v4237_v47 = vpop.f32.mrf.mxu0 }
 0x651   :  { %v2727_v57 = vmul.f32 %v2591_v39, %v7207_v55  ;;  %v2413_v60 = vpop.f32.mrf.mxu1  ;;  %4340 = vmatprep.mubr.f32.mxu0 %v2771_v52  ;;  %v7211_v47 = vld [vmem:[#allocation48_spill] sm:$0xff] }
 0x652   :  { %v2595_v62 = vpop.f32.mrf.mxu0  ;;  %v2414_v7 = vadd.f32 %v5850_v14, %v2413_v60 }
 0x653   :  { %v2772_v59 = vadd.f32 %v6133_v31, %v2727_v57  ;;  %v2596_v61 = vadd.f32 %v2595_v62, %v2411_v51  ;;  %v2415_v4 = vpop.f32.mrf.mxu1 }
 0x654   :  { %v4240_v6 = vpop.f32.mrf.mxu0  ;;  %v7212_v4 = vld [vmem:[#allocation49_spill] sm:$0xff] }
 0x655   :  { %v2728_v10 = vmul.f32 %v2596_v61, %v7208_v8  ;;  %v2418_v13 = vpop.f32.mrf.mxu1  ;;  %4341 = vmatmul.mubr.f32.gmra.mxu0 %v2772_v59 }
 0x656   :  { %v2598_v15 = vpop.f32.mrf.mxu0  ;;  %v2419_v1 = vadd.f32 %v2418_v13, %v5856_v58 }
 0x657   :  { %v2599_v18 = vadd.f32 %v2598_v15, %v2414_v7  ;;  %v2420_v42 = vpop.f32.mrf.mxu1  ;;  %v2773_v40 = vadd.f32 %v6133_v31, %v2728_v10 }
 0x658   :  { %v4241_v21 = vpop.f32.mrf.mxu0  ;;  %v7213_v42 = vld [vmem:[#allocation50_spill] sm:$0xff] }
 0x659   :  { %v2729_v22 = vmul.f32 %v2599_v18, %v7209_v25  ;;  %v2421_v63 = vpop.f32.mrf.mxu1  ;;  %4343 = vmatprep.mubr.f32.mxu1 %v2773_v40 }
 0x65a   :  { %v2603_v26 = vpop.f32.mrf.mxu0  ;;  %v2422_v20 = vadd.f32 %v5854_v48, %v2421_v63 }
 0x65b   :  { %v2774_v41 = vadd.f32 %v6133_v31, %v2729_v22  ;;  %v2604_v14 = vadd.f32 %v2603_v26, %v2419_v1  ;;  %v2423_v56 = vpop.f32.mrf.mxu1 }
 0x65c   :  { %v4244_v16 = vpop.f32.mrf.mxu0 }
 0x65d   :  { %v2730_v28 = vmul.f32 %v2604_v14, %v7210_v24  ;;  %v2426_v32 = vpop.f32.mrf.mxu1  ;;  %4344 = vmatmul.mubr.f32.vlgmr.msra.gmra.mxu1 %v2774_v41 }
 0x65e   :  { %v2606_v35 = vpop.f32.mrf.mxu0  ;;  %v2427_v52 = vadd.f32 %v2426_v32, %v5860_v23  ;;  %v7214_v32 = vld [vmem:[#allocation52_spill] sm:$0xff] }
 0x65f   :  { %v2607_v19 = vadd.f32 %v2606_v35, %v2422_v20  ;;  %v2428_v39 = vpop.f32.mrf.mxu1  ;;  %v2775_v58 = vadd.f32 %v6133_v31, %v2730_v28 }
 0x660   :  { %v4245_v43 = vpop.f32.mrf.mxu0 }
 0x661   :  { %v2731_v51 = vmul.f32 %v2607_v19, %v7211_v47  ;;  %v2429_v55 = vpop.f32.mrf.mxu1  ;;  %4346 = vmatprep.mubr.f32.mxu1 %v2775_v58 }
 0x662   :  { %v2611_v57 = vpop.f32.mrf.mxu0  ;;  %v2430_v61 = vadd.f32 %v5858_v29, %v2429_v55 }
 0x663   :  { %v2776_v60 = vadd.f32 %v6133_v31, %v2731_v51  ;;  %v2612_v48 = vadd.f32 %v2611_v57, %v2427_v52  ;;  %v2431_v62 = vpop.f32.mrf.mxu1 }
 0x664   :  { %v4248_v59 = vpop.f32.mrf.mxu0 }
 0x665   :  { %v2732_v6 = vmul.f32 %v2612_v48, %v7212_v4  ;;  %v2434_v7 = vpop.f32.mrf.mxu1  ;;  %4347 = vmatmul.mubr.f32.gmra.mxu1 %v2776_v60 }
 0x666   :  { %v2614_v8 = vpop.f32.mrf.mxu0  ;;  %v2435_v18 = vadd.f32 %v2434_v7, %v5864_v0 }
 0x667   :  { %v2615_v10 = vadd.f32 %v2614_v8, %v2430_v61  ;;  %v2436_v13 = vpop.f32.mrf.mxu1  ;;  %v2777_v23 = vadd.f32 %v6133_v31, %v2732_v6 }
 0x668   :  { %v4249_v15 = vpop.f32.mrf.mxu0 }
 0x669   :  { %v2733_v40 = vmul.f32 %v2615_v10, %v7213_v42  ;;  %v2437_v21 = vpop.f32.mrf.mxu1  ;;  %4349 = vmatprep.mubr.f32.mxu1 %v2777_v23  ;;  %v7215_v10 = vld [vmem:[#allocation55_spill] sm:$0xff] }
 0x66a   :  { %v2619_v1 = vpop.f32.mrf.mxu0  ;;  %v2438_v26 = vadd.f32 %v5862_v49, %v2437_v21  ;;  %v7216_v21 = vld [vmem:[#allocation56_spill] sm:$0xff] }
 0x66b   :  { %v2778_v25 = vadd.f32 %v6133_v31, %v2733_v40  ;;  %v2620_v29 = vadd.f32 %v2619_v1, %v2435_v18  ;;  %v2439_v22 = vpop.f32.mrf.mxu1 }
 0x66c   :  { %v4252_v63 = vpop.f32.mrf.mxu0 }
 0x66d   :  { %v2734_v41 = vmul.f32 %v2620_v29, %v7127_v53  ;;  %v2442_v14 = vpop.f32.mrf.mxu1  ;;  %4350 = vmatmul.mubr.f32.gmra.mxu1 %v2778_v25 }
 0x66e   :  { %v2622_v56 = vpop.f32.mrf.mxu0  ;;  %v2443_v28 = vadd.f32 %v2442_v14, %v5868_v2  ;;  %v7217_v14 = vld [vmem:[#allocation57_spill] sm:$0xff] }
 0x66f   :  { %v2623_v16 = vadd.f32 %v2622_v56, %v2438_v26  ;;  %v2444_v20 = vpop.f32.mrf.mxu1  ;;  %v2779_v0 = vadd.f32 %v6133_v31, %v2734_v41 }
 0x670   :  { %v4253_v24 = vpop.f32.mrf.mxu0 }
 0x671   :  { %v2735_v35 = vmul.f32 %v2623_v16, %v7214_v32  ;;  %v2445_v19 = vpop.f32.mrf.mxu1  ;;  %4352 = vmatprep.mubr.f32.mxu1 %v2779_v0 }
 0x672   :  { %v2627_v39 = vpop.f32.mrf.mxu0  ;;  %v2446_v52 = vadd.f32 %v5866_v46, %v2445_v19 }
 0x673   :  { %v2780_v58 = vadd.f32 %v6133_v31, %v2735_v35  ;;  %v2628_v49 = vadd.f32 %v2627_v39, %v2443_v28  ;;  %v2447_v43 = vpop.f32.mrf.mxu1  ;;  %v7218_v35 = vld [vmem:[#allocation58_spill] sm:$0xff] }
 0x674   :  { %v4256_v53 = vpop.f32.mrf.mxu0 }
 0x675   :  { %v2736_v47 = vmul.f32 %v2628_v49, %v7131_v11  ;;  %v2450_v51 = vpop.f32.mrf.mxu1  ;;  %4353 = vmatmul.mubr.f32.gmra.mxu1 %v2780_v58 }
 0x676   :  { %v2630_v55 = vpop.f32.mrf.mxu0  ;;  %v2451_v62 = vadd.f32 %v2450_v51, %v5889_v45 }
 0x677   :  { %v2631_v57 = vadd.f32 %v2630_v55, %v2446_v52  ;;  %v2452_v60 = vpop.f32.mrf.mxu1  ;;  %v2781_v2 = vadd.f32 %v6133_v31, %v2736_v47  ;;  %v7219_v47 = vld [vmem:[#allocation59_spill] sm:$0xff] }
 0x678   :  { %v4257_v48 = vpop.f32.mrf.mxu0 }
 0x679   :  { %v2737_v59 = vmul.f32 %v2631_v57, %v7132_v36  ;;  %v2453_v61 = vpop.f32.mrf.mxu1  ;;  %4355 = vmatprep.mubr.f32.mxu1 %v2781_v2 }
 0x67a   :  { %v2635_v4 = vpop.f32.mrf.mxu0  ;;  %v2454_v8 = vadd.f32 %v5884_v3, %v2453_v61 }
 0x67b   :  { %v2782_v6 = vadd.f32 %v6133_v31, %v2737_v59  ;;  %v2636_v46 = vadd.f32 %v2635_v4, %v2451_v62  ;;  %v2455_v7 = vpop.f32.mrf.mxu1  ;;  %v7220_v59 = vld [vmem:[#allocation60_spill] sm:$0xff] }
 0x67c   :  { %v4260_v11 = vpop.f32.mrf.mxu0 }
 0x67d   :  { %v2738_v13 = vmul.f32 %v2636_v46, %v7215_v10  ;;  %v2458_v23 = vpop.f32.mrf.mxu1  ;;  %4356 = vmatmul.mubr.f32.gmra.mxu1 %v2782_v6  ;;  %v7221_v10 = vld [vmem:[#allocation61_spill] sm:$0xff] }
 0x67e   :  { %v2638_v15 = vpop.f32.mrf.mxu0  ;;  %v2459_v40 = vadd.f32 %v2458_v23, %v5899_v50 }
 0x67f   :  { %v2639_v18 = vadd.f32 %v2638_v15, %v2454_v8  ;;  %v2460_v42 = vpop.f32.mrf.mxu1  ;;  %v2783_v45 = vadd.f32 %v6133_v31, %v2738_v13 }
 0x680   :  { %v4261_v36 = vpop.f32.mrf.mxu0 }
 0x681   :  { %v2739_v1 = vmul.f32 %v2639_v18, %v7216_v21  ;;  %v2461_v25 = vpop.f32.mrf.mxu1  ;;  %4358 = vmatprep.mubr.f32.mxu1 %v2783_v45 }
 0x682   :  { %v2643_v29 = vpop.f32.mrf.mxu0  ;;  %v2462_v41 = vadd.f32 %v5894_v33, %v2461_v25 }
 0x683   :  { %v2784_v22 = vadd.f32 %v6133_v31, %v2739_v1  ;;  %v2644_v3 = vadd.f32 %v2643_v29, %v2459_v40  ;;  %v2463_v63 = vpop.f32.mrf.mxu1  ;;  %v7222_v40 = vld [vmem:[#allocation62_spill] sm:$0xff] }
 0x684   :  { %v4264_v26 = vpop.f32.mrf.mxu0  ;;  %v7223_v63 = vld [vmem:[#allocation5_spill] sm:$0xff] }
 0x685   :  { %v2740_v56 = vmul.f32 %v2644_v3, %v7217_v14  ;;  %v2466_v16 = vpop.f32.mrf.mxu1  ;;  %4359 = vmatmul.mubr.f32.gmra.mxu1 %v2784_v22 }
 0x686   :  { %v2646_v20 = vpop.f32.mrf.mxu0  ;;  %v2467_v32 = vadd.f32 %v2466_v16, %v5904_v38 }
 0x687   :  { %v2647_v0 = vadd.f32 %v2646_v20, %v2462_v41  ;;  %v2468_v24 = vpop.f32.mrf.mxu1  ;;  %v2785_v50 = vadd.f32 %v6133_v31, %v2740_v56  ;;  %v7224_v41 = vld [vmem:[#allocation63_spill] sm:$0xff] }
 0x688   :  { %v4265_v28 = vpop.f32.mrf.mxu0 }
 0x689   :  { %v2741_v19 = vmul.f32 %v2647_v0, %v7218_v35  ;;  %v2469_v39 = vpop.f32.mrf.mxu1  ;;  %4361 = vmatprep.mubr.f32.mxu1 %v2785_v50  ;;  %v7225_v50 = vld [vmem:[#allocation77_spill] sm:$0xff] }
 0x68a   :  { %v2651_v58 = vpop.f32.mrf.mxu0  ;;  %v2470_v52 = vadd.f32 %v5901_v37, %v2469_v39 }
 0x68b   :  { %v2786_v49 = vadd.f32 %v6133_v31, %v2741_v19  ;;  %v2652_v33 = vadd.f32 %v2651_v58, %v2467_v32  ;;  %v2471_v43 = vpop.f32.mrf.mxu1  ;;  %v7226_v32 = vld [vmem:[#allocation64_spill] sm:$0xff] }
 0x68c   :  { %v4268_v53 = vpop.f32.mrf.mxu0 }
 0x68d   :  { %v2742_v51 = vmul.f32 %v2652_v33, %v7219_v47  ;;  %v2474_v55 = vpop.f32.mrf.mxu1  ;;  %4362 = vmatmul.mubr.f32.gmra.mxu1 %v2786_v49  ;;  %v7227_v53 = vld [vmem:[#allocation78_spill] sm:$0xff]  ;;  %v7228_v47 = vld [vmem:[#allocation65_spill] sm:$0xff] }
 0x68e   :  { %v2654_v57 = vpop.f32.mrf.mxu0  ;;  %v2475_v62 = vadd.f32 %v2474_v55, %v5908_v44 }
 0x68f   :  { %v2655_v60 = vadd.f32 %v2654_v57, %v2470_v52  ;;  %v2476_v2 = vpop.f32.mrf.mxu1  ;;  %v2787_v38 = vadd.f32 %v6133_v31, %v2742_v51 }
 0x690   :  { %v4269_v48 = vpop.f32.mrf.mxu0 }
 0x691   :  { %v2743_v61 = vmul.f32 %v2655_v60, %v7220_v59  ;;  %v2477_v4 = vpop.f32.mrf.mxu1  ;;  %4364 = vmatprep.mubr.f32.mxu1 %v2787_v38 }
 0x692   :  { %v2659_v6 = vpop.f32.mrf.mxu0  ;;  %v2478_v8 = vadd.f32 %v5906_v34, %v2477_v4 }
 0x693   :  { %v2788_v46 = vadd.f32 %v6133_v31, %v2743_v61  ;;  %v2660_v37 = vadd.f32 %v2659_v6, %v2475_v62  ;;  %v2479_v7 = vpop.f32.mrf.mxu1  ;;  %v7229_v62 = vld [vmem:[#allocation79_spill] sm:$0xff]  ;;  %v7230_v61 = vld [vmem:[#allocation66_spill] sm:$0xff] }
 0x694   :  { %v4272_v11 = vpop.f32.mrf.mxu0 }
 0x695   :  { %v2744_v13 = vmul.f32 %v2660_v37, %v7221_v10  ;;  %v2482_v23 = vpop.f32.mrf.mxu1  ;;  %4365 = vmatmul.mubr.f32.gmra.mxu1 %v2788_v46  ;;  %v7231_v10 = vld [vmem:[#allocation80_spill] sm:$0xff] }
 0x696   :  { %v2662_v15 = vpop.f32.mrf.mxu0  ;;  %v2483_v36 = vadd.f32 %v2482_v23, %v5912_v12  ;;  %v7232_v23 = vld [vmem:[#allocation67_spill] sm:$0xff] }
 0x697   :  { %v2663_v18 = vadd.f32 %v2662_v15, %v2478_v8  ;;  %v2484_v42 = vpop.f32.mrf.mxu1  ;;  %v2789_v44 = vadd.f32 %v6133_v31, %v2744_v13 }
 0x698   :  { %v4273_v45 = vpop.f32.mrf.mxu0 }
 0x699   :  { %v2745_v21 = vmul.f32 %v2663_v18, %v7222_v40  ;;  %v2485_v1 = vpop.f32.mrf.mxu1  ;;  %4367 = vmatprep.mubr.f32.mxu1 %v2789_v44 }
 0x69a   :  { %v2667_v25 = vpop.f32.mrf.mxu0  ;;  %v2486_v26 = vadd.f32 %v7223_v63, %v2485_v1 }
 0x69b   :  { %v2790_v29 = vadd.f32 %v6133_v31, %v2745_v21  ;;  %v2668_v34 = vadd.f32 %v2667_v25, %v2483_v36  ;;  %v2487_v22 = vpop.f32.mrf.mxu1  ;;  %v7233_v21 = vld [vmem:[#allocation81_spill] sm:$0xff]  ;;  %v7234_v25 = vld [vmem:[#allocation68_spill] sm:$0xff] }
 0x69c   :  { %v4276_v3 = vpop.f32.mrf.mxu0 }
 0x69d   :  { %v2746_v14 = vmul.f32 %v2668_v34, %v7224_v41  ;;  %v2490_v56 = vpop.f32.mrf.mxu1  ;;  %4368 = vmatmul.mubr.f32.gmra.mxu1 %v2790_v29 }
 0x69e   :  { %v2670_v16 = vpop.f32.mrf.mxu0  ;;  %v2491_v28 = vadd.f32 %v2490_v56, %v7225_v50 }
 0x69f   :  { %v2671_v20 = vadd.f32 %v2670_v16, %v2486_v26  ;;  %v2492_v0 = vpop.f32.mrf.mxu1  ;;  %v2791_v12 = vadd.f32 %v6133_v31, %v2746_v14  ;;  %v7235_v14 = vld [vmem:[#allocation82_spill] sm:$0xff]  ;;  %v7236_v16 = vld [vmem:[#allocation69_spill] sm:$0xff] }
 0x6a0   :  { %v4277_v24 = vpop.f32.mrf.mxu0 }
 0x6a1   :  { %v2747_v35 = vmul.f32 %v2671_v20, %v7226_v32  ;;  %v2493_v19 = vpop.f32.mrf.mxu1  ;;  %4370 = vmatprep.mubr.f32.mxu1 %v2791_v12 }
 0x6a2   :  { %v2675_v39 = vpop.f32.mrf.mxu0  ;;  %v2494_v52 = vadd.f32 %v7227_v53, %v2493_v19  ;;  %v7237_v19 = vld [vmem:[#allocation70_spill] sm:$0xff] }
 0x6a3   :  { %v2792_v58 = vadd.f32 %v6133_v31, %v2747_v35  ;;  %v2676_v49 = vadd.f32 %v2675_v39, %v2491_v28  ;;  %v2495_v33 = vpop.f32.mrf.mxu1 }
 0x6a4   :  { %v4280_v43 = vpop.f32.mrf.mxu0 }
 0x6a5   :  { %v2748_v51 = vmul.f32 %v2676_v49, %v7228_v47  ;;  %v2498_v55 = vpop.f32.mrf.mxu1  ;;  %4371 = vmatmul.mubr.f32.gmra.mxu1 %v2792_v58 }
 0x6a6   :  { %v2678_v57 = vpop.f32.mrf.mxu0  ;;  %v2499_v59 = vadd.f32 %v2498_v55, %v7229_v62 }
 0x6a7   :  { %v2679_v60 = vadd.f32 %v2678_v57, %v2494_v52  ;;  %v2500_v2 = vpop.f32.mrf.mxu1  ;;  %v2793_v38 = vadd.f32 %v6133_v31, %v2748_v51  ;;  %v7238_v51 = vld [vmem:[#allocation71_spill] sm:$0xff] }
 0x6a8   :  { %v4281_v48 = vpop.f32.mrf.mxu0 }
 0x6a9   :  { %v2749_v4 = vmul.f32 %v2679_v60, %v7230_v61  ;;  %v2501_v6 = vpop.f32.mrf.mxu1  ;;  %4373 = vmatprep.mubr.f32.mxu1 %v2793_v38 }
 0x6aa   :  { %v2683_v46 = vpop.f32.mrf.mxu0  ;;  %v2502_v13 = vadd.f32 %v7231_v10, %v2501_v6 }
 0x6ab   :  { %v2794_v37 = vadd.f32 %v6133_v31, %v2749_v4  ;;  %v2684_v7 = vadd.f32 %v2683_v46, %v2499_v59  ;;  %v2503_v11 = vpop.f32.mrf.mxu1  ;;  %v7239_v59 = vld [vmem:[#allocation72_spill] sm:$0xff] }
 0x6ac   :  { %v4284_v8 = vpop.f32.mrf.mxu0 }
 0x6ad   :  { %v2750_v15 = vmul.f32 %v2684_v7, %v7232_v23  ;;  %v2506_v18 = vpop.f32.mrf.mxu1  ;;  %4374 = vmatmul.mubr.f32.gmra.mxu1 %v2794_v37  ;;  %v7240_v8 = vld [vmem:[#allocation73_spill] sm:$0xff] }
 0x6ae   :  { %v2686_v42 = vpop.f32.mrf.mxu0  ;;  %v2507_v1 = vadd.f32 %v2506_v18, %v7233_v21 }
 0x6af   :  { %v2687_v44 = vadd.f32 %v2686_v42, %v2502_v13  ;;  %v2508_v45 = vpop.f32.mrf.mxu1  ;;  %v2795_v36 = vadd.f32 %v6133_v31, %v2750_v15 }
 0x6b0   :  { %v4285_v40 = vpop.f32.mrf.mxu0  ;;  %v7241_v45 = vld [vmem:[#allocation74_spill] sm:$0xff] }
 0x6b1   :  { %v2751_v29 = vmul.f32 %v2687_v44, %v7234_v25  ;;  %v2509_v34 = vpop.f32.mrf.mxu1  ;;  %4376 = vmatprep.mubr.f32.mxu1 %v2795_v36 }
 0x6b2   :  { %v2691_v22 = vpop.f32.mrf.mxu0  ;;  %v2510_v56 = vadd.f32 %v7235_v14, %v2509_v34  ;;  %v7243_v14 = vld [vmem:[#allocation76_spill] sm:$0xff] }
 0x6b3   :  { %v2796_v3 = vadd.f32 %v6133_v31, %v2751_v29  ;;  %v2692_v63 = vadd.f32 %v2691_v22, %v2507_v1  ;;  %v2511_v26 = vpop.f32.mrf.mxu1  ;;  %v7242_v22 = vld [vmem:[#allocation75_spill] sm:$0xff] }
 0x6b4   :  { %v4288_v41 = vpop.f32.mrf.mxu0 }
 0x6b5   :  { %v2752_v20 = vmul.f32 %v2692_v63, %v7236_v16  ;;  %v2514_v0 = vpop.f32.mrf.mxu1  ;;  %4377 = vmatmul.mubr.f32.gmra.mxu1 %v2796_v3 }
 0x6b6   :  { %v2694_v12 = vpop.f32.mrf.mxu0  ;;  %v2515_v35 = vadd.f32 %v2514_v0, %v5939_v17  ;;  %v6251_v0 = vld [vmem:[%s6797_s7] ss:$0 sm:$0xff] }
 0x6b7   :  { %v2695_v24 = vadd.f32 %v2694_v12, %v2510_v56  ;;  %v2516_v50 = vpop.f32.mrf.mxu1  ;;  %v2797_v28 = vadd.f32 %v6133_v31, %v2752_v20  ;;  %v3121_v20 = vlaneseq }
 0x6b8   :  { %v4289_v32 = vpop.f32.mrf.mxu0 }
 0x6b9   :  { %v2753_v39 = vmul.f32 %v2695_v24, %v7237_v19  ;;  %v2517_v58 = vpop.f32.mrf.mxu1  ;;  %4379 = vmatprep.mubr.f32.mxu1 %v2797_v28 }
 0x6ba   :  { %v2699_v49 = vpop.f32.mrf.mxu0  ;;  %v2518_v47 = vadd.f32 %v5934_v27, %v2517_v58 }
 0x6bb   :  { %v2798_v33 = vadd.f32 %v6133_v31, %v2753_v39  ;;  %v2700_v43 = vadd.f32 %v2699_v49, %v2515_v35  ;;  %v2519_v53 = vpop.f32.mrf.mxu1 }
 0x6bc   :  { %v4292_v52 = vpop.f32.mrf.mxu0 }
 0x6bd   :  { %v2754_v55 = vmul.f32 %v2700_v43, %v7238_v51  ;;  %v2522_v57 = vpop.f32.mrf.mxu1  ;;  %4380 = vmatmul.mubr.f32.gmra.mxu1 %v2798_v33 }
 0x6be   :  { %v2702_v60 = vpop.f32.mrf.mxu0  ;;  %v2523_v62 = vadd.f32 %v2522_v57, %v5946_v30 }
 0x6bf   :  { %v2703_v2 = vadd.f32 %v2702_v60, %v2518_v47  ;;  %v2524_v38 = vpop.f32.mrf.mxu1  ;;  %v2799_v17 = vadd.f32 %v6133_v31, %v2754_v55 }
 0x6c0   :  { %v4293_v48 = vpop.f32.mrf.mxu0 }
 0x6c1   :  { %v2755_v61 = vmul.f32 %v2703_v2, %v7239_v59  ;;  %v2525_v4 = vpop.f32.mrf.mxu1  ;;  %4382 = vmatprep.mubr.f32.mxu1 %v2799_v17 }
 0x6c2   :  { %v2707_v6 = vpop.f32.mrf.mxu0  ;;  %v2526_v11 = vadd.f32 %v5941_v54, %v2525_v4 }
 0x6c3   :  { %v2800_v46 = vadd.f32 %v6133_v31, %v2755_v61  ;;  %v2708_v27 = vadd.f32 %v2707_v6, %v2523_v62  ;;  %v2527_v37 = vpop.f32.mrf.mxu1 }
 0x6c4   :  { %v4296_v7 = vpop.f32.mrf.mxu0 }
 0x6c5   :  { %v2756_v10 = vmul.f32 %v2708_v27, %v7240_v8  ;;  %v2530_v13 = vpop.f32.mrf.mxu1  ;;  %4383 = vmatmul.mubr.f32.gmra.mxu1 %v2800_v46 }
 0x6c6   :  { %v2710_v23 = vpop.f32.mrf.mxu0  ;;  %v2531_v44 = vadd.f32 %v2530_v13, %v5953_v9 }
 0x6c7   :  { %v2711_v15 = vadd.f32 %v2710_v23, %v2526_v11  ;;  %v2532_v18 = vpop.f32.mrf.mxu1  ;;  %v2801_v30 = vadd.f32 %v6133_v31, %v2756_v10 }
 0x6c8   :  { %v4297_v42 = vpop.f32.mrf.mxu0 }
 0x6c9   :  { %v2757_v36 = vmul.f32 %v2711_v15, %v7241_v45  ;;  %v2533_v40 = vpop.f32.mrf.mxu1  ;;  %4385 = vmatprep.mubr.f32.mxu1 %v2801_v30 }
 0x6ca   :  { %v2715_v21 = vpop.f32.mrf.mxu0  ;;  %v2534_v34 = vadd.f32 %v5951_v5, %v2533_v40  ;;  %v6253_v5 = vand.u32 127, %v3121_v20 }
 0x6cb   :  { %v2802_v1 = vadd.f32 %v6133_v31, %v2757_v36  ;;  %v2716_v54 = vadd.f32 %v2715_v21, %v2531_v44  ;;  %v2535_v25 = vpop.f32.mrf.mxu1 }
 0x6cc   :  { %v4300_v29 = vpop.f32.mrf.mxu0  ;;  %vm3123_vm4 = vcmp.lt.s32.totalorder %v6253_v5, 4 }
 0x6cd   :  { %v2758_v3 = vmul.f32 %v2716_v54, %v7242_v22  ;;  %4386 = vmatmul.mubr.f32.gmra.mxu1 %v2802_v1 }
 0x6ce   :  { %v2718_v63 = vpop.f32.mrf.mxu0 }
 0x6cf   :  { %v2719_v26 = vadd.f32 %v2718_v63, %v2534_v34  ;;  %v2803_v41 = vadd.f32 %v6133_v31, %v2758_v3 }
 0x6d0   :  { %v4301_v9 = vpop.f32.mrf.mxu0 }
 0x6d1   :  { %v2759_v56 = vmul.f32 %v2719_v26, %v7243_v14  ;;  %4388 = vmatprep.mubr.f32.mxu1 %v2803_v41 }
 0x6d3   :  { %v2804_v16 = vadd.f32 %v6133_v31, %v2759_v56 }
 0x6d5   :  { %4389 = vmatmul.mubr.f32.gmra.mxu1 %v2804_v16 }
 0x705   :  { %v4336_v12 = vpop.f32.mrf.mxu0 }
 0x706   :  { %v2900_v24 = vadd.f32 %v4336_v12, %v6251_v0 }
 0x707   :  { %v2894_v50 = vpop.f32.mrf.mxu0 }
 0x708   :  { %v3084_v28 = vmul.f32 5.0, %v2900_v24  ;;  %v2895_v32 = vadd.f32 %v6251_v0, %v2894_v50 }
 0x70a   :  { %v3083_v35 = vmul.f32 5.0, %v2895_v32  ;;  %v6260_v31 = vsel %vm3123_vm4, %v3084_v28, -1e+30 }
 0x70b   :  { %3164 = vmax.xlane.f32.xlu0 %v6260_v31 }
 0x70c   :  { %v6266_v58 = vsel %vm3123_vm4, %v3083_v35, -1e+30 }
 0x70d   :  { %v4339_v19 = vpop.f32.mrf.mxu0 }
 0x70e   :  { %v2910_v39 = vadd.f32 %v4339_v19, %v6251_v0 }
 0x70f   :  { %v2904_v49 = vpop.f32.mrf.mxu0  ;;  %3162 = vmax.xlane.f32.xlu0 %v6266_v58 }
 0x710   :  { %v3086_v33 = vmul.f32 5.0, %v2910_v39  ;;  %v2905_v43 = vadd.f32 %v6251_v0, %v2904_v49 }
 0x712   :  { %v3085_v53 = vmul.f32 5.0, %v2905_v43  ;;  %v6272_v52 = vsel %vm3123_vm4, %v3086_v33, -1e+30 }
 0x713   :  { %3168 = vmax.xlane.f32.xlu1 %v6272_v52 }
 0x714   :  { %v6277_v47 = vsel %vm3123_vm4, %v3085_v53, -1e+30 }
 0x715   :  { %v4342_v51 = vpop.f32.mrf.mxu0  ;;  %3166 = vmax.xlane.f32.xlu0 %v6277_v47 }
 0x716   :  { %v2920_v55 = vadd.f32 %v4342_v51, %v6251_v0 }
 0x717   :  { %v2914_v57 = vpop.f32.mrf.mxu0 }
 0x718   :  { %v3088_v60 = vmul.f32 5.0, %v2920_v55  ;;  %v2915_v2 = vadd.f32 %v6251_v0, %v2914_v57 }
 0x71a   :  { %v3087_v38 = vmul.f32 5.0, %v2915_v2  ;;  %v6284_v17 = vsel %vm3123_vm4, %v3088_v60, -1e+30 }
 0x71b   :  { %3172 = vmax.xlane.f32.xlu1 %v6284_v17 }
 0x71c   :  { %v6289_v48 = vsel %vm3123_vm4, %v3087_v38, -1e+30 }
 0x71d   :  { %v4345_v62 = vpop.f32.mrf.mxu1  ;;  %3170 = vmax.xlane.f32.xlu0 %v6289_v48 }
 0x71e   :  { %v2930_v59 = vadd.f32 %v4345_v62, %v6251_v0 }
 0x71f   :  { %v2924_v61 = vpop.f32.mrf.mxu1 }
 0x720   :  { %v3090_v4 = vmul.f32 5.0, %v2930_v59  ;;  %v2925_v6 = vadd.f32 %v6251_v0, %v2924_v61 }
 0x722   :  { %v3089_v46 = vmul.f32 5.0, %v2925_v6  ;;  %v6296_v27 = vsel %vm3123_vm4, %v3090_v4, -1e+30 }
 0x723   :  { %3176 = vmax.xlane.f32.xlu1 %v6296_v27 }
 0x724   :  { %v6301_v37 = vsel %vm3123_vm4, %v3089_v46, -1e+30 }
 0x725   :  { %v4348_v7 = vpop.f32.mrf.mxu1  ;;  %3174 = vmax.xlane.f32.xlu0 %v6301_v37 }
 0x726   :  { %v2940_v11 = vadd.f32 %v4348_v7, %v6251_v0 }
 0x727   :  { %v2934_v8 = vpop.f32.mrf.mxu1 }
 0x728   :  { %v3092_v10 = vmul.f32 5.0, %v2940_v11  ;;  %v2935_v13 = vadd.f32 %v6251_v0, %v2934_v8 }
 0x72a   :  { %v3091_v23 = vmul.f32 5.0, %v2935_v13  ;;  %v6308_v15 = vsel %vm3123_vm4, %v3092_v10, -1e+30 }
 0x72b   :  { %3180 = vmax.xlane.f32.xlu1 %v6308_v15 }
 0x72c   :  { %v6313_v18 = vsel %vm3123_vm4, %v3091_v23, -1e+30 }
 0x72d   :  { %v4351_v30 = vpop.f32.mrf.mxu1  ;;  %3178 = vmax.xlane.f32.xlu0 %v6313_v18 }
 0x72e   :  { %v2950_v42 = vadd.f32 %v4351_v30, %v6251_v0 }
 0x72f   :  { %v2944_v44 = vpop.f32.mrf.mxu1 }
 0x730   :  { %v3094_v45 = vmul.f32 5.0, %v2950_v42  ;;  %v2945_v36 = vadd.f32 %v6251_v0, %v2944_v44 }
 0x732   :  { %v3093_v40 = vmul.f32 5.0, %v2945_v36  ;;  %v6320_v21 = vsel %vm3123_vm4, %v3094_v45, -1e+30 }
 0x733   :  { %3184 = vmax.xlane.f32.xlu1 %v6320_v21 }
 0x734   :  { %v6325_v1 = vsel %vm3123_vm4, %v3093_v40, -1e+30 }
 0x735   :  { %v4354_v54 = vpop.f32.mrf.mxu1  ;;  %3182 = vmax.xlane.f32.xlu0 %v6325_v1 }
 0x736   :  { %v2960_v25 = vadd.f32 %v4354_v54, %v6251_v0 }
 0x737   :  { %v2954_v29 = vpop.f32.mrf.mxu1 }
 0x738   :  { %v3096_v34 = vmul.f32 5.0, %v2960_v25  ;;  %v2955_v22 = vadd.f32 %v6251_v0, %v2954_v29 }
 0x73a   :  { %v3095_v3 = vmul.f32 5.0, %v2955_v22  ;;  %v6332_v63 = vsel %vm3123_vm4, %v3096_v34, -1e+30 }
 0x73b   :  { %3188 = vmax.xlane.f32.xlu1 %v6332_v63 }
 0x73c   :  { %v6337_v26 = vsel %vm3123_vm4, %v3095_v3, -1e+30 }
 0x73d   :  { %v4357_v41 = vpop.f32.mrf.mxu1  ;;  %3186 = vmax.xlane.f32.xlu0 %v6337_v26 }
 0x73e   :  { %v2970_v9 = vadd.f32 %v4357_v41, %v6251_v0 }
 0x73f   :  { %v2964_v14 = vpop.f32.mrf.mxu1 }
 0x740   :  { %v3098_v56 = vmul.f32 5.0, %v2970_v9  ;;  %v2965_v16 = vadd.f32 %v6251_v0, %v2964_v14 }
 0x742   :  { %v3097_v20 = vmul.f32 5.0, %v2965_v16  ;;  %v6344_v12 = vsel %vm3123_vm4, %v3098_v56, -1e+30 }
 0x743   :  { %3192 = vmax.xlane.f32.xlu1 %v6344_v12 }
 0x744   :  { %v6349_v24 = vsel %vm3123_vm4, %v3097_v20, -1e+30 }
 0x745   :  { %v4360_v50 = vpop.f32.mrf.mxu1  ;;  %3190 = vmax.xlane.f32.xlu0 %v6349_v24 }
 0x746   :  { %v2980_v28 = vadd.f32 %v4360_v50, %v6251_v0 }
 0x747   :  { %v2974_v32 = vpop.f32.mrf.mxu1 }
 0x748   :  { %v3100_v35 = vmul.f32 5.0, %v2980_v28  ;;  %v2975_v19 = vadd.f32 %v6251_v0, %v2974_v32 }
 0x74a   :  { %v3099_v39 = vmul.f32 5.0, %v2975_v19  ;;  %v6356_v49 = vsel %vm3123_vm4, %v3100_v35, -1e+30 }
 0x74b   :  { %3196 = vmax.xlane.f32.xlu1 %v6356_v49 }
 0x74c   :  { %v6361_v33 = vsel %vm3123_vm4, %v3099_v39, -1e+30 }
 0x74d   :  { %v4363_v43 = vpop.f32.mrf.mxu1  ;;  %3194 = vmax.xlane.f32.xlu0 %v6361_v33 }
 0x74e   :  { %v2990_v53 = vadd.f32 %v4363_v43, %v6251_v0 }
 0x74f   :  { %v2984_v51 = vpop.f32.mrf.mxu1 }
 0x750   :  { %v3102_v55 = vmul.f32 5.0, %v2990_v53  ;;  %v2985_v57 = vadd.f32 %v6251_v0, %v2984_v51 }
 0x752   :  { %v3101_v60 = vmul.f32 5.0, %v2985_v57  ;;  %v6368_v2 = vsel %vm3123_vm4, %v3102_v55, -1e+30 }
 0x753   :  { %3200 = vmax.xlane.f32.xlu1 %v6368_v2 }
 0x754   :  { %v6373_v38 = vsel %vm3123_vm4, %v3101_v60, -1e+30 }
 0x755   :  { %v4366_v62 = vpop.f32.mrf.mxu1  ;;  %3198 = vmax.xlane.f32.xlu0 %v6373_v38 }
 0x756   :  { %v3000_v59 = vadd.f32 %v4366_v62, %v6251_v0 }
 0x757   :  { %v2994_v61 = vpop.f32.mrf.mxu1 }
 0x758   :  { %v3104_v4 = vmul.f32 5.0, %v3000_v59  ;;  %v2995_v6 = vadd.f32 %v6251_v0, %v2994_v61 }
 0x75a   :  { %v3103_v46 = vmul.f32 5.0, %v2995_v6  ;;  %v6380_v7 = vsel %vm3123_vm4, %v3104_v4, -1e+30 }
 0x75b   :  { %3204 = vmax.xlane.f32.xlu1 %v6380_v7 }
 0x75c   :  { %v6385_v11 = vsel %vm3123_vm4, %v3103_v46, -1e+30 }
 0x75d   :  { %v4369_v8 = vpop.f32.mrf.mxu1  ;;  %3202 = vmax.xlane.f32.xlu0 %v6385_v11 }
 0x75e   :  { %v3010_v10 = vadd.f32 %v4369_v8, %v6251_v0 }
 0x75f   :  { %v3004_v13 = vpop.f32.mrf.mxu1 }
 0x760   :  { %v3106_v23 = vmul.f32 5.0, %v3010_v10  ;;  %v3005_v30 = vadd.f32 %v6251_v0, %v3004_v13 }
 0x762   :  { %v3105_v42 = vmul.f32 5.0, %v3005_v30  ;;  %v6392_v44 = vsel %vm3123_vm4, %v3106_v23, -1e+30 }
 0x763   :  { %3208 = vmax.xlane.f32.xlu1 %v6392_v44 }
 0x764   :  { %v6397_v45 = vsel %vm3123_vm4, %v3105_v42, -1e+30 }
 0x765   :  { %v4372_v36 = vpop.f32.mrf.mxu1  ;;  %3206 = vmax.xlane.f32.xlu0 %v6397_v45 }
 0x766   :  { %v3020_v40 = vadd.f32 %v4372_v36, %v6251_v0 }
 0x767   :  { %v3014_v54 = vpop.f32.mrf.mxu1 }
 0x768   :  { %v3108_v25 = vmul.f32 5.0, %v3020_v40  ;;  %v3015_v29 = vadd.f32 %v6251_v0, %v3014_v54 }
 0x76a   :  { %v3107_v34 = vmul.f32 5.0, %v3015_v29  ;;  %v6404_v22 = vsel %vm3123_vm4, %v3108_v25, -1e+30 }
 0x76b   :  { %3212 = vmax.xlane.f32.xlu1 %v6404_v22 }
 0x76c   :  { %v6409_v3 = vsel %vm3123_vm4, %v3107_v34, -1e+30 }
 0x76d   :  { %v4375_v41 = vpop.f32.mrf.mxu1  ;;  %3210 = vmax.xlane.f32.xlu0 %v6409_v3 }
 0x76e   :  { %v3030_v9 = vadd.f32 %v4375_v41, %v6251_v0 }
 0x76f   :  { %v3024_v14 = vpop.f32.mrf.mxu1 }
 0x770   :  { %v3110_v56 = vmul.f32 5.0, %v3030_v9  ;;  %v3025_v16 = vadd.f32 %v6251_v0, %v3024_v14 }
 0x772   :  { %v3109_v20 = vmul.f32 5.0, %v3025_v16  ;;  %v6416_v50 = vsel %vm3123_vm4, %v3110_v56, -1e+30 }
 0x773   :  { %3216 = vmax.xlane.f32.xlu1 %v6416_v50 }
 0x774   :  { %v6421_v28 = vsel %vm3123_vm4, %v3109_v20, -1e+30 }
 0x775   :  { %v4378_v32 = vpop.f32.mrf.mxu1  ;;  %3214 = vmax.xlane.f32.xlu0 %v6421_v28 }
 0x776   :  { %v3040_v35 = vadd.f32 %v4378_v32, %v6251_v0 }
 0x777   :  { %v3034_v19 = vpop.f32.mrf.mxu1 }
 0x778   :  { %v3112_v39 = vmul.f32 5.0, %v3040_v35  ;;  %v3035_v43 = vadd.f32 %v6251_v0, %v3034_v19 }
 0x77a   :  { %v3111_v53 = vmul.f32 5.0, %v3035_v43  ;;  %v6428_v51 = vsel %vm3123_vm4, %v3112_v39, -1e+30 }
 0x77b   :  { %3220 = vmax.xlane.f32.xlu1 %v6428_v51 }
 0x77c   :  { %v6433_v55 = vsel %vm3123_vm4, %v3111_v53, -1e+30 }
 0x77d   :  { %v4381_v57 = vpop.f32.mrf.mxu1  ;;  %3218 = vmax.xlane.f32.xlu0 %v6433_v55 }
 0x77e   :  { %v3050_v60 = vadd.f32 %v4381_v57, %v6251_v0 }
 0x77f   :  { %v3044_v62 = vpop.f32.mrf.mxu1 }
 0x780   :  { %v3114_v59 = vmul.f32 5.0, %v3050_v60  ;;  %v3045_v61 = vadd.f32 %v6251_v0, %v3044_v62 }
 0x782   :  { %v3113_v4 = vmul.f32 5.0, %v3045_v61  ;;  %v6440_v6 = vsel %vm3123_vm4, %v3114_v59, -1e+30 }
 0x783   :  { %3224 = vmax.xlane.f32.xlu1 %v6440_v6 }
 0x784   :  { %v6445_v46 = vsel %vm3123_vm4, %v3113_v4, -1e+30 }
 0x785   :  { %v4384_v8 = vpop.f32.mrf.mxu1  ;;  %3222 = vmax.xlane.f32.xlu0 %v6445_v46 }
 0x786   :  { %v3060_v10 = vadd.f32 %v4384_v8, %v6251_v0 }
 0x787   :  { %v3054_v13 = vpop.f32.mrf.mxu1 }
 0x788   :  { %v3116_v23 = vmul.f32 5.0, %v3060_v10  ;;  %v3055_v30 = vadd.f32 %v6251_v0, %v3054_v13 }
 0x78a   :  { %v3115_v42 = vmul.f32 5.0, %v3055_v30  ;;  %v6452_v36 = vsel %vm3123_vm4, %v3116_v23, -1e+30 }
 0x78b   :  { %3228 = vmax.xlane.f32.xlu1 %v6452_v36 }
 0x78c   :  { %v6457_v40 = vsel %vm3123_vm4, %v3115_v42, -1e+30 }
 0x78d   :  { %v4387_v54 = vpop.f32.mrf.mxu1  ;;  %3226 = vmax.xlane.f32.xlu0 %v6457_v40 }
 0x78e   :  { %v3070_v20 = vadd.f32 %v4387_v54, %v6251_v0 }
 0x78f   :  { %v3064_v25 = vpop.f32.mrf.mxu1 }
 0x790   :  { %v3065_v29 = vadd.f32 %v6251_v0, %v3064_v25  ;;  %v3118_v60 = vmul.f32 5.0, %v3070_v20 }
 0x792   :  { %v3117_v34 = vmul.f32 5.0, %v3065_v29  ;;  %v6497_v13 = vsel %vm3123_vm4, %v3118_v60, -1e+30 }
 0x794   :  { %v3165_v41 = vpop.xlane.xlu0 %3164  ;;  %v6463_v9 = vsel %vm3123_vm4, %v3117_v34, -1e+30 }
 0x795   :  { %v6466_v14 = vsub.f32 %v6260_v31, %v3165_v41  ;;  %v4390_v56 = vpop.f32.mrf.mxu1  ;;  %3230 = vmax.xlane.f32.xlu0 %v6463_v9 }
 0x796   :  { %v3080_v16 = vadd.f32 %v4390_v56, %v6251_v0 }
 0x797   :  { %v3280_v32 = vmul.f32 1.442695, %v6466_v14  ;;  %v3074_v35 = vpop.f32.mrf.mxu1 }
 0x798   :  { %v3120_v19 = vmul.f32 5.0, %v3080_v16  ;;  %v3075_v39 = vadd.f32 %v6251_v0, %v3074_v35  ;;  %v3163_v43 = vpop.xlane.xlu0 %3162 }
 0x799   :  { %4508 = vpow2.f32 %v3280_v32  ;;  %v6474_v53 = vsub.f32 %v6266_v58, %v3163_v43 }
 0x79a   :  { %v3119_v31 = vmul.f32 5.0, %v3075_v39  ;;  %v6478_v57 = vsel %vm3123_vm4, %v3120_v19, -1e+30 }
 0x79b   :  { %v3278_v62 = vmul.f32 1.442695, %v6474_v53  ;;  %v3237_v59 = vsel %vm3236_vm5, %v6478_v57, -inf }
 0x79c   :  { %v3169_v61 = vpop.xlane.xlu1 %3168  ;;  %3238 = vmax.xlane.f32.xlu1 %v3237_v59  ;;  %v6485_v0 = vsel %vm3123_vm4, %v3119_v31, -1e+30 }
 0x79d   :  { %4510 = vpow2.f32 %v3278_v62  ;;  %v6488_v58 = vsub.f32 %v6272_v52, %v3169_v61  ;;  %3234 = vmax.xlane.f32.xlu0 %v6485_v0 }
 0x79e   :  { %v3167_v4 = vpop.xlane.xlu0 %3166 }
 0x79f   :  { %v3284_v8 = vmul.f32 1.442695, %v6488_v58  ;;  %v6493_v10 = vsub.f32 %v6277_v47, %v3167_v4 }
 0x7a0   :  { %3232 = vmax.xlane.f32.xlu1 %v6497_v13 }
 0x7a1   :  { %4512 = vpow2.f32 %v3284_v8  ;;  %v3282_v23 = vmul.f32 1.442695, %v6493_v10 }
 0x7a3   :  { %4514 = vpow2.f32 %v3282_v23 }
 0x7a4   :  { %v3173_v52 = vpop.xlane.xlu1 %3172 }
 0x7a5   :  { %v6502_v30 = vsub.f32 %v6284_v17, %v3173_v52 }
 0x7a6   :  { %v4509_v42 = vpop.eup %4508  ;;  %v3171_v54 = vpop.xlane.xlu0 %3170 }
 0x7a7   :  { %v3288_v25 = vmul.f32 1.442695, %v6502_v30  ;;  %v6506_v47 = vsub.f32 %v6289_v48, %v3171_v54  ;;  %3356 = vadd.xlane.f32.xlu0 %v4509_v42 }
 0x7a9   :  { %4516 = vpow2.f32 %v3288_v25  ;;  %v3286_v5 = vmul.f32 1.442695, %v6506_v47 }
 0x7aa   :  { %v4511_v29 = vpop.eup %4510 }
 0x7ab   :  { %4518 = vpow2.f32 %v3286_v5  ;;  %3354 = vadd.xlane.f32.xlu1 %v4511_v29 }
 0x7ac   :  { %v3177_v34 = vpop.xlane.xlu1 %3176 }
 0x7ad   :  { %v6510_v41 = vsub.f32 %v6296_v27, %v3177_v34 }
 0x7ae   :  { %v4513_v17 = vpop.eup %4512  ;;  %v3175_v56 = vpop.xlane.xlu0 %3174 }
 0x7af   :  { %v3292_v16 = vmul.f32 1.442695, %v6510_v41  ;;  %v6514_v20 = vsub.f32 %v6301_v37, %v3175_v56  ;;  %3360 = vadd.xlane.f32.xlu0 %v4513_v17 }
 0x7b0   :  { %v4515_v48 = vpop.eup %4514 }
 0x7b1   :  { %4520 = vpow2.f32 %v3292_v16  ;;  %v3290_v32 = vmul.f32 1.442695, %v6514_v20  ;;  %3358 = vadd.xlane.f32.xlu1 %v4515_v48 }
 0x7b3   :  { %4522 = vpow2.f32 %v3290_v32 }
 0x7b4   :  { %v3181_v35 = vpop.xlane.xlu1 %3180 }
 0x7b5   :  { %v6518_v19 = vsub.f32 %v6308_v15, %v3181_v35 }
 0x7b6   :  { %v4517_v27 = vpop.eup %4516  ;;  %v3179_v39 = vpop.xlane.xlu0 %3178 }
 0x7b7   :  { %v3296_v43 = vmul.f32 1.442695, %v6518_v19  ;;  %v6522_v31 = vsub.f32 %v6313_v18, %v3179_v39  ;;  %3364 = vadd.xlane.f32.xlu0 %v4517_v27 }
 0x7b8   :  { %v4519_v37 = vpop.eup %4518 }
 0x7b9   :  { %4524 = vpow2.f32 %v3296_v43  ;;  %v3294_v60 = vmul.f32 1.442695, %v6522_v31  ;;  %3362 = vadd.xlane.f32.xlu1 %v4519_v37 }
 0x7bb   :  { %4526 = vpow2.f32 %v3294_v60 }
 0x7bc   :  { %v3185_v62 = vpop.xlane.xlu1 %3184 }
 0x7bd   :  { %v6526_v59 = vsub.f32 %v6320_v21, %v3185_v62 }
 0x7be   :  { %v4521_v15 = vpop.eup %4520  ;;  %v3183_v61 = vpop.xlane.xlu0 %3182 }
 0x7bf   :  { %v3300_v4 = vmul.f32 1.442695, %v6526_v59  ;;  %v6530_v8 = vsub.f32 %v6325_v1, %v3183_v61  ;;  %3368 = vadd.xlane.f32.xlu0 %v4521_v15 }
 0x7c0   :  { %v4523_v18 = vpop.eup %4522 }
 0x7c1   :  { %4528 = vpow2.f32 %v3300_v4  ;;  %v3298_v23 = vmul.f32 1.442695, %v6530_v8  ;;  %3366 = vadd.xlane.f32.xlu1 %v4523_v18 }
 0x7c3   :  { %4530 = vpow2.f32 %v3298_v23 }
 0x7c4   :  { %v3189_v52 = vpop.xlane.xlu1 %3188 }
 0x7c5   :  { %v6534_v42 = vsub.f32 %v6332_v63, %v3189_v52 }
 0x7c6   :  { %v4525_v21 = vpop.eup %4524  ;;  %v3187_v54 = vpop.xlane.xlu0 %3186 }
 0x7c7   :  { %v3304_v25 = vmul.f32 1.442695, %v6534_v42  ;;  %v6538_v5 = vsub.f32 %v6337_v26, %v3187_v54  ;;  %3372 = vadd.xlane.f32.xlu0 %v4525_v21 }
 0x7c8   :  { %v4527_v1 = vpop.eup %4526 }
 0x7c9   :  { %4532 = vpow2.f32 %v3304_v25  ;;  %v3302_v29 = vmul.f32 1.442695, %v6538_v5  ;;  %3370 = vadd.xlane.f32.xlu1 %v4527_v1 }
 0x7cb   :  { %4534 = vpow2.f32 %v3302_v29 }
 0x7cc   :  { %v3193_v34 = vpop.xlane.xlu1 %3192 }
 0x7cd   :  { %v6542_v17 = vsub.f32 %v6344_v12, %v3193_v34 }
 0x7ce   :  { %v4529_v63 = vpop.eup %4528  ;;  %v3191_v56 = vpop.xlane.xlu0 %3190 }
 0x7cf   :  { %v3308_v16 = vmul.f32 1.442695, %v6542_v17  ;;  %v6546_v48 = vsub.f32 %v6349_v24, %v3191_v56  ;;  %3376 = vadd.xlane.f32.xlu0 %v4529_v63 }
 0x7d0   :  { %v4531_v26 = vpop.eup %4530 }
 0x7d1   :  { %4536 = vpow2.f32 %v3308_v16  ;;  %v3306_v32 = vmul.f32 1.442695, %v6546_v48  ;;  %3374 = vadd.xlane.f32.xlu1 %v4531_v26 }
 0x7d3   :  { %4538 = vpow2.f32 %v3306_v32 }
 0x7d4   :  { %v3197_v35 = vpop.xlane.xlu1 %3196 }
 0x7d5   :  { %v6550_v27 = vsub.f32 %v6356_v49, %v3197_v35 }
 0x7d6   :  { %v4533_v12 = vpop.eup %4532  ;;  %v3195_v39 = vpop.xlane.xlu0 %3194 }
 0x7d7   :  { %v3312_v43 = vmul.f32 1.442695, %v6550_v27  ;;  %v6554_v37 = vsub.f32 %v6361_v33, %v3195_v39  ;;  %3380 = vadd.xlane.f32.xlu0 %v4533_v12 }
 0x7d8   :  { %v4535_v24 = vpop.eup %4534 }
 0x7d9   :  { %4540 = vpow2.f32 %v3312_v43  ;;  %v3310_v60 = vmul.f32 1.442695, %v6554_v37  ;;  %3378 = vadd.xlane.f32.xlu1 %v4535_v24 }
 0x7db   :  { %4542 = vpow2.f32 %v3310_v60 }
 0x7dc   :  { %v3201_v62 = vpop.xlane.xlu1 %3200 }
 0x7dd   :  { %v6558_v15 = vsub.f32 %v6368_v2, %v3201_v62 }
 0x7de   :  { %v4537_v49 = vpop.eup %4536  ;;  %v3199_v61 = vpop.xlane.xlu0 %3198 }
 0x7df   :  { %v3316_v4 = vmul.f32 1.442695, %v6558_v15  ;;  %v6562_v18 = vsub.f32 %v6373_v38, %v3199_v61  ;;  %3384 = vadd.xlane.f32.xlu0 %v4537_v49 }
 0x7e0   :  { %v4539_v33 = vpop.eup %4538 }
 0x7e1   :  { %4544 = vpow2.f32 %v3316_v4  ;;  %v3314_v23 = vmul.f32 1.442695, %v6562_v18  ;;  %3382 = vadd.xlane.f32.xlu1 %v4539_v33 }
 0x7e3   :  { %4546 = vpow2.f32 %v3314_v23 }
 0x7e4   :  { %v3205_v52 = vpop.xlane.xlu1 %3204 }
 0x7e5   :  { %v6566_v21 = vsub.f32 %v6380_v7, %v3205_v52 }
 0x7e6   :  { %v4541_v2 = vpop.eup %4540  ;;  %v3203_v54 = vpop.xlane.xlu0 %3202 }
 0x7e7   :  { %v3320_v25 = vmul.f32 1.442695, %v6566_v21  ;;  %v6570_v1 = vsub.f32 %v6385_v11, %v3203_v54  ;;  %3388 = vadd.xlane.f32.xlu0 %v4541_v2 }
 0x7e8   :  { %v4543_v38 = vpop.eup %4542 }
 0x7e9   :  { %4548 = vpow2.f32 %v3320_v25  ;;  %v3318_v29 = vmul.f32 1.442695, %v6570_v1  ;;  %3386 = vadd.xlane.f32.xlu1 %v4543_v38 }
 0x7eb   :  { %4550 = vpow2.f32 %v3318_v29 }
 0x7ec   :  { %v3209_v34 = vpop.xlane.xlu1 %3208 }
 0x7ed   :  { %v6574_v63 = vsub.f32 %v6392_v44, %v3209_v34 }
 0x7ee   :  { %v4545_v7 = vpop.eup %4544  ;;  %v3207_v56 = vpop.xlane.xlu0 %3206 }
 0x7ef   :  { %v3324_v16 = vmul.f32 1.442695, %v6574_v63  ;;  %v6578_v26 = vsub.f32 %v6397_v45, %v3207_v56  ;;  %3392 = vadd.xlane.f32.xlu0 %v4545_v7 }
 0x7f0   :  { %v4547_v11 = vpop.eup %4546 }
 0x7f1   :  { %4552 = vpow2.f32 %v3324_v16  ;;  %v3322_v32 = vmul.f32 1.442695, %v6578_v26  ;;  %3390 = vadd.xlane.f32.xlu1 %v4547_v11 }
 0x7f3   :  { %4554 = vpow2.f32 %v3322_v32 }
 0x7f4   :  { %v3213_v35 = vpop.xlane.xlu1 %3212 }
 0x7f5   :  { %v6582_v12 = vsub.f32 %v6404_v22, %v3213_v35 }
 0x7f6   :  { %v4549_v44 = vpop.eup %4548  ;;  %v3211_v39 = vpop.xlane.xlu0 %3210 }
 0x7f7   :  { %v3328_v43 = vmul.f32 1.442695, %v6582_v12  ;;  %v6586_v24 = vsub.f32 %v6409_v3, %v3211_v39  ;;  %3396 = vadd.xlane.f32.xlu0 %v4549_v44 }
 0x7f8   :  { %v4551_v45 = vpop.eup %4550 }
 0x7f9   :  { %4556 = vpow2.f32 %v3328_v43  ;;  %v3326_v60 = vmul.f32 1.442695, %v6586_v24  ;;  %3394 = vadd.xlane.f32.xlu1 %v4551_v45 }
 0x7fb   :  { %4558 = vpow2.f32 %v3326_v60 }
 0x7fc   :  { %v3217_v62 = vpop.xlane.xlu1 %3216 }
 0x7fd   :  { %v6590_v49 = vsub.f32 %v6416_v50, %v3217_v62 }
 0x7fe   :  { %v4553_v22 = vpop.eup %4552  ;;  %v3215_v61 = vpop.xlane.xlu0 %3214 }
 0x7ff   :  { %v3332_v4 = vmul.f32 1.442695, %v6590_v49  ;;  %v6594_v33 = vsub.f32 %v6421_v28, %v3215_v61  ;;  %3400 = vadd.xlane.f32.xlu0 %v4553_v22 }
 0x800   :  { %v4555_v3 = vpop.eup %4554 }
 0x801   :  { %4560 = vpow2.f32 %v3332_v4  ;;  %v3330_v23 = vmul.f32 1.442695, %v6594_v33  ;;  %3398 = vadd.xlane.f32.xlu1 %v4555_v3 }
 0x803   :  { %4562 = vpow2.f32 %v3330_v23 }
 0x804   :  { %v3221_v52 = vpop.xlane.xlu1 %3220 }
 0x805   :  { %v6598_v2 = vsub.f32 %v6428_v51, %v3221_v52 }
 0x806   :  { %v4557_v50 = vpop.eup %4556  ;;  %v3219_v54 = vpop.xlane.xlu0 %3218 }
 0x807   :  { %v3336_v25 = vmul.f32 1.442695, %v6598_v2  ;;  %v6602_v38 = vsub.f32 %v6433_v55, %v3219_v54  ;;  %3404 = vadd.xlane.f32.xlu0 %v4557_v50 }
 0x808   :  { %v4559_v28 = vpop.eup %4558 }
 0x809   :  { %4564 = vpow2.f32 %v3336_v25  ;;  %v3334_v29 = vmul.f32 1.442695, %v6602_v38  ;;  %3402 = vadd.xlane.f32.xlu1 %v4559_v28 }
 0x80b   :  { %4566 = vpow2.f32 %v3334_v29 }
 0x80c   :  { %v3225_v34 = vpop.xlane.xlu1 %3224 }
 0x80d   :  { %v6606_v7 = vsub.f32 %v6440_v6, %v3225_v34 }
 0x80e   :  { %v4561_v51 = vpop.eup %4560  ;;  %v3223_v56 = vpop.xlane.xlu0 %3222 }
 0x80f   :  { %v3340_v16 = vmul.f32 1.442695, %v6606_v7  ;;  %v6610_v11 = vsub.f32 %v6445_v46, %v3223_v56  ;;  %3408 = vadd.xlane.f32.xlu0 %v4561_v51 }
 0x810   :  { %v4563_v55 = vpop.eup %4562 }
 0x811   :  { %4568 = vpow2.f32 %v3340_v16  ;;  %v3338_v32 = vmul.f32 1.442695, %v6610_v11  ;;  %3406 = vadd.xlane.f32.xlu1 %v4563_v55 }
 0x813   :  { %4570 = vpow2.f32 %v3338_v32 }
 0x814   :  { %v3229_v35 = vpop.xlane.xlu1 %3228 }
 0x815   :  { %v6614_v44 = vsub.f32 %v6452_v36, %v3229_v35 }
 0x816   :  { %v4565_v6 = vpop.eup %4564  ;;  %v3227_v39 = vpop.xlane.xlu0 %3226 }
 0x817   :  { %v3344_v43 = vmul.f32 1.442695, %v6614_v44  ;;  %v6618_v45 = vsub.f32 %v6457_v40, %v3227_v39  ;;  %3412 = vadd.xlane.f32.xlu0 %v4565_v6 }
 0x818   :  { %v4567_v46 = vpop.eup %4566 }
 0x819   :  { %4572 = vpow2.f32 %v3344_v43  ;;  %v3342_v60 = vmul.f32 1.442695, %v6618_v45  ;;  %3410 = vadd.xlane.f32.xlu1 %v4567_v46 }
 0x81b   :  { %4574 = vpow2.f32 %v3342_v60 }
 0x81e   :  { %v4569_v62 = vpop.eup %4568  ;;  %v3231_v22 = vpop.xlane.xlu0 %3230 }
 0x81f   :  { %v6622_v61 = vsub.f32 %v6463_v9, %v3231_v22  ;;  %3416 = vadd.xlane.f32.xlu0 %v4569_v62 }
 0x820   :  { %v4571_v36 = vpop.eup %4570 }
 0x821   :  { %v3346_v4 = vmul.f32 1.442695, %v6622_v61  ;;  %3414 = vadd.xlane.f32.xlu1 %v4571_v36 }
 0x823   :  { %4576 = vpow2.f32 %v3346_v4 }
 0x825   :  { %v3239_v40 = vpop.xlane.xlu1 %3238 }
 0x826   :  { %v4573_v3 = vpop.eup %4572  ;;  %v3235_v23 = vpop.xlane.xlu0 %3234  ;;  %v6626_v52 = vsub.f32 %v6478_v57, %v3239_v40 }
 0x827   :  { %v6629_v50 = vsub.f32 %v6485_v0, %v3235_v23  ;;  %3420 = vadd.xlane.f32.xlu0 %v4573_v3 }
 0x828   :  { %v4575_v54 = vpop.eup %4574  ;;  %v3352_v29 = vmul.f32 1.442695, %v6626_v52 }
 0x829   :  { %v3350_v9 = vmul.f32 1.442695, %v6629_v50  ;;  %v3233_v25 = vpop.xlane.xlu1 %3232  ;;  %3418 = vadd.xlane.f32.xlu1 %v4575_v54 }
 0x82a   :  { %v6633_v28 = vsub.f32 %v6497_v13, %v3233_v25 }
 0x82b   :  { %4578 = vpow2.f32 %v3350_v9 }
 0x82c   :  { %v3348_v34 = vmul.f32 1.442695, %v6633_v28 }
 0x82e   :  { %4580 = vpow2.f32 %v3348_v34 }
 0x82f   :  { %4582 = vpow2.f32 %v3352_v29 }
 0x830   :  { %v4577_v57 = vpop.eup %4576  ;;  %v3357_v51 = vpop.xlane.xlu0 %3356 }
 0x831   :  { %4584 = vlog2.f32 %v3357_v51  ;;  %3422 = vadd.xlane.f32.xlu1 %v4577_v57 }
 0x834   :  { %v3355_v0 = vpop.xlane.xlu1 %3354 }
 0x835   :  { %4586 = vlog2.f32 %v3355_v0 }
 0x838   :  { %v4579_v56 = vpop.eup %4578  ;;  %v3361_v16 = vpop.xlane.xlu0 %3360 }
 0x839   :  { %4588 = vlog2.f32 %v3361_v16  ;;  %3426 = vadd.xlane.f32.xlu1 %v4579_v56 }
 0x83a   :  { %v3359_v55 = vpop.xlane.xlu1 %3358 }
 0x83b   :  { %v4581_v13 = vpop.eup %4580  ;;  %4590 = vlog2.f32 %v3359_v55 }
 0x83c   :  { %v4583_v32 = vpop.eup %4582  ;;  %3424 = vadd.xlane.f32.xlu0 %v4581_v13 }
 0x83d   :  { %v3428_v39 = vsel %vm3236_vm5, %v4583_v32, 0.0 }
 0x83e   :  { %v4585_v35 = vpop.eup %4584 }
 0x83f   :  { %v3434_v6 = vmul.f32 0.6931472, %v4585_v35 }
 0x840   :  { %3429 = vadd.xlane.f32.xlu0 %v3428_v39  ;;  %v3365_v43 = vpop.xlane.xlu0 %3364 }
 0x841   :  { %v3508_v46 = vsub.f32 %v6466_v14, %v3434_v6  ;;  %4592 = vlog2.f32 %v3365_v43 }
 0x842   :  { %v4587_v60 = vpop.eup %4586  ;;  %v3363_v62 = vpop.xlane.xlu1 %3362 }
 0x843   :  { %3546 = vst [vmem:[%s6798_s8 + $0x8] sm:$0xff] %v3508_v46  ;;  %v3432_v22 = vmul.f32 0.6931472, %v4587_v60  ;;  %4594 = vlog2.f32 %v3363_v62 }
 0x845   :  { %v3507_v36 = vsub.f32 %v6474_v53, %v3432_v22 }
 0x846   :  { %v4589_v4 = vpop.eup %4588 }
 0x847   :  { %3545 = vst [vmem:[%s6798_s8] sm:$0xff] %v3507_v36  ;;  %v3438_v40 = vmul.f32 0.6931472, %v4589_v4 }
 0x848   :  { %v4591_v3 = vpop.eup %4590  ;;  %v3369_v23 = vpop.xlane.xlu0 %3368 }
 0x849   :  { %v3510_v14 = vsub.f32 %v6488_v58, %v3438_v40  ;;  %v3436_v54 = vmul.f32 0.6931472, %v4591_v3  ;;  %4596 = vlog2.f32 %v3369_v23 }
 0x84a   :  { %v3367_v9 = vpop.xlane.xlu1 %3366 }
 0x84b   :  { %3548 = vst [vmem:[%s6798_s8 + $0x18] sm:$0xff] %v3510_v14  ;;  %v3509_v25 = vsub.f32 %v6493_v10, %v3436_v54  ;;  %4598 = vlog2.f32 %v3367_v9 }
 0x84d   :  { %3547 = vst [vmem:[%s6798_s8 + $0x10] sm:$0xff] %v3509_v25 }
 0x84e   :  { %v4593_v53 = vpop.eup %4592 }
 0x84f   :  { %v3442_v29 = vmul.f32 0.6931472, %v4593_v53 }
 0x850   :  { %v4595_v34 = vpop.eup %4594  ;;  %v3373_v57 = vpop.xlane.xlu0 %3372 }
 0x851   :  { %v3512_v58 = vsub.f32 %v6502_v30, %v3442_v29  ;;  %v3440_v51 = vmul.f32 0.6931472, %v4595_v34  ;;  %4600 = vlog2.f32 %v3373_v57 }
 0x852   :  { %v3371_v0 = vpop.xlane.xlu1 %3370 }
 0x853   :  { %3550 = vst [vmem:[%s6798_s8 + $0x28] sm:$0xff] %v3512_v58  ;;  %v3511_v10 = vsub.f32 %v6506_v47, %v3440_v51  ;;  %4602 = vlog2.f32 %v3371_v0 }
 0x855   :  { %3549 = vst [vmem:[%s6798_s8 + $0x20] sm:$0xff] %v3511_v10 }
 0x856   :  { %v4597_v56 = vpop.eup %4596 }
 0x857   :  { %v3446_v16 = vmul.f32 0.6931472, %v4597_v56 }
 0x858   :  { %v4599_v55 = vpop.eup %4598  ;;  %v3377_v13 = vpop.xlane.xlu0 %3376 }
 0x859   :  { %v3514_v30 = vsub.f32 %v6510_v41, %v3446_v16  ;;  %v3444_v32 = vmul.f32 0.6931472, %v4599_v55  ;;  %4604 = vlog2.f32 %v3377_v13 }
 0x85a   :  { %v3375_v35 = vpop.xlane.xlu1 %3374 }
 0x85b   :  { %3552 = vst [vmem:[%s6798_s8 + $0x38] sm:$0xff] %v3514_v30  ;;  %v3513_v47 = vsub.f32 %v6514_v20, %v3444_v32  ;;  %4606 = vlog2.f32 %v3375_v35 }
 0x85d   :  { %3551 = vst [vmem:[%s6798_s8 + $0x30] sm:$0xff] %v3513_v47 }
 0x85e   :  { %v4601_v6 = vpop.eup %4600 }
 0x85f   :  { %v3450_v39 = vmul.f32 0.6931472, %v4601_v6 }
 0x860   :  { %v4603_v43 = vpop.eup %4602  ;;  %v3381_v46 = vpop.xlane.xlu0 %3380 }
 0x861   :  { %v3516_v41 = vsub.f32 %v6518_v19, %v3450_v39  ;;  %v3448_v60 = vmul.f32 0.6931472, %v4603_v43  ;;  %4608 = vlog2.f32 %v3381_v46 }
 0x862   :  { %v3379_v62 = vpop.xlane.xlu1 %3378 }
 0x863   :  { %3554 = vst [vmem:[%s6798_s8 + $0x48] sm:$0xff] %v3516_v41  ;;  %v3515_v20 = vsub.f32 %v6522_v31, %v3448_v60  ;;  %4610 = vlog2.f32 %v3379_v62 }
 0x865   :  { %3553 = vst [vmem:[%s6798_s8 + $0x40] sm:$0xff] %v3515_v20 }
 0x866   :  { %v4605_v22 = vpop.eup %4604 }
 0x867   :  { %v3454_v36 = vmul.f32 0.6931472, %v4605_v22 }
 0x868   :  { %v4607_v4 = vpop.eup %4606  ;;  %v3385_v40 = vpop.xlane.xlu0 %3384 }
 0x869   :  { %v3518_v19 = vsub.f32 %v6526_v59, %v3454_v36  ;;  %v3452_v3 = vmul.f32 0.6931472, %v4607_v4  ;;  %4612 = vlog2.f32 %v3385_v40 }
 0x86a   :  { %v3383_v23 = vpop.xlane.xlu1 %3382 }
 0x86b   :  { %3556 = vst [vmem:[%s6798_s8 + $0x58] sm:$0xff] %v3518_v19  ;;  %v3517_v31 = vsub.f32 %v6530_v8, %v3452_v3  ;;  %4614 = vlog2.f32 %v3383_v23 }
 0x86d   :  { %3555 = vst [vmem:[%s6798_s8 + $0x50] sm:$0xff] %v3517_v31 }
 0x86e   :  { %v4609_v14 = vpop.eup %4608 }
 0x86f   :  { %v3458_v54 = vmul.f32 0.6931472, %v4609_v14 }
 0x870   :  { %v4611_v9 = vpop.eup %4610  ;;  %v3389_v25 = vpop.xlane.xlu0 %3388 }
 0x871   :  { %v3520_v59 = vsub.f32 %v6534_v42, %v3458_v54  ;;  %v3456_v53 = vmul.f32 0.6931472, %v4611_v9  ;;  %4616 = vlog2.f32 %v3389_v25 }
 0x872   :  { %v3387_v29 = vpop.xlane.xlu1 %3386 }
 0x873   :  { %3558 = vst [vmem:[%s6798_s8 + $0x68] sm:$0xff] %v3520_v59  ;;  %v3519_v8 = vsub.f32 %v6538_v5, %v3456_v53  ;;  %4618 = vlog2.f32 %v3387_v29 }
 0x875   :  { %3557 = vst [vmem:[%s6798_s8 + $0x60] sm:$0xff] %v3519_v8 }
 0x876   :  { %v4613_v34 = vpop.eup %4612 }
 0x877   :  { %v3462_v57 = vmul.f32 0.6931472, %v4613_v34 }
 0x878   :  { %v4615_v58 = vpop.eup %4614  ;;  %v3393_v51 = vpop.xlane.xlu0 %3392 }
 0x879   :  { %v3522_v42 = vsub.f32 %v6542_v17, %v3462_v57  ;;  %v3460_v0 = vmul.f32 0.6931472, %v4615_v58  ;;  %4620 = vlog2.f32 %v3393_v51 }
 0x87a   :  { %v3391_v10 = vpop.xlane.xlu1 %3390 }
 0x87b   :  { %3560 = vst [vmem:[%s6798_s8 + $0x78] sm:$0xff] %v3522_v42  ;;  %v3521_v5 = vsub.f32 %v6546_v48, %v3460_v0  ;;  %4622 = vlog2.f32 %v3391_v10 }
 0x87d   :  { %3559 = vst [vmem:[%s6798_s8 + $0x70] sm:$0xff] %v3521_v5 }
 0x87e   :  { %v4617_v56 = vpop.eup %4616 }
 0x87f   :  { %v3466_v16 = vmul.f32 0.6931472, %v4617_v56 }
 0x880   :  { %v4619_v55 = vpop.eup %4618  ;;  %v3397_v13 = vpop.xlane.xlu0 %3396 }
 0x881   :  { %v3524_v17 = vsub.f32 %v6550_v27, %v3466_v16  ;;  %v3464_v30 = vmul.f32 0.6931472, %v4619_v55  ;;  %4624 = vlog2.f32 %v3397_v13 }
 0x882   :  { %v3395_v32 = vpop.xlane.xlu1 %3394 }
 0x883   :  { %3562 = vst [vmem:[%s6798_s8 + $0x88] sm:$0xff] %v3524_v17  ;;  %v3523_v48 = vsub.f32 %v6554_v37, %v3464_v30  ;;  %4626 = vlog2.f32 %v3395_v32 }
 0x885   :  { %3561 = vst [vmem:[%s6798_s8 + $0x80] sm:$0xff] %v3523_v48 }
 0x886   :  { %v4621_v35 = vpop.eup %4620 }
 0x887   :  { %v3470_v47 = vmul.f32 0.6931472, %v4621_v35 }
 0x888   :  { %v4623_v6 = vpop.eup %4622  ;;  %v3401_v39 = vpop.xlane.xlu0 %3400 }
 0x889   :  { %v3526_v27 = vsub.f32 %v6558_v15, %v3470_v47  ;;  %v3468_v43 = vmul.f32 0.6931472, %v4623_v6  ;;  %4628 = vlog2.f32 %v3401_v39 }
 0x88a   :  { %v3399_v46 = vpop.xlane.xlu1 %3398 }
 0x88b   :  { %3564 = vst [vmem:[%s6798_s8 + $0x98] sm:$0xff] %v3526_v27  ;;  %v3525_v37 = vsub.f32 %v6562_v18, %v3468_v43  ;;  %4630 = vlog2.f32 %v3399_v46 }
 0x88d   :  { %3563 = vst [vmem:[%s6798_s8 + $0x90] sm:$0xff] %v3525_v37 }
 0x88e   :  { %v4625_v41 = vpop.eup %4624 }
 0x88f   :  { %v3474_v60 = vmul.f32 0.6931472, %v4625_v41 }
 0x890   :  { %v4627_v62 = vpop.eup %4626  ;;  %v3405_v20 = vpop.xlane.xlu0 %3404 }
 0x891   :  { %v3528_v15 = vsub.f32 %v6566_v21, %v3474_v60  ;;  %v3472_v22 = vmul.f32 0.6931472, %v4627_v62  ;;  %4632 = vlog2.f32 %v3405_v20 }
 0x892   :  { %v3403_v36 = vpop.xlane.xlu1 %3402 }
 0x893   :  { %3566 = vst [vmem:[%s6798_s8 + $0xa8] sm:$0xff] %v3528_v15  ;;  %v3527_v18 = vsub.f32 %v6570_v1, %v3472_v22  ;;  %4634 = vlog2.f32 %v3403_v36 }
 0x895   :  { %3565 = vst [vmem:[%s6798_s8 + $0xa0] sm:$0xff] %v3527_v18 }
 0x896   :  { %v4629_v4 = vpop.eup %4628 }
 0x897   :  { %v3478_v40 = vmul.f32 0.6931472, %v4629_v4 }
 0x898   :  { %v4631_v19 = vpop.eup %4630  ;;  %v3409_v3 = vpop.xlane.xlu0 %3408 }
 0x899   :  { %v3530_v21 = vsub.f32 %v6574_v63, %v3478_v40  ;;  %v3476_v23 = vmul.f32 0.6931472, %v4631_v19  ;;  %4636 = vlog2.f32 %v3409_v3 }
 0x89a   :  { %v3407_v31 = vpop.xlane.xlu1 %3406 }
 0x89b   :  { %3568 = vst [vmem:[%s6798_s8 + $0xb8] sm:$0xff] %v3530_v21  ;;  %v3529_v1 = vsub.f32 %v6578_v26, %v3476_v23  ;;  %4638 = vlog2.f32 %v3407_v31 }
 0x89d   :  { %3567 = vst [vmem:[%s6798_s8 + $0xb0] sm:$0xff] %v3529_v1 }
 0x89e   :  { %v4633_v14 = vpop.eup %4632 }
 0x89f   :  { %v3482_v54 = vmul.f32 0.6931472, %v4633_v14 }
 0x8a0   :  { %v4635_v9 = vpop.eup %4634  ;;  %v3413_v25 = vpop.xlane.xlu0 %3412 }
 0x8a1   :  { %v3532_v63 = vsub.f32 %v6582_v12, %v3482_v54  ;;  %v3480_v59 = vmul.f32 0.6931472, %v4635_v9  ;;  %4640 = vlog2.f32 %v3413_v25 }
 0x8a2   :  { %v3411_v53 = vpop.xlane.xlu1 %3410 }
 0x8a3   :  { %3570 = vst [vmem:[%s6798_s8 + $0xc8] sm:$0xff] %v3532_v63  ;;  %v3531_v26 = vsub.f32 %v6586_v24, %v3480_v59  ;;  %4642 = vlog2.f32 %v3411_v53 }
 0x8a5   :  { %3569 = vst [vmem:[%s6798_s8 + $0xc0] sm:$0xff] %v3531_v26 }
 0x8a6   :  { %v4637_v29 = vpop.eup %4636 }
 0x8a7   :  { %v3486_v8 = vmul.f32 0.6931472, %v4637_v29 }
 0x8a8   :  { %v4639_v34 = vpop.eup %4638  ;;  %v3417_v57 = vpop.xlane.xlu0 %3416 }
 0x8a9   :  { %v3534_v12 = vsub.f32 %v6590_v49, %v3486_v8  ;;  %v3484_v58 = vmul.f32 0.6931472, %v4639_v34  ;;  %4644 = vlog2.f32 %v3417_v57 }
 0x8aa   :  { %v3415_v51 = vpop.xlane.xlu1 %3414 }
 0x8ab   :  { %3572 = vst [vmem:[%s6798_s8 + $0xd8] sm:$0xff] %v3534_v12  ;;  %v3533_v24 = vsub.f32 %v6594_v33, %v3484_v58  ;;  %4646 = vlog2.f32 %v3415_v51 }
 0x8ad   :  { %3571 = vst [vmem:[%s6798_s8 + $0xd0] sm:$0xff] %v3533_v24 }
 0x8ae   :  { %v4641_v42 = vpop.eup %4640 }
 0x8af   :  { %v3490_v0 = vmul.f32 0.6931472, %v4641_v42 }
 0x8b0   :  { %v4643_v10 = vpop.eup %4642  ;;  %v3421_v5 = vpop.xlane.xlu0 %3420 }
 0x8b1   :  { %v3536_v49 = vsub.f32 %v6598_v2, %v3490_v0  ;;  %v3488_v56 = vmul.f32 0.6931472, %v4643_v10  ;;  %4648 = vlog2.f32 %v3421_v5 }
 0x8b2   :  { %v3419_v16 = vpop.xlane.xlu1 %3418 }
 0x8b3   :  { %3574 = vst [vmem:[%s6798_s8 + $0xe8] sm:$0xff] %v3536_v49  ;;  %v3535_v33 = vsub.f32 %v6602_v38, %v3488_v56  ;;  %4650 = vlog2.f32 %v3419_v16 }
 0x8b5   :  { %3573 = vst [vmem:[%s6798_s8 + $0xe0] sm:$0xff] %v3535_v33 }
 0x8b6   :  { %v4645_v55 = vpop.eup %4644 }
 0x8b7   :  { %v3494_v13 = vmul.f32 0.6931472, %v4645_v55 }
 0x8b8   :  { %v4647_v17 = vpop.eup %4646 }
 0x8b9   :  { %v3538_v30 = vsub.f32 %v6606_v7, %v3494_v13  ;;  %v3492_v2 = vmul.f32 0.6931472, %v4647_v17 }
 0x8ba   :  { %v3423_v32 = vpop.xlane.xlu1 %3422 }
 0x8bb   :  { %3576 = vst [vmem:[%s6798_s8 + $0xf8] sm:$0xff] %v3538_v30  ;;  %v3537_v48 = vsub.f32 %v6610_v11, %v3492_v2  ;;  %4652 = vlog2.f32 %v3423_v32 }
 0x8bd   :  { %3575 = vst [vmem:[%s6798_s8 + $0xf0] sm:$0xff] %v3537_v48 }
 0x8be   :  { %v4649_v38 = vpop.eup %4648 }
 0x8bf   :  { %v3498_v35 = vmul.f32 0.6931472, %v4649_v38 }
 0x8c0   :  { %v4651_v47 = vpop.eup %4650 }
 0x8c1   :  { %v3540_v6 = vsub.f32 %v6614_v44, %v3498_v35  ;;  %v3496_v39 = vmul.f32 0.6931472, %v4651_v47 }
 0x8c2   :  { %v3427_v7 = vpop.xlane.xlu1 %3426 }
 0x8c3   :  { %3578 = vst [vmem:[%s6798_s8 + $0x108] sm:$0xff] %v3540_v6  ;;  %v3539_v27 = vsub.f32 %v6618_v45, %v3496_v39  ;;  %4654 = vlog2.f32 %v3427_v7 }
 0x8c5   :  { %3577 = vst [vmem:[%s6798_s8 + $0x100] sm:$0xff] %v3539_v27  ;;  %v3425_v11 = vpop.xlane.xlu0 %3424 }
 0x8c6   :  { %4656 = vlog2.f32 %v3425_v11 }
 0x8c8   :  { %v4653_v43 = vpop.eup %4652 }
 0x8c9   :  { %v3500_v46 = vmul.f32 0.6931472, %v4653_v43  ;;  %v3430_v37 = vpop.xlane.xlu0 %3429 }
 0x8ca   :  { %4658 = vlog2.f32 %v3430_v37 }
 0x8cb   :  { %v3541_v44 = vsub.f32 %v6622_v61, %v3500_v46 }
 0x8cd   :  { %3579 = vst [vmem:[%s6798_s8 + $0x110] sm:$0xff] %v3541_v44 }
 0x8d0   :  { %v4655_v41 = vpop.eup %4654 }
 0x8d1   :  { %v3504_v60 = vmul.f32 0.6931472, %v4655_v41 }
 0x8d3   :  { %v4657_v45 = vpop.eup %4656  ;;  %v3543_v62 = vsub.f32 %v6629_v50, %v3504_v60 }
 0x8d4   :  { %v3502_v20 = vmul.f32 0.6931472, %v4657_v45 }
 0x8d5   :  { %3581 = vst [vmem:[%s6798_s8 + $0x120] sm:$0xff] %v3543_v62 }
 0x8d6   :  { %v3542_v15 = vsub.f32 %v6633_v28, %v3502_v20 }
 0x8d7   :  { %v4659_v22 = vpop.eup %4658 }
 0x8d8   :  { %3580 = vst [vmem:[%s6798_s8 + $0x118] sm:$0xff] %v3542_v15  ;;  %v3506_v61 = vmul.f32 0.6931472, %v4659_v22 }
 0x8da   :  { %v3544_v36 = vsub.f32 %v6626_v52, %v3506_v61 }
 0x8dc   :  { %3582 = vst [vmem:[%s6798_s8 + $0x128] sm:$0xf] %v3544_v36 }
 0x8dd   :  { %3587 = vsyncpa [#allocation3], 1 }

</bundles_post_ra>
